<compile_context>
chip_gen: v6e
topology: v6e:2x2x1
jax: 0.10.0
libtpu: 0.0.40
codegen_flags: <defaults>
</compile_context>

<pallas_src>
import functools
import math

import jax
import jax.numpy as jnp
from jax.experimental import pallas as pl
from jax.experimental.pallas import tpu as pltpu


def _vmem():
    return pl.BlockSpec(memory_space=pltpu.MemorySpace.VMEM)


# --------------------------------------------------------------------------
# Kernel 1: nn1 edge network (Fe -> H -> H -> H*H), 3 layers fused
# --------------------------------------------------------------------------

def _edge_mlp_kernel(ea_ref, w0_ref, b0_ref, w1_ref, b1_ref, w2_ref, b2_ref, o_ref):
    y = jnp.dot(ea_ref[...], w0_ref[...], preferred_element_type=jnp.float32) + b0_ref[...]
    y = jnp.maximum(y, 0.0)
    y = jnp.dot(y, w1_ref[...], preferred_element_type=jnp.float32) + b1_ref[...]
    y = jnp.maximum(y, 0.0)
    o_ref[...] = jnp.dot(y, w2_ref[...], preferred_element_type=jnp.float32) + b2_ref[...]


# --------------------------------------------------------------------------
# Kernel 2: fused T-step message passing (NNConv + GRUCell) + Linear(H+F, 2H)
# --------------------------------------------------------------------------

def _mp_kernel(T, h0_ref, x_ref, src_ref, dst_ref, w_ref,
               wih_ref, whh_ref, bih_ref, bhh_ref,
               lin_wh_ref, lin_wx_ref, lin_b_ref, o_ref):
    h = h0_ref[...]                                   # [N, H]
    x = x_ref[...]                                    # [N, F]
    n_nodes, hdim = h.shape
    n_edges = w_ref.shape[1]

    # Gather / scatter one-hot matrices: built ONCE, hoisted out of the T loop.
    src_oh = (jax.lax.broadcasted_iota(jnp.int32, (n_edges, n_nodes), 1)
              == src_ref[...]).astype(jnp.float32)    # [E, N]
    dst_oh = (jax.lax.broadcasted_iota(jnp.int32, (n_nodes, n_edges), 0)
              == dst_ref[...]).astype(jnp.float32)    # [N, E]

    # Packed GRU gate weights: single wide matmuls per step (gates r|z|n).
    wih = wih_ref[...]                                # [H, 3H]
    whh = whh_ref[...]                                # [H, 3H]
    bih = bih_ref[...]                                # [1, 3H]
    bhh = bhh_ref[...]                                # [1, 3H]

    for _ in range(T):
        # gather: h_src[e] = h[src[e]]  (one-hot matmul on the MXU)
        h_src = jnp.dot(src_oh, h, preferred_element_type=jnp.float32)      # [E, H]

        # per-edge matvec msgs[e, o] = sum_i h_src[e, i] * W[e, i, o]
        # accumulated over input channels (VALU FMA, no [E,H,H] broadcast temp)
        msgs = jnp.zeros((n_edges, hdim), jnp.float32)
        for i in range(hdim):
            msgs = msgs + h_src[:, i:i + 1] * w_ref[i]                       # [E, H]

        # scatter-add at destination nodes (aggr='add') == one-hot matmul
        m = jnp.dot(dst_oh, msgs, preferred_element_type=jnp.float32)        # [N, H]

        # GRUCell(m, h) with packed gates
        gx = jnp.dot(m, wih, preferred_element_type=jnp.float32) + bih       # [N, 3H]
        gh = jnp.dot(h, whh, preferred_element_type=jnp.float32) + bhh       # [N, 3H]
        r = jax.nn.sigmoid(gx[:, :hdim] + gh[:, :hdim])
        z = jax.nn.sigmoid(gx[:, hdim:2 * hdim] + gh[:, hdim:2 * hdim])
        ng = jnp.tanh(gx[:, 2 * hdim:] + r * gh[:, 2 * hdim:])
        h = (1.0 - z) * ng + z * h
        # Dropout (eval mode) -> identity

    # lin(concat(h, x)) = h @ Wh + x @ Wx + b
    o_ref[...] = (jnp.dot(h, lin_wh_ref[...], preferred_element_type=jnp.float32)
                  + jnp.dot(x, lin_wx_ref[...], preferred_element_type=jnp.float32)
                  + lin_b_ref[...])


# --------------------------------------------------------------------------
# Kernel 3: fused Set2Set (2-layer LSTM + segment softmax, M steps) + nn2 head
# --------------------------------------------------------------------------

def _s2s_head_kernel(M, feat_ref, batch_ref,
                     l0_wih_ref, l0_whh_ref, l0_b_ref,
                     l1_wih_ref, l1_whh_ref, l1_b_ref,
                     n2_w0_ref, n2_b0_ref, n2_w1_ref, n2_b1_ref, o_ref):
    feat = feat_ref[...]                              # [N, D]   (D = 2*hidden)
    n_nodes, d = feat.shape
    bsz = o_ref.shape[0]

    # [B, N] graph one-hot, built once.
    boh = (jax.lax.broadcasted_iota(jnp.int32, (bsz, n_nodes), 0)
           == batch_ref[...]).astype(jnp.float32)

    # q_star = concat([q, r]); split the input-weight matrix instead of concatenating.
    l0_wih = l0_wih_ref[...]                          # [2D, 4D]
    wih_q = l0_wih[:d]                                # [D, 4D]
    wih_r = l0_wih[d:]                                # [D, 4D]

    def lstm(gates_in, h, c, whh_ref, b_ref):
        g = (gates_in
             + jnp.dot(h, whh_ref[...], preferred_element_type=jnp.float32)
             + b_ref[...])                            # [B, 4D], gates i|f|g|o
        i_g = jax.nn.sigmoid(g[:, :d])
        f_g = jax.nn.sigmoid(g[:, d:2 * d])
        g_g = jnp.tanh(g[:, 2 * d:3 * d])
        o_g = jax.nn.sigmoid(g[:, 3 * d:])
        c_new = f_g * c + i_g * g_g
        return o_g * jnp.tanh(c_new), c_new

    zeros_bd = jnp.zeros((bsz, d), jnp.float32)
    h0, c0, h1, c1 = zeros_bd, zeros_bd, zeros_bd, zeros_bd
    q, r = zeros_bd, zeros_bd                         # q_star == [q | r] == 0

    for _ in range(M):
        gates0 = (jnp.dot(q, wih_q, preferred_element_type=jnp.float32)
                  + jnp.dot(r, wih_r, preferred_element_type=jnp.float32))
        h0, c0 = lstm(gates0, h0, c0, l0_whh_ref, l0_b_ref)
        # LSTM inter-layer dropout inactive in eval mode
        gates1 = jnp.dot(h0, l1_wih_ref[...], preferred_element_type=jnp.float32)
        h1, c1 = lstm(gates1, h1, c1, l1_whh_ref, l1_b_ref)
        q = h1                                        # [B, D]

        # segment softmax attention over nodes of each graph
        e = jax.lax.dot_general(q, feat, (((1,), (1,)), ((), ())),
                                preferred_element_type=jnp.float32)   # [B, N]
        masked = jnp.where(boh > 0.0, e, jnp.float32(-1e30))
        seg_max = jnp.max(masked, axis=1, keepdims=True)              # [B, 1]
        expv = jnp.where(boh > 0.0, jnp.exp(e - seg_max), 0.0)        # [B, N]
        seg_sum = jnp.sum(expv, axis=1, keepdims=True)                # [B, 1]
        a = expv / jnp.maximum(seg_sum, jnp.float32(1e-30))           # guard empty graphs
        r = jnp.dot(a, feat, preferred_element_type=jnp.float32)      # [B, D]

    # nn2 head on q_star = [q | r]
    n2_w0 = n2_w0_ref[...]                            # [2D, 8*hidden]
    y = (jnp.dot(q, n2_w0[:d], preferred_element_type=jnp.float32)
         + jnp.dot(r, n2_w0[d:], preferred_element_type=jnp.float32)
         + n2_b0_ref[...])
    y = jnp.maximum(y, 0.0)
    o_ref[...] = jnp.dot(y, n2_w1_ref[...], preferred_element_type=jnp.float32) + n2_b1_ref[...]


# --------------------------------------------------------------------------
# Parameter init (deterministic, torch-like uniform(-1/sqrt(fan_in), ...))
# --------------------------------------------------------------------------

def _uniform(key, shape, bound):
    return jax.random.uniform(key, shape, jnp.float32, -bound, bound)


def _init_linear(key, fan_in, fan_out):
    kw, kb = jax.random.split(key)
    bound = 1.0 / math.sqrt(fan_in)
    return _uniform(kw, (fan_in, fan_out), bound), _uniform(kb, (1, fan_out), bound)


def init_params(key, num_edge_features, num_node_features, hidden_dim, num_targets):
    h = hidden_dim
    keys = jax.random.split(key, 16)
    p = {}
    # nn1: edge network  Fe -> H -> H -> H*H
    p["nn1_w0"], p["nn1_b0"] = _init_linear(keys[0], num_edge_features, h)
    p["nn1_w1"], p["nn1_b1"] = _init_linear(keys[1], h, h)
    p["nn1_w2"], p["nn1_b2"] = _init_linear(keys[2], h, h * h)
    # GRUCell(H, H): packed gates (r | z | n), stored [in, 3H]
    gb = 1.0 / math.sqrt(h)
    p["gru_wih"] = _uniform(keys[3], (h, 3 * h), gb)
    p["gru_whh"] = _uniform(keys[4], (h, 3 * h), gb)
    p["gru_bih"] = _uniform(keys[5], (1, 3 * h), gb)
    p["gru_bhh"] = _uniform(keys[6], (1, 3 * h), gb)
    # lin: Linear(H + F, 2H)
    p["lin_w"], p["lin_b"] = _init_linear(keys[7], h + num_node_features, 2 * h)
    # Set2Set LSTM: input 2D=4H, hidden D=2H, 2 layers; packed gates (i | f | g | o)
    d = 2 * h
    lb = 1.0 / math.sqrt(d)
    p["lstm0_wih"] = _uniform(keys[8], (2 * d, 4 * d), lb)
    p["lstm0_whh"] = _uniform(keys[9], (d, 4 * d), lb)
    p["lstm0_b"] = _uniform(keys[10], (1, 4 * d), lb)    # b_ih + b_hh folded
    p["lstm1_wih"] = _uniform(keys[11], (d, 4 * d), lb)
    p["lstm1_whh"] = _uniform(keys[12], (d, 4 * d), lb)
    p["lstm1_b"] = _uniform(keys[13], (1, 4 * d), lb)
    # nn2: 4H -> 8H -> num_targets
    p["nn2_w0"], p["nn2_b0"] = _init_linear(keys[14], 4 * h, 8 * h)
    p["nn2_w1"], p["nn2_b1"] = _init_linear(keys[15], 8 * h, num_targets)
    return p


# --------------------------------------------------------------------------
# Forward pass: 3 fused pallas_calls + tiny one-time JAX glue
# --------------------------------------------------------------------------

@functools.partial(jax.jit, static_argnames=("batch_size", "hidden_dim", "T", "M"))
def gnn_forward(params, x, edge_index, edge_attr, batch, batch_size,
                hidden_dim, T, M):
    n_nodes, f = x.shape
    n_edges = edge_attr.shape[0]
    h_dim = hidden_dim
    assert f <= h_dim

    # ---- Kernel 1: nn1 fused MLP -> per-edge weights [E, H*H] ----
    w_flat = pl.pallas_call(
        _edge_mlp_kernel,
        out_shape=jax.ShapeDtypeStruct((n_edges, h_dim * h_dim), jnp.float32),
        in_specs=[_vmem()] * 7,
        out_specs=_vmem(),
    )(edge_attr, params["nn1_w0"], params["nn1_b0"],
      params["nn1_w1"], params["nn1_b1"], params["nn1_w2"], params["nn1_b2"])

    # reorder once (XLA glue) to [H_in, E, H_out] so the MP kernel slices the
    # leading (untiled) axis per input channel.
    w_t = w_flat.reshape(n_edges, h_dim, h_dim).transpose(1, 0, 2)

    # ---- Kernel 2: fused T-step message passing + Linear(H+F, 2H) ----
    h0 = jnp.zeros((n_nodes, h_dim), jnp.float32).at[:, :f].set(x)
    src_col = edge_index[0].reshape(n_edges, 1).astype(jnp.int32)   # source j
    dst_row = edge_index[1].reshape(1, n_edges).astype(jnp.int32)   # target i
    lin_wh = params["lin_w"][:h_dim]                                # multiplies h
    lin_wx = params["lin_w"][h_dim:]                                # multiplies x

    feat = pl.pallas_call(
        functools.partial(_mp_kernel, T),
        out_shape=jax.ShapeDtypeStruct((n_nodes, 2 * h_dim), jnp.float32),
        in_specs=[_vmem()] * 12,
        out_specs=_vmem(),
    )(h0, x, src_col, dst_row, w_t,
      params["gru_wih"], params["gru_whh"], params["gru_bih"], params["gru_bhh"],
      lin_wh, lin_wx, params["lin_b"])

    # ---- Kernel 3: fused Set2Set (M steps) + nn2 head ----
    batch_row = batch.reshape(1, n_nodes).astype(jnp.int32)
    num_targets = params["nn2_b1"].shape[1]

    out = pl.pallas_call(
        functools.partial(_s2s_head_kernel, M),
        out_shape=jax.ShapeDtypeStruct((batch_size, num_targets), jnp.float32),
        in_specs=[_vmem()] * 12,
        out_specs=_vmem(),
    )(feat, batch_row,
      params["lstm0_wih"], params["lstm0_whh"], params["lstm0_b"],
      params["lstm1_wih"], params["lstm1_whh"], params["lstm1_b"],
      params["nn2_w0"], params["nn2_b0"], params["nn2_w1"], params["nn2_b1"])
    return out


# --------------------------------------------------------------------------

if __name__ == "__main__":
    key = jax.random.PRNGKey(0)

    num_edge_features = 4
    num_node_features = 8
    hidden_dim = 32
    T = 2
    M = 3
    num_targets = 3

    n_nodes = 12
    n_edges = 24
    batch_size = 2

    k_x, k_ea, k_src, k_dst, k_par = jax.random.split(key, 5)
    x = jax.random.normal(k_x, (n_nodes, num_node_features), jnp.float32)
    edge_attr = jax.random.normal(k_ea, (n_edges, num_edge_features), jnp.float32)
    src = jax.random.randint(k_src, (n_edges,), 0, n_nodes, jnp.int32)
    dst = jax.random.randint(k_dst, (n_edges,), 0, n_nodes, jnp.int32)
    edge_index = jnp.stack([src, dst], axis=0)                        # [2, E]
    batch = jnp.array([0] * 6 + [1] * 6, jnp.int32)                   # node -> graph id

    params = init_params(k_par, num_edge_features, num_node_features,
                         hidden_dim, num_targets)

    out = gnn_forward(params, x, edge_index, edge_attr, batch, batch_size,
                      hidden_dim, T, M)
    out = jax.block_until_ready(out)
    assert out.shape == (batch_size, num_targets)
    assert bool(jnp.all(jnp.isfinite(out)))
    print("KERNEL_OK")
</pallas_src>

<mosaic_0001>
module attributes {stable_mosaic.version = 11 : i64} {
  func.func @_edge_mlp_kernel(%arg0: memref<24x4xf32, #tpu.memory_space<vmem>>, %arg1: memref<4x32xf32, #tpu.memory_space<vmem>>, %arg2: memref<1x32xf32, #tpu.memory_space<vmem>>, %arg3: memref<32x32xf32, #tpu.memory_space<vmem>>, %arg4: memref<1x32xf32, #tpu.memory_space<vmem>>, %arg5: memref<32x1024xf32, #tpu.memory_space<vmem>>, %arg6: memref<1x1024xf32, #tpu.memory_space<vmem>>, %arg7: memref<24x1024xf32, #tpu.memory_space<vmem>>) attributes {dimension_semantics = [], scalar_prefetch = 0 : i64, scratch_operands = 0 : i64, tpu.core_type = #tpu.core_type<tc>} {
    %c0 = arith.constant 0 : index
    %c0_0 = arith.constant 0 : index
    %0 = vector.load %arg0[%c0, %c0_0] : memref<24x4xf32, #tpu.memory_space<vmem>>, vector<24x4xf32>
    %c0_1 = arith.constant 0 : index
    %c0_2 = arith.constant 0 : index
    %1 = vector.load %arg1[%c0_1, %c0_2] : memref<4x32xf32, #tpu.memory_space<vmem>>, vector<4x32xf32>
    %cst = arith.constant dense<0.000000e+00> : vector<24x32xf32>
    %2 = tpu.matmul %0, %1, %cst {dimension_numbers = #tpu.dot_dimension_numbers<[1], [0], [0], [1], [0, 0, 1, 1], [], []>} : vector<24x4xf32>, vector<4x32xf32>, vector<24x32xf32> -> vector<24x32xf32>
    %c0_3 = arith.constant 0 : index
    %c0_4 = arith.constant 0 : index
    %3 = vector.load %arg2[%c0_3, %c0_4] : memref<1x32xf32, #tpu.memory_space<vmem>>, vector<1x32xf32>
    %4 = vector.broadcast %3 : vector<1x32xf32> to vector<24x32xf32>
    %5 = arith.addf %2, %4 : vector<24x32xf32>
    %cst_5 = arith.constant 0.000000e+00 : f32
    %6 = vector.broadcast %cst_5 : f32 to vector<24x32xf32>
    %7 = arith.maximumf %5, %6 : vector<24x32xf32>
    %c0_6 = arith.constant 0 : index
    %c0_7 = arith.constant 0 : index
    %8 = vector.load %arg3[%c0_6, %c0_7] : memref<32x32xf32, #tpu.memory_space<vmem>>, vector<32x32xf32>
    %cst_8 = arith.constant dense<0.000000e+00> : vector<24x32xf32>
    %9 = tpu.matmul %7, %8, %cst_8 {dimension_numbers = #tpu.dot_dimension_numbers<[1], [0], [0], [1], [0, 0, 1, 1], [], []>} : vector<24x32xf32>, vector<32x32xf32>, vector<24x32xf32> -> vector<24x32xf32>
    %c0_9 = arith.constant 0 : index
    %c0_10 = arith.constant 0 : index
    %10 = vector.load %arg4[%c0_9, %c0_10] : memref<1x32xf32, #tpu.memory_space<vmem>>, vector<1x32xf32>
    %11 = vector.broadcast %10 : vector<1x32xf32> to vector<24x32xf32>
    %12 = arith.addf %9, %11 : vector<24x32xf32>
    %cst_11 = arith.constant 0.000000e+00 : f32
    %13 = vector.broadcast %cst_11 : f32 to vector<24x32xf32>
    %14 = arith.maximumf %12, %13 : vector<24x32xf32>
    %c0_12 = arith.constant 0 : index
    %c0_13 = arith.constant 0 : index
    %15 = vector.load %arg5[%c0_12, %c0_13] : memref<32x1024xf32, #tpu.memory_space<vmem>>, vector<32x1024xf32>
    %cst_14 = arith.constant dense<0.000000e+00> : vector<24x1024xf32>
    %16 = tpu.matmul %14, %15, %cst_14 {dimension_numbers = #tpu.dot_dimension_numbers<[1], [0], [0], [1], [0, 0, 1, 1], [], []>} : vector<24x32xf32>, vector<32x1024xf32>, vector<24x1024xf32> -> vector<24x1024xf32>
    %c0_15 = arith.constant 0 : index
    %c0_16 = arith.constant 0 : index
    %17 = vector.load %arg6[%c0_15, %c0_16] : memref<1x1024xf32, #tpu.memory_space<vmem>>, vector<1x1024xf32>
    %18 = vector.broadcast %17 : vector<1x1024xf32> to vector<24x1024xf32>
    %19 = arith.addf %16, %18 : vector<24x1024xf32>
    %c0_17 = arith.constant 0 : index
    %c0_18 = arith.constant 0 : index
    %20 = vector.load %arg7[%c0_17, %c0_18] : memref<24x1024xf32, #tpu.memory_space<vmem>>, vector<24x1024xf32>
    tpu.vector_store %arg7[%c0_17, %c0_18], %19 {strides = array<i32>} : memref<24x1024xf32, #tpu.memory_space<vmem>>, vector<24x1024xf32>,
    return
  }
}

module attributes {stable_mosaic.version = 11 : i64} {
  func.func @_mp_kernel(%arg0: memref<12x32xf32, #tpu.memory_space<vmem>>, %arg1: memref<12x8xf32, #tpu.memory_space<vmem>>, %arg2: memref<24x1xi32, #tpu.memory_space<vmem>>, %arg3: memref<1x24xi32, #tpu.memory_space<vmem>>, %arg4: memref<32x24x32xf32, #tpu.memory_space<vmem>>, %arg5: memref<32x96xf32, #tpu.memory_space<vmem>>, %arg6: memref<32x96xf32, #tpu.memory_space<vmem>>, %arg7: memref<1x96xf32, #tpu.memory_space<vmem>>, %arg8: memref<1x96xf32, #tpu.memory_space<vmem>>, %arg9: memref<32x64xf32, #tpu.memory_space<vmem>>, %arg10: memref<8x64xf32, #tpu.memory_space<vmem>>, %arg11: memref<1x64xf32, #tpu.memory_space<vmem>>, %arg12: memref<12x64xf32, #tpu.memory_space<vmem>>) attributes {dimension_semantics = [], scalar_prefetch = 0 : i64, scratch_operands = 0 : i64, tpu.core_type = #tpu.core_type<tc>} {
    %c0 = arith.constant 0 : index
    %c0_0 = arith.constant 0 : index
    %0 = vector.load %arg0[%c0, %c0_0] : memref<12x32xf32, #tpu.memory_space<vmem>>, vector<12x32xf32>
    %c0_1 = arith.constant 0 : index
    %c0_2 = arith.constant 0 : index
    %1 = vector.load %arg1[%c0_1, %c0_2] : memref<12x8xf32, #tpu.memory_space<vmem>>, vector<12x8xf32>
    %2 = tpu.iota {dimensions = array<i32: 1>} : vector<24x12xi32>
    %c0_3 = arith.constant 0 : index
    %c0_4 = arith.constant 0 : index
    %3 = vector.load %arg2[%c0_3, %c0_4] : memref<24x1xi32, #tpu.memory_space<vmem>>, vector<24x1xi32>
    %4 = vector.broadcast %3 : vector<24x1xi32> to vector<24x12xi32>
    %5 = arith.cmpi eq, %2, %4 : vector<24x12xi32>
    %6 = arith.extui %5 : vector<24x12xi1> to vector<24x12xi32>
    %7 = arith.sitofp %6 : vector<24x12xi32> to vector<24x12xf32>
    %8 = tpu.iota {dimensions = array<i32: 0>} : vector<12x24xi32>
    %c0_5 = arith.constant 0 : index
    %c0_6 = arith.constant 0 : index
    %9 = vector.load %arg3[%c0_5, %c0_6] : memref<1x24xi32, #tpu.memory_space<vmem>>, vector<1x24xi32>
    %10 = vector.broadcast %9 : vector<1x24xi32> to vector<12x24xi32>
    %11 = arith.cmpi eq, %8, %10 : vector<12x24xi32>
    %12 = arith.extui %11 : vector<12x24xi1> to vector<12x24xi32>
    %13 = arith.sitofp %12 : vector<12x24xi32> to vector<12x24xf32>
    %c0_7 = arith.constant 0 : index
    %c0_8 = arith.constant 0 : index
    %14 = vector.load %arg5[%c0_7, %c0_8] : memref<32x96xf32, #tpu.memory_space<vmem>>, vector<32x96xf32>
    %c0_9 = arith.constant 0 : index
    %c0_10 = arith.constant 0 : index
    %15 = vector.load %arg6[%c0_9, %c0_10] : memref<32x96xf32, #tpu.memory_space<vmem>>, vector<32x96xf32>
    %c0_11 = arith.constant 0 : index
    %c0_12 = arith.constant 0 : index
    %16 = vector.load %arg7[%c0_11, %c0_12] : memref<1x96xf32, #tpu.memory_space<vmem>>, vector<1x96xf32>
    %c0_13 = arith.constant 0 : index
    %c0_14 = arith.constant 0 : index
    %17 = vector.load %arg8[%c0_13, %c0_14] : memref<1x96xf32, #tpu.memory_space<vmem>>, vector<1x96xf32>
    %cst = arith.constant dense<0.000000e+00> : vector<24x32xf32>
    %18 = tpu.matmul %7, %0, %cst {dimension_numbers = #tpu.dot_dimension_numbers<[1], [0], [0], [1], [0, 0, 1, 1], [], []>} : vector<24x12xf32>, vector<12x32xf32>, vector<24x32xf32> -> vector<24x32xf32>
    %cst_15 = arith.constant 0.000000e+00 : f32
    %19 = vector.broadcast %cst_15 : f32 to vector<24x32xf32>
    %20 = vector.extract_strided_slice %18 {offsets = [0, 0], sizes = [24, 1], strides = [1, 1]} : vector<24x32xf32> to vector<24x1xf32>
    %c0_16 = arith.constant 0 : index
    %c0_17 = arith.constant 0 : index
    %c0_18 = arith.constant 0 : index
    %21 = vector.load %arg4[%c0_16, %c0_17, %c0_18] : memref<32x24x32xf32, #tpu.memory_space<vmem>>, vector<1x24x32xf32>
    %22 = vector.shape_cast %21 : vector<1x24x32xf32> to vector<24x32xf32>
    %23 = vector.broadcast %20 : vector<24x1xf32> to vector<24x32xf32>
    %24 = arith.mulf %23, %22 : vector<24x32xf32>
    %25 = arith.addf %19, %24 : vector<24x32xf32>
    %26 = vector.extract_strided_slice %18 {offsets = [0, 1], sizes = [24, 1], strides = [1, 1]} : vector<24x32xf32> to vector<24x1xf32>
    %c1 = arith.constant 1 : index
    %c0_19 = arith.constant 0 : index
    %c0_20 = arith.constant 0 : index
    %27 = vector.load %arg4[%c1, %c0_19, %c0_20] : memref<32x24x32xf32, #tpu.memory_space<vmem>>, vector<1x24x32xf32>
    %28 = vector.shape_cast %27 : vector<1x24x32xf32> to vector<24x32xf32>
    %29 = vector.broadcast %26 : vector<24x1xf32> to vector<24x32xf32>
    %30 = arith.mulf %29, %28 : vector<24x32xf32>
    %31 = arith.addf %25, %30 : vector<24x32xf32>
    %32 = vector.extract_strided_slice %18 {offsets = [0, 2], sizes = [24, 1], strides = [1, 1]} : vector<24x32xf32> to vector<24x1xf32>
    %c2 = arith.constant 2 : index
    %c0_21 = arith.constant 0 : index
    %c0_22 = arith.constant 0 : index
    %33 = vector.load %arg4[%c2, %c0_21, %c0_22] : memref<32x24x32xf32, #tpu.memory_space<vmem>>, vector<1x24x32xf32>
    %34 = vector.shape_cast %33 : vector<1x24x32xf32> to vector<24x32xf32>
    %35 = vector.broadcast %32 : vector<24x1xf32> to vector<24x32xf32>
    %36 = arith.mulf %35, %34 : vector<24x32xf32>
    %37 = arith.addf %31, %36 : vector<24x32xf32>
    %38 = vector.extract_strided_slice %18 {offsets = [0, 3], sizes = [24, 1], strides = [1, 1]} : vector<24x32xf32> to vector<24x1xf32>
    %c3 = arith.constant 3 : index
    %c0_23 = arith.constant 0 : index
    %c0_24 = arith.constant 0 : index
    %39 = vector.load %arg4[%c3, %c0_23, %c0_24] : memref<32x24x32xf32, #tpu.memory_space<vmem>>, vector<1x24x32xf32>
    %40 = vector.shape_cast %39 : vector<1x24x32xf32> to vector<24x32xf32>
    %41 = vector.broadcast %38 : vector<24x1xf32> to vector<24x32xf32>
    %42 = arith.mulf %41, %40 : vector<24x32xf32>
    %43 = arith.addf %37, %42 : vector<24x32xf32>
    %44 = vector.extract_strided_slice %18 {offsets = [0, 4], sizes = [24, 1], strides = [1, 1]} : vector<24x32xf32> to vector<24x1xf32>
    %c4 = arith.constant 4 : index
    %c0_25 = arith.constant 0 : index
    %c0_26 = arith.constant 0 : index
    %45 = vector.load %arg4[%c4, %c0_25, %c0_26] : memref<32x24x32xf32, #tpu.memory_space<vmem>>, vector<1x24x32xf32>
    %46 = vector.shape_cast %45 : vector<1x24x32xf32> to vector<24x32xf32>
    %47 = vector.broadcast %44 : vector<24x1xf32> to vector<24x32xf32>
    %48 = arith.mulf %47, %46 : vector<24x32xf32>
    %49 = arith.addf %43, %48 : vector<24x32xf32>
    %50 = vector.extract_strided_slice %18 {offsets = [0, 5], sizes = [24, 1], strides = [1, 1]} : vector<24x32xf32> to vector<24x1xf32>
    %c5 = arith.constant 5 : index
    %c0_27 = arith.constant 0 : index
    %c0_28 = arith.constant 0 : index
    %51 = vector.load %arg4[%c5, %c0_27, %c0_28] : memref<32x24x32xf32, #tpu.memory_space<vmem>>, vector<1x24x32xf32>
    %52 = vector.shape_cast %51 : vector<1x24x32xf32> to vector<24x32xf32>
    %53 = vector.broadcast %50 : vector<24x1xf32> to vector<24x32xf32>
    %54 = arith.mulf %53, %52 : vector<24x32xf32>
    %55 = arith.addf %49, %54 : vector<24x32xf32>
    %56 = vector.extract_strided_slice %18 {offsets = [0, 6], sizes = [24, 1], strides = [1, 1]} : vector<24x32xf32> to vector<24x1xf32>
    %c6 = arith.constant 6 : index
    %c0_29 = arith.constant 0 : index
    %c0_30 = arith.constant 0 : index
    %57 = vector.load %arg4[%c6, %c0_29, %c0_30] : memref<32x24x32xf32, #tpu.memory_space<vmem>>, vector<1x24x32xf32>
    %58 = vector.shape_cast %57 : vector<1x24x32xf32> to vector<24x32xf32>
    %59 = vector.broadcast %56 : vector<24x1xf32> to vector<24x32xf32>
    %60 = arith.mulf %59, %58 : vector<24x32xf32>
    %61 = arith.addf %55, %60 : vector<24x32xf32>
    %62 = vector.extract_strided_slice %18 {offsets = [0, 7], sizes = [24, 1], strides = [1, 1]} : vector<24x32xf32> to vector<24x1xf32>
    %c7 = arith.constant 7 : index
    %c0_31 = arith.constant 0 : index
    %c0_32 = arith.constant 0 : index
    %63 = vector.load %arg4[%c7, %c0_31, %c0_32] : memref<32x24x32xf32, #tpu.memory_space<vmem>>, vector<1x24x32xf32>
    %64 = vector.shape_cast %63 : vector<1x24x32xf32> to vector<24x32xf32>
    %65 = vector.broadcast %62 : vector<24x1xf32> to vector<24x32xf32>
    %66 = arith.mulf %65, %64 : vector<24x32xf32>
    %67 = arith.addf %61, %66 : vector<24x32xf32>
    %68 = vector.extract_strided_slice %18 {offsets = [0, 8], sizes = [24, 1], strides = [1, 1]} : vector<24x32xf32> to vector<24x1xf32>
    %c8 = arith.constant 8 : index
    %c0_33 = arith.constant 0 : index
    %c0_34 = arith.constant 0 : index
    %69 = vector.load %arg4[%c8, %c0_33, %c0_34] : memref<32x24x32xf32, #tpu.memory_space<vmem>>, vector<1x24x32xf32>
    %70 = vector.shape_cast %69 : vector<1x24x32xf32> to vector<24x32xf32>
    %71 = vector.broadcast %68 : vector<24x1xf32> to vector<24x32xf32>
    %72 = arith.mulf %71, %70 : vector<24x32xf32>
    %73 = arith.addf %67, %72 : vector<24x32xf32>
    %74 = vector.extract_strided_slice %18 {offsets = [0, 9], sizes = [24, 1], strides = [1, 1]} : vector<24x32xf32> to vector<24x1xf32>
    %c9 = arith.constant 9 : index
    %c0_35 = arith.constant 0 : index
    %c0_36 = arith.constant 0 : index
    %75 = vector.load %arg4[%c9, %c0_35, %c0_36] : memref<32x24x32xf32, #tpu.memory_space<vmem>>, vector<1x24x32xf32>
    %76 = vector.shape_cast %75 : vector<1x24x32xf32> to vector<24x32xf32>
    %77 = vector.broadcast %74 : vector<24x1xf32> to vector<24x32xf32>
    %78 = arith.mulf %77, %76 : vector<24x32xf32>
    %79 = arith.addf %73, %78 : vector<24x32xf32>
    %80 = vector.extract_strided_slice %18 {offsets = [0, 10], sizes = [24, 1], strides = [1, 1]} : vector<24x32xf32> to vector<24x1xf32>
    %c10 = arith.constant 10 : index
    %c0_37 = arith.constant 0 : index
    %c0_38 = arith.constant 0 : index
    %81 = vector.load %arg4[%c10, %c0_37, %c0_38] : memref<32x24x32xf32, #tpu.memory_space<vmem>>, vector<1x24x32xf32>
    %82 = vector.shape_cast %81 : vector<1x24x32xf32> to vector<24x32xf32>
    %83 = vector.broadcast %80 : vector<24x1xf32> to vector<24x32xf32>
    %84 = arith.mulf %83, %82 : vector<24x32xf32>
    %85 = arith.addf %79, %84 : vector<24x32xf32>
    %86 = vector.extract_strided_slice %18 {offsets = [0, 11], sizes = [24, 1], strides = [1, 1]} : vector<24x32xf32> to vector<24x1xf32>
    %c11 = arith.constant 11 : index
    %c0_39 = arith.constant 0 : index
    %c0_40 = arith.constant 0 : index
    %87 = vector.load %arg4[%c11, %c0_39, %c0_40] : memref<32x24x32xf32, #tpu.memory_space<vmem>>, vector<1x24x32xf32>
    %88 = vector.shape_cast %87 : vector<1x24x32xf32> to vector<24x32xf32>
    %89 = vector.broadcast %86 : vector<24x1xf32> to vector<24x32xf32>
    %90 = arith.mulf %89, %88 : vector<24x32xf32>
    %91 = arith.addf %85, %90 : vector<24x32xf32>
    %92 = vector.extract_strided_slice %18 {offsets = [0, 12], sizes = [24, 1], strides = [1, 1]} : vector<24x32xf32> to vector<24x1xf32>
    %c12 = arith.constant 12 : index
    %c0_41 = arith.constant 0 : index
    %c0_42 = arith.constant 0 : index
    %93 = vector.load %arg4[%c12, %c0_41, %c0_42] : memref<32x24x32xf32, #tpu.memory_space<vmem>>, vector<1x24x32xf32>
    %94 = vector.shape_cast %93 : vector<1x24x32xf32> to vector<24x32xf32>
    %95 = vector.broadcast %92 : vector<24x1xf32> to vector<24x32xf32>
    %96 = arith.mulf %95, %94 : vector<24x32xf32>
    %97 = arith.addf %91, %96 : vector<24x32xf32>
    %98 = vector.extract_strided_slice %18 {offsets = [0, 13], sizes = [24, 1], strides = [1, 1]} : vector<24x32xf32> to vector<24x1xf32>
    %c13 = arith.constant 13 : index
    %c0_43 = arith.constant 0 : index
    %c0_44 = arith.constant 0 : index
    %99 = vector.load %arg4[%c13, %c0_43, %c0_44] : memref<32x24x32xf32, #tpu.memory_space<vmem>>, vector<1x24x32xf32>
    %100 = vector.shape_cast %99 : vector<1x24x32xf32> to vector<24x32xf32>
    %101 = vector.broadcast %98 : vector<24x1xf32> to vector<24x32xf32>
    %102 = arith.mulf %101, %100 : vector<24x32xf32>
    %103 = arith.addf %97, %102 : vector<24x32xf32>
    %104 = vector.extract_strided_slice %18 {offsets = [0, 14], sizes = [24, 1], strides = [1, 1]} : vector<24x32xf32> to vector<24x1xf32>
    %c14 = arith.constant 14 : index
    %c0_45 = arith.constant 0 : index
    %c0_46 = arith.constant 0 : index
    %105 = vector.load %arg4[%c14, %c0_45, %c0_46] : memref<32x24x32xf32, #tpu.memory_space<vmem>>, vector<1x24x32xf32>
    %106 = vector.shape_cast %105 : vector<1x24x32xf32> to vector<24x32xf32>
    %107 = vector.broadcast %104 : vector<24x1xf32> to vector<24x32xf32>
    %108 = arith.mulf %107, %106 : vector<24x32xf32>
    %109 = arith.addf %103, %108 : vector<24x32xf32>
    %110 = vector.extract_strided_slice %18 {offsets = [0, 15], sizes = [24, 1], strides = [1, 1]} : vector<24x32xf32> to vector<24x1xf32>
    %c15 = arith.constant 15 : index
    %c0_47 = arith.constant 0 : index
    %c0_48 = arith.constant 0 : index
    %111 = vector.load %arg4[%c15, %c0_47, %c0_48] : memref<32x24x32xf32, #tpu.memory_space<vmem>>, vector<1x24x32xf32>
    %112 = vector.shape_cast %111 : vector<1x24x32xf32> to vector<24x32xf32>
    %113 = vector.broadcast %110 : vector<24x1xf32> to vector<24x32xf32>
    %114 = arith.mulf %113, %112 : vector<24x32xf32>
    %115 = arith.addf %109, %114 : vector<24x32xf32>
    %116 = vector.extract_strided_slice %18 {offsets = [0, 16], sizes = [24, 1], strides = [1, 1]} : vector<24x32xf32> to vector<24x1xf32>
    %c16 = arith.constant 16 : index
    %c0_49 = arith.constant 0 : index
    %c0_50 = arith.constant 0 : index
    %117 = vector.load %arg4[%c16, %c0_49, %c0_50] : memref<32x24x32xf32, #tpu.memory_space<vmem>>, vector<1x24x32xf32>
    %118 = vector.shape_cast %117 : vector<1x24x32xf32> to vector<24x32xf32>
    %119 = vector.broadcast %116 : vector<24x1xf32> to vector<24x32xf32>
    %120 = arith.mulf %119, %118 : vector<24x32xf32>
    %121 = arith.addf %115, %120 : vector<24x32xf32>
    %122 = vector.extract_strided_slice %18 {offsets = [0, 17], sizes = [24, 1], strides = [1, 1]} : vector<24x32xf32> to vector<24x1xf32>
    %c17 = arith.constant 17 : index
    %c0_51 = arith.constant 0 : index
    %c0_52 = arith.constant 0 : index
    %123 = vector.load %arg4[%c17, %c0_51, %c0_52] : memref<32x24x32xf32, #tpu.memory_space<vmem>>, vector<1x24x32xf32>
    %124 = vector.shape_cast %123 : vector<1x24x32xf32> to vector<24x32xf32>
    %125 = vector.broadcast %122 : vector<24x1xf32> to vector<24x32xf32>
    %126 = arith.mulf %125, %124 : vector<24x32xf32>
    %127 = arith.addf %121, %126 : vector<24x32xf32>
    %128 = vector.extract_strided_slice %18 {offsets = [0, 18], sizes = [24, 1], strides = [1, 1]} : vector<24x32xf32> to vector<24x1xf32>
    %c18 = arith.constant 18 : index
    %c0_53 = arith.constant 0 : index
    %c0_54 = arith.constant 0 : index
    %129 = vector.load %arg4[%c18, %c0_53, %c0_54] : memref<32x24x32xf32, #tpu.memory_space<vmem>>, vector<1x24x32xf32>
    %130 = vector.shape_cast %129 : vector<1x24x32xf32> to vector<24x32xf32>
    %131 = vector.broadcast %128 : vector<24x1xf32> to vector<24x32xf32>
    %132 = arith.mulf %131, %130 : vector<24x32xf32>
    %133 = arith.addf %127, %132 : vector<24x32xf32>
    %134 = vector.extract_strided_slice %18 {offsets = [0, 19], sizes = [24, 1], strides = [1, 1]} : vector<24x32xf32> to vector<24x1xf32>
    %c19 = arith.constant 19 : index
    %c0_55 = arith.constant 0 : index
    %c0_56 = arith.constant 0 : index
    %135 = vector.load %arg4[%c19, %c0_55, %c0_56] : memref<32x24x32xf32, #tpu.memory_space<vmem>>, vector<1x24x32xf32>
    %136 = vector.shape_cast %135 : vector<1x24x32xf32> to vector<24x32xf32>
    %137 = vector.broadcast %134 : vector<24x1xf32> to vector<24x32xf32>
    %138 = arith.mulf %137, %136 : vector<24x32xf32>
    %139 = arith.addf %133, %138 : vector<24x32xf32>
    %140 = vector.extract_strided_slice %18 {offsets = [0, 20], sizes = [24, 1], strides = [1, 1]} : vector<24x32xf32> to vector<24x1xf32>
    %c20 = arith.constant 20 : index
    %c0_57 = arith.constant 0 : index
    %c0_58 = arith.constant 0 : index
    %141 = vector.load %arg4[%c20, %c0_57, %c0_58] : memref<32x24x32xf32, #tpu.memory_space<vmem>>, vector<1x24x32xf32>
    %142 = vector.shape_cast %141 : vector<1x24x32xf32> to vector<24x32xf32>
    %143 = vector.broadcast %140 : vector<24x1xf32> to vector<24x32xf32>
    %144 = arith.mulf %143, %142 : vector<24x32xf32>
    %145 = arith.addf %139, %144 : vector<24x32xf32>
    %146 = vector.extract_strided_slice %18 {offsets = [0, 21], sizes = [24, 1], strides = [1, 1]} : vector<24x32xf32> to vector<24x1xf32>
    %c21 = arith.constant 21 : index
    %c0_59 = arith.constant 0 : index
    %c0_60 = arith.constant 0 : index
    %147 = vector.load %arg4[%c21, %c0_59, %c0_60] : memref<32x24x32xf32, #tpu.memory_space<vmem>>, vector<1x24x32xf32>
    %148 = vector.shape_cast %147 : vector<1x24x32xf32> to vector<24x32xf32>
    %149 = vector.broadcast %146 : vector<24x1xf32> to vector<24x32xf32>
    %150 = arith.mulf %149, %148 : vector<24x32xf32>
    %151 = arith.addf %145, %150 : vector<24x32xf32>
    %152 = vector.extract_strided_slice %18 {offsets = [0, 22], sizes = [24, 1], strides = [1, 1]} : vector<24x32xf32> to vector<24x1xf32>
    %c22 = arith.constant 22 : index
    %c0_61 = arith.constant 0 : index
    %c0_62 = arith.constant 0 : index
    %153 = vector.load %arg4[%c22, %c0_61, %c0_62] : memref<32x24x32xf32, #tpu.memory_space<vmem>>, vector<1x24x32xf32>
    %154 = vector.shape_cast %153 : vector<1x24x32xf32> to vector<24x32xf32>
    %155 = vector.broadcast %152 : vector<24x1xf32> to vector<24x32xf32>
    %156 = arith.mulf %155, %154 : vector<24x32xf32>
    %157 = arith.addf %151, %156 : vector<24x32xf32>
    %158 = vector.extract_strided_slice %18 {offsets = [0, 23], sizes = [24, 1], strides = [1, 1]} : vector<24x32xf32> to vector<24x1xf32>
    %c23 = arith.constant 23 : index
    %c0_63 = arith.constant 0 : index
    %c0_64 = arith.constant 0 : index
    %159 = vector.load %arg4[%c23, %c0_63, %c0_64] : memref<32x24x32xf32, #tpu.memory_space<vmem>>, vector<1x24x32xf32>
    %160 = vector.shape_cast %159 : vector<1x24x32xf32> to vector<24x32xf32>
    %161 = vector.broadcast %158 : vector<24x1xf32> to vector<24x32xf32>
    %162 = arith.mulf %161, %160 : vector<24x32xf32>
    %163 = arith.addf %157, %162 : vector<24x32xf32>
    %164 = vector.extract_strided_slice %18 {offsets = [0, 24], sizes = [24, 1], strides = [1, 1]} : vector<24x32xf32> to vector<24x1xf32>
    %c24 = arith.constant 24 : index
    %c0_65 = arith.constant 0 : index
    %c0_66 = arith.constant 0 : index
    %165 = vector.load %arg4[%c24, %c0_65, %c0_66] : memref<32x24x32xf32, #tpu.memory_space<vmem>>, vector<1x24x32xf32>
    %166 = vector.shape_cast %165 : vector<1x24x32xf32> to vector<24x32xf32>
    %167 = vector.broadcast %164 : vector<24x1xf32> to vector<24x32xf32>
    %168 = arith.mulf %167, %166 : vector<24x32xf32>
    %169 = arith.addf %163, %168 : vector<24x32xf32>
    %170 = vector.extract_strided_slice %18 {offsets = [0, 25], sizes = [24, 1], strides = [1, 1]} : vector<24x32xf32> to vector<24x1xf32>
    %c25 = arith.constant 25 : index
    %c0_67 = arith.constant 0 : index
    %c0_68 = arith.constant 0 : index
    %171 = vector.load %arg4[%c25, %c0_67, %c0_68] : memref<32x24x32xf32, #tpu.memory_space<vmem>>, vector<1x24x32xf32>
    %172 = vector.shape_cast %171 : vector<1x24x32xf32> to vector<24x32xf32>
    %173 = vector.broadcast %170 : vector<24x1xf32> to vector<24x32xf32>
    %174 = arith.mulf %173, %172 : vector<24x32xf32>
    %175 = arith.addf %169, %174 : vector<24x32xf32>
    %176 = vector.extract_strided_slice %18 {offsets = [0, 26], sizes = [24, 1], strides = [1, 1]} : vector<24x32xf32> to vector<24x1xf32>
    %c26 = arith.constant 26 : index
    %c0_69 = arith.constant 0 : index
    %c0_70 = arith.constant 0 : index
    %177 = vector.load %arg4[%c26, %c0_69, %c0_70] : memref<32x24x32xf32, #tpu.memory_space<vmem>>, vector<1x24x32xf32>
    %178 = vector.shape_cast %177 : vector<1x24x32xf32> to vector<24x32xf32>
    %179 = vector.broadcast %176 : vector<24x1xf32> to vector<24x32xf32>
    %180 = arith.mulf %179, %178 : vector<24x32xf32>
    %181 = arith.addf %175, %180 : vector<24x32xf32>
    %182 = vector.extract_strided_slice %18 {offsets = [0, 27], sizes = [24, 1], strides = [1, 1]} : vector<24x32xf32> to vector<24x1xf32>
    %c27 = arith.constant 27 : index
    %c0_71 = arith.constant 0 : index
    %c0_72 = arith.constant 0 : index
    %183 = vector.load %arg4[%c27, %c0_71, %c0_72] : memref<32x24x32xf32, #tpu.memory_space<vmem>>, vector<1x24x32xf32>
    %184 = vector.shape_cast %183 : vector<1x24x32xf32> to vector<24x32xf32>
    %185 = vector.broadcast %182 : vector<24x1xf32> to vector<24x32xf32>
    %186 = arith.mulf %185, %184 : vector<24x32xf32>
    %187 = arith.addf %181, %186 : vector<24x32xf32>
    %188 = vector.extract_strided_slice %18 {offsets = [0, 28], sizes = [24, 1], strides = [1, 1]} : vector<24x32xf32> to vector<24x1xf32>
    %c28 = arith.constant 28 : index
    %c0_73 = arith.constant 0 : index
    %c0_74 = arith.constant 0 : index
    %189 = vector.load %arg4[%c28, %c0_73, %c0_74] : memref<32x24x32xf32, #tpu.memory_space<vmem>>, vector<1x24x32xf32>
    %190 = vector.shape_cast %189 : vector<1x24x32xf32> to vector<24x32xf32>
    %191 = vector.broadcast %188 : vector<24x1xf32> to vector<24x32xf32>
    %192 = arith.mulf %191, %190 : vector<24x32xf32>
    %193 = arith.addf %187, %192 : vector<24x32xf32>
    %194 = vector.extract_strided_slice %18 {offsets = [0, 29], sizes = [24, 1], strides = [1, 1]} : vector<24x32xf32> to vector<24x1xf32>
    %c29 = arith.constant 29 : index
    %c0_75 = arith.constant 0 : index
    %c0_76 = arith.constant 0 : index
    %195 = vector.load %arg4[%c29, %c0_75, %c0_76] : memref<32x24x32xf32, #tpu.memory_space<vmem>>, vector<1x24x32xf32>
    %196 = vector.shape_cast %195 : vector<1x24x32xf32> to vector<24x32xf32>
    %197 = vector.broadcast %194 : vector<24x1xf32> to vector<24x32xf32>
    %198 = arith.mulf %197, %196 : vector<24x32xf32>
    %199 = arith.addf %193, %198 : vector<24x32xf32>
    %200 = vector.extract_strided_slice %18 {offsets = [0, 30], sizes = [24, 1], strides = [1, 1]} : vector<24x32xf32> to vector<24x1xf32>
    %c30 = arith.constant 30 : index
    %c0_77 = arith.constant 0 : index
    %c0_78 = arith.constant 0 : index
    %201 = vector.load %arg4[%c30, %c0_77, %c0_78] : memref<32x24x32xf32, #tpu.memory_space<vmem>>, vector<1x24x32xf32>
    %202 = vector.shape_cast %201 : vector<1x24x32xf32> to vector<24x32xf32>
    %203 = vector.broadcast %200 : vector<24x1xf32> to vector<24x32xf32>
    %204 = arith.mulf %203, %202 : vector<24x32xf32>
    %205 = arith.addf %199, %204 : vector<24x32xf32>
    %206 = vector.extract_strided_slice %18 {offsets = [0, 31], sizes = [24, 1], strides = [1, 1]} : vector<24x32xf32> to vector<24x1xf32>
    %c31 = arith.constant 31 : index
    %c0_79 = arith.constant 0 : index
    %c0_80 = arith.constant 0 : index
    %207 = vector.load %arg4[%c31, %c0_79, %c0_80] : memref<32x24x32xf32, #tpu.memory_space<vmem>>, vector<1x24x32xf32>
    %208 = vector.shape_cast %207 : vector<1x24x32xf32> to vector<24x32xf32>
    %209 = vector.broadcast %206 : vector<24x1xf32> to vector<24x32xf32>
    %210 = arith.mulf %209, %208 : vector<24x32xf32>
    %211 = arith.addf %205, %210 : vector<24x32xf32>
    %cst_81 = arith.constant dense<0.000000e+00> : vector<12x32xf32>
    %212 = tpu.matmul %13, %211, %cst_81 {dimension_numbers = #tpu.dot_dimension_numbers<[1], [0], [0], [1], [0, 0, 1, 1], [], []>} : vector<12x24xf32>, vector<24x32xf32>, vector<12x32xf32> -> vector<12x32xf32>
    %cst_82 = arith.constant dense<0.000000e+00> : vector<12x96xf32>
    %213 = tpu.matmul %212, %14, %cst_82 {dimension_numbers = #tpu.dot_dimension_numbers<[1], [0], [0], [1], [0, 0, 1, 1], [], []>} : vector<12x32xf32>, vector<32x96xf32>, vector<12x96xf32> -> vector<12x96xf32>
    %214 = vector.broadcast %16 : vector<1x96xf32> to vector<12x96xf32>
    %215 = arith.addf %213, %214 : vector<12x96xf32>
    %cst_83 = arith.constant dense<0.000000e+00> : vector<12x96xf32>
    %216 = tpu.matmul %0, %15, %cst_83 {dimension_numbers = #tpu.dot_dimension_numbers<[1], [0], [0], [1], [0, 0, 1, 1], [], []>} : vector<12x32xf32>, vector<32x96xf32>, vector<12x96xf32> -> vector<12x96xf32>
    %217 = vector.broadcast %17 : vector<1x96xf32> to vector<12x96xf32>
    %218 = arith.addf %216, %217 : vector<12x96xf32>
    %219 = vector.extract_strided_slice %215 {offsets = [0, 0], sizes = [12, 32], strides = [1, 1]} : vector<12x96xf32> to vector<12x32xf32>
    %220 = vector.extract_strided_slice %218 {offsets = [0, 0], sizes = [12, 32], strides = [1, 1]} : vector<12x96xf32> to vector<12x32xf32>
    %221 = arith.addf %219, %220 : vector<12x32xf32>
    %222 = arith.negf %221 : vector<12x32xf32>
    %223 = math.exp %222 : vector<12x32xf32>
    %cst_84 = arith.constant 1.000000e+00 : f32
    %224 = vector.broadcast %cst_84 : f32 to vector<12x32xf32>
    %225 = arith.addf %224, %223 : vector<12x32xf32>
    %226 = arith.divf %224, %225 : vector<12x32xf32>
    %227 = vector.extract_strided_slice %215 {offsets = [0, 32], sizes = [12, 32], strides = [1, 1]} : vector<12x96xf32> to vector<12x32xf32>
    %228 = vector.extract_strided_slice %218 {offsets = [0, 32], sizes = [12, 32], strides = [1, 1]} : vector<12x96xf32> to vector<12x32xf32>
    %229 = arith.addf %227, %228 : vector<12x32xf32>
    %230 = arith.negf %229 : vector<12x32xf32>
    %231 = math.exp %230 : vector<12x32xf32>
    %cst_85 = arith.constant 1.000000e+00 : f32
    %232 = vector.broadcast %cst_85 : f32 to vector<12x32xf32>
    %233 = arith.addf %232, %231 : vector<12x32xf32>
    %234 = arith.divf %232, %233 : vector<12x32xf32>
    %235 = vector.extract_strided_slice %215 {offsets = [0, 64], sizes = [12, 32], strides = [1, 1]} : vector<12x96xf32> to vector<12x32xf32>
    %236 = vector.extract_strided_slice %218 {offsets = [0, 64], sizes = [12, 32], strides = [1, 1]} : vector<12x96xf32> to vector<12x32xf32>
    %237 = arith.mulf %226, %236 : vector<12x32xf32>
    %238 = arith.addf %235, %237 : vector<12x32xf32>
    %239 = math.tanh %238 : vector<12x32xf32>
    %cst_86 = arith.constant 1.000000e+00 : f32
    %240 = vector.broadcast %cst_86 : f32 to vector<12x32xf32>
    %241 = arith.subf %240, %234 : vector<12x32xf32>
    %242 = arith.mulf %241, %239 : vector<12x32xf32>
    %243 = arith.mulf %234, %0 : vector<12x32xf32>
    %244 = arith.addf %242, %243 : vector<12x32xf32>
    %cst_87 = arith.constant dense<0.000000e+00> : vector<24x32xf32>
    %245 = tpu.matmul %7, %244, %cst_87 {dimension_numbers = #tpu.dot_dimension_numbers<[1], [0], [0], [1], [0, 0, 1, 1], [], []>} : vector<24x12xf32>, vector<12x32xf32>, vector<24x32xf32> -> vector<24x32xf32>
    %cst_88 = arith.constant 0.000000e+00 : f32
    %246 = vector.broadcast %cst_88 : f32 to vector<24x32xf32>
    %247 = vector.extract_strided_slice %245 {offsets = [0, 0], sizes = [24, 1], strides = [1, 1]} : vector<24x32xf32> to vector<24x1xf32>
    %c0_89 = arith.constant 0 : index
    %c0_90 = arith.constant 0 : index
    %c0_91 = arith.constant 0 : index
    %248 = vector.load %arg4[%c0_89, %c0_90, %c0_91] : memref<32x24x32xf32, #tpu.memory_space<vmem>>, vector<1x24x32xf32>
    %249 = vector.shape_cast %248 : vector<1x24x32xf32> to vector<24x32xf32>
    %250 = vector.broadcast %247 : vector<24x1xf32> to vector<24x32xf32>
    %251 = arith.mulf %250, %249 : vector<24x32xf32>
    %252 = arith.addf %246, %251 : vector<24x32xf32>
    %253 = vector.extract_strided_slice %245 {offsets = [0, 1], sizes = [24, 1], strides = [1, 1]} : vector<24x32xf32> to vector<24x1xf32>
    %c1_92 = arith.constant 1 : index
    %c0_93 = arith.constant 0 : index
    %c0_94 = arith.constant 0 : index
    %254 = vector.load %arg4[%c1_92, %c0_93, %c0_94] : memref<32x24x32xf32, #tpu.memory_space<vmem>>, vector<1x24x32xf32>
    %255 = vector.shape_cast %254 : vector<1x24x32xf32> to vector<24x32xf32>
    %256 = vector.broadcast %253 : vector<24x1xf32> to vector<24x32xf32>
    %257 = arith.mulf %256, %255 : vector<24x32xf32>
    %258 = arith.addf %252, %257 : vector<24x32xf32>
    %259 = vector.extract_strided_slice %245 {offsets = [0, 2], sizes = [24, 1], strides = [1, 1]} : vector<24x32xf32> to vector<24x1xf32>
    %c2_95 = arith.constant 2 : index
    %c0_96 = arith.constant 0 : index
    %c0_97 = arith.constant 0 : index
    %260 = vector.load %arg4[%c2_95, %c0_96, %c0_97] : memref<32x24x32xf32, #tpu.memory_space<vmem>>, vector<1x24x32xf32>
    %261 = vector.shape_cast %260 : vector<1x24x32xf32> to vector<24x32xf32>
    %262 = vector.broadcast %259 : vector<24x1xf32> to vector<24x32xf32>
    %263 = arith.mulf %262, %261 : vector<24x32xf32>
    %264 = arith.addf %258, %263 : vector<24x32xf32>
    %265 = vector.extract_strided_slice %245 {offsets = [0, 3], sizes = [24, 1], strides = [1, 1]} : vector<24x32xf32> to vector<24x1xf32>
    %c3_98 = arith.constant 3 : index
    %c0_99 = arith.constant 0 : index
    %c0_100 = arith.constant 0 : index
    %266 = vector.load %arg4[%c3_98, %c0_99, %c0_100] : memref<32x24x32xf32, #tpu.memory_space<vmem>>, vector<1x24x32xf32>
    %267 = vector.shape_cast %266 : vector<1x24x32xf32> to vector<24x32xf32>
    %268 = vector.broadcast %265 : vector<24x1xf32> to vector<24x32xf32>
    %269 = arith.mulf %268, %267 : vector<24x32xf32>
    %270 = arith.addf %264, %269 : vector<24x32xf32>
    %271 = vector.extract_strided_slice %245 {offsets = [0, 4], sizes = [24, 1], strides = [1, 1]} : vector<24x32xf32> to vector<24x1xf32>
    %c4_101 = arith.constant 4 : index
    %c0_102 = arith.constant 0 : index
    %c0_103 = arith.constant 0 : index
    %272 = vector.load %arg4[%c4_101, %c0_102, %c0_103] : memref<32x24x32xf32, #tpu.memory_space<vmem>>, vector<1x24x32xf32>
    %273 = vector.shape_cast %272 : vector<1x24x32xf32> to vector<24x32xf32>
    %274 = vector.broadcast %271 : vector<24x1xf32> to vector<24x32xf32>
    %275 = arith.mulf %274, %273 : vector<24x32xf32>
    %276 = arith.addf %270, %275 : vector<24x32xf32>
    %277 = vector.extract_strided_slice %245 {offsets = [0, 5], sizes = [24, 1], strides = [1, 1]} : vector<24x32xf32> to vector<24x1xf32>
    %c5_104 = arith.constant 5 : index
    %c0_105 = arith.constant 0 : index
    %c0_106 = arith.constant 0 : index
    %278 = vector.load %arg4[%c5_104, %c0_105, %c0_106] : memref<32x24x32xf32, #tpu.memory_space<vmem>>, vector<1x24x32xf32>
    %279 = vector.shape_cast %278 : vector<1x24x32xf32> to vector<24x32xf32>
    %280 = vector.broadcast %277 : vector<24x1xf32> to vector<24x32xf32>
    %281 = arith.mulf %280, %279 : vector<24x32xf32>
    %282 = arith.addf %276, %281 : vector<24x32xf32>
    %283 = vector.extract_strided_slice %245 {offsets = [0, 6], sizes = [24, 1], strides = [1, 1]} : vector<24x32xf32> to vector<24x1xf32>
    %c6_107 = arith.constant 6 : index
    %c0_108 = arith.constant 0 : index
    %c0_109 = arith.constant 0 : index
    %284 = vector.load %arg4[%c6_107, %c0_108, %c0_109] : memref<32x24x32xf32, #tpu.memory_space<vmem>>, vector<1x24x32xf32>
    %285 = vector.shape_cast %284 : vector<1x24x32xf32> to vector<24x32xf32>
    %286 = vector.broadcast %283 : vector<24x1xf32> to vector<24x32xf32>
    %287 = arith.mulf %286, %285 : vector<24x32xf32>
    %288 = arith.addf %282, %287 : vector<24x32xf32>
    %289 = vector.extract_strided_slice %245 {offsets = [0, 7], sizes = [24, 1], strides = [1, 1]} : vector<24x32xf32> to vector<24x1xf32>
    %c7_110 = arith.constant 7 : index
    %c0_111 = arith.constant 0 : index
    %c0_112 = arith.constant 0 : index
    %290 = vector.load %arg4[%c7_110, %c0_111, %c0_112] : memref<32x24x32xf32, #tpu.memory_space<vmem>>, vector<1x24x32xf32>
    %291 = vector.shape_cast %290 : vector<1x24x32xf32> to vector<24x32xf32>
    %292 = vector.broadcast %289 : vector<24x1xf32> to vector<24x32xf32>
    %293 = arith.mulf %292, %291 : vector<24x32xf32>
    %294 = arith.addf %288, %293 : vector<24x32xf32>
    %295 = vector.extract_strided_slice %245 {offsets = [0, 8], sizes = [24, 1], strides = [1, 1]} : vector<24x32xf32> to vector<24x1xf32>
    %c8_113 = arith.constant 8 : index
    %c0_114 = arith.constant 0 : index
    %c0_115 = arith.constant 0 : index
    %296 = vector.load %arg4[%c8_113, %c0_114, %c0_115] : memref<32x24x32xf32, #tpu.memory_space<vmem>>, vector<1x24x32xf32>
    %297 = vector.shape_cast %296 : vector<1x24x32xf32> to vector<24x32xf32>
    %298 = vector.broadcast %295 : vector<24x1xf32> to vector<24x32xf32>
    %299 = arith.mulf %298, %297 : vector<24x32xf32>
    %300 = arith.addf %294, %299 : vector<24x32xf32>
    %301 = vector.extract_strided_slice %245 {offsets = [0, 9], sizes = [24, 1], strides = [1, 1]} : vector<24x32xf32> to vector<24x1xf32>
    %c9_116 = arith.constant 9 : index
    %c0_117 = arith.constant 0 : index
    %c0_118 = arith.constant 0 : index
    %302 = vector.load %arg4[%c9_116, %c0_117, %c0_118] : memref<32x24x32xf32, #tpu.memory_space<vmem>>, vector<1x24x32xf32>
    %303 = vector.shape_cast %302 : vector<1x24x32xf32> to vector<24x32xf32>
    %304 = vector.broadcast %301 : vector<24x1xf32> to vector<24x32xf32>
    %305 = arith.mulf %304, %303 : vector<24x32xf32>
    %306 = arith.addf %300, %305 : vector<24x32xf32>
    %307 = vector.extract_strided_slice %245 {offsets = [0, 10], sizes = [24, 1], strides = [1, 1]} : vector<24x32xf32> to vector<24x1xf32>
    %c10_119 = arith.constant 10 : index
    %c0_120 = arith.constant 0 : index
    %c0_121 = arith.constant 0 : index
    %308 = vector.load %arg4[%c10_119, %c0_120, %c0_121] : memref<32x24x32xf32, #tpu.memory_space<vmem>>, vector<1x24x32xf32>
    %309 = vector.shape_cast %308 : vector<1x24x32xf32> to vector<24x32xf32>
    %310 = vector.broadcast %307 : vector<24x1xf32> to vector<24x32xf32>
    %311 = arith.mulf %310, %309 : vector<24x32xf32>
    %312 = arith.addf %306, %311 : vector<24x32xf32>
    %313 = vector.extract_strided_slice %245 {offsets = [0, 11], sizes = [24, 1], strides = [1, 1]} : vector<24x32xf32> to vector<24x1xf32>
    %c11_122 = arith.constant 11 : index
    %c0_123 = arith.constant 0 : index
    %c0_124 = arith.constant 0 : index
    %314 = vector.load %arg4[%c11_122, %c0_123, %c0_124] : memref<32x24x32xf32, #tpu.memory_space<vmem>>, vector<1x24x32xf32>
    %315 = vector.shape_cast %314 : vector<1x24x32xf32> to vector<24x32xf32>
    %316 = vector.broadcast %313 : vector<24x1xf32> to vector<24x32xf32>
    %317 = arith.mulf %316, %315 : vector<24x32xf32>
    %318 = arith.addf %312, %317 : vector<24x32xf32>
    %319 = vector.extract_strided_slice %245 {offsets = [0, 12], sizes = [24, 1], strides = [1, 1]} : vector<24x32xf32> to vector<24x1xf32>
    %c12_125 = arith.constant 12 : index
    %c0_126 = arith.constant 0 : index
    %c0_127 = arith.constant 0 : index
    %320 = vector.load %arg4[%c12_125, %c0_126, %c0_127] : memref<32x24x32xf32, #tpu.memory_space<vmem>>, vector<1x24x32xf32>
    %321 = vector.shape_cast %320 : vector<1x24x32xf32> to vector<24x32xf32>
    %322 = vector.broadcast %319 : vector<24x1xf32> to vector<24x32xf32>
    %323 = arith.mulf %322, %321 : vector<24x32xf32>
    %324 = arith.addf %318, %323 : vector<24x32xf32>
    %325 = vector.extract_strided_slice %245 {offsets = [0, 13], sizes = [24, 1], strides = [1, 1]} : vector<24x32xf32> to vector<24x1xf32>
    %c13_128 = arith.constant 13 : index
    %c0_129 = arith.constant 0 : index
    %c0_130 = arith.constant 0 : index
    %326 = vector.load %arg4[%c13_128, %c0_129, %c0_130] : memref<32x24x32xf32, #tpu.memory_space<vmem>>, vector<1x24x32xf32>
    %327 = vector.shape_cast %326 : vector<1x24x32xf32> to vector<24x32xf32>
    %328 = vector.broadcast %325 : vector<24x1xf32> to vector<24x32xf32>
    %329 = arith.mulf %328, %327 : vector<24x32xf32>
    %330 = arith.addf %324, %329 : vector<24x32xf32>
    %331 = vector.extract_strided_slice %245 {offsets = [0, 14], sizes = [24, 1], strides = [1, 1]} : vector<24x32xf32> to vector<24x1xf32>
    %c14_131 = arith.constant 14 : index
    %c0_132 = arith.constant 0 : index
    %c0_133 = arith.constant 0 : index
    %332 = vector.load %arg4[%c14_131, %c0_132, %c0_133] : memref<32x24x32xf32, #tpu.memory_space<vmem>>, vector<1x24x32xf32>
    %333 = vector.shape_cast %332 : vector<1x24x32xf32> to vector<24x32xf32>
    %334 = vector.broadcast %331 : vector<24x1xf32> to vector<24x32xf32>
    %335 = arith.mulf %334, %333 : vector<24x32xf32>
    %336 = arith.addf %330, %335 : vector<24x32xf32>
    %337 = vector.extract_strided_slice %245 {offsets = [0, 15], sizes = [24, 1], strides = [1, 1]} : vector<24x32xf32> to vector<24x1xf32>
    %c15_134 = arith.constant 15 : index
    %c0_135 = arith.constant 0 : index
    %c0_136 = arith.constant 0 : index
    %338 = vector.load %arg4[%c15_134, %c0_135, %c0_136] : memref<32x24x32xf32, #tpu.memory_space<vmem>>, vector<1x24x32xf32>
    %339 = vector.shape_cast %338 : vector<1x24x32xf32> to vector<24x32xf32>
    %340 = vector.broadcast %337 : vector<24x1xf32> to vector<24x32xf32>
    %341 = arith.mulf %340, %339 : vector<24x32xf32>
    %342 = arith.addf %336, %341 : vector<24x32xf32>
    %343 = vector.extract_strided_slice %245 {offsets = [0, 16], sizes = [24, 1], strides = [1, 1]} : vector<24x32xf32> to vector<24x1xf32>
    %c16_137 = arith.constant 16 : index
    %c0_138 = arith.constant 0 : index
    %c0_139 = arith.constant 0 : index
    %344 = vector.load %arg4[%c16_137, %c0_138, %c0_139] : memref<32x24x32xf32, #tpu.memory_space<vmem>>, vector<1x24x32xf32>
    %345 = vector.shape_cast %344 : vector<1x24x32xf32> to vector<24x32xf32>
    %346 = vector.broadcast %343 : vector<24x1xf32> to vector<24x32xf32>
    %347 = arith.mulf %346, %345 : vector<24x32xf32>
    %348 = arith.addf %342, %347 : vector<24x32xf32>
    %349 = vector.extract_strided_slice %245 {offsets = [0, 17], sizes = [24, 1], strides = [1, 1]} : vector<24x32xf32> to vector<24x1xf32>
    %c17_140 = arith.constant 17 : index
    %c0_141 = arith.constant 0 : index
    %c0_142 = arith.constant 0 : index
    %350 = vector.load %arg4[%c17_140, %c0_141, %c0_142] : memref<32x24x32xf32, #tpu.memory_space<vmem>>, vector<1x24x32xf32>
    %351 = vector.shape_cast %350 : vector<1x24x32xf32> to vector<24x32xf32>
    %352 = vector.broadcast %349 : vector<24x1xf32> to vector<24x32xf32>
    %353 = arith.mulf %352, %351 : vector<24x32xf32>
    %354 = arith.addf %348, %353 : vector<24x32xf32>
    %355 = vector.extract_strided_slice %245 {offsets = [0, 18], sizes = [24, 1], strides = [1, 1]} : vector<24x32xf32> to vector<24x1xf32>
    %c18_143 = arith.constant 18 : index
    %c0_144 = arith.constant 0 : index
    %c0_145 = arith.constant 0 : index
    %356 = vector.load %arg4[%c18_143, %c0_144, %c0_145] : memref<32x24x32xf32, #tpu.memory_space<vmem>>, vector<1x24x32xf32>
    %357 = vector.shape_cast %356 : vector<1x24x32xf32> to vector<24x32xf32>
    %358 = vector.broadcast %355 : vector<24x1xf32> to vector<24x32xf32>
    %359 = arith.mulf %358, %357 : vector<24x32xf32>
    %360 = arith.addf %354, %359 : vector<24x32xf32>
    %361 = vector.extract_strided_slice %245 {offsets = [0, 19], sizes = [24, 1], strides = [1, 1]} : vector<24x32xf32> to vector<24x1xf32>
    %c19_146 = arith.constant 19 : index
    %c0_147 = arith.constant 0 : index
    %c0_148 = arith.constant 0 : index
    %362 = vector.load %arg4[%c19_146, %c0_147, %c0_148] : memref<32x24x32xf32, #tpu.memory_space<vmem>>, vector<1x24x32xf32>
    %363 = vector.shape_cast %362 : vector<1x24x32xf32> to vector<24x32xf32>
    %364 = vector.broadcast %361 : vector<24x1xf32> to vector<24x32xf32>
    %365 = arith.mulf %364, %363 : vector<24x32xf32>
    %366 = arith.addf %360, %365 : vector<24x32xf32>
    %367 = vector.extract_strided_slice %245 {offsets = [0, 20], sizes = [24, 1], strides = [1, 1]} : vector<24x32xf32> to vector<24x1xf32>
    %c20_149 = arith.constant 20 : index
    %c0_150 = arith.constant 0 : index
    %c0_151 = arith.constant 0 : index
    %368 = vector.load %arg4[%c20_149, %c0_150, %c0_151] : memref<32x24x32xf32, #tpu.memory_space<vmem>>, vector<1x24x32xf32>
    %369 = vector.shape_cast %368 : vector<1x24x32xf32> to vector<24x32xf32>
    %370 = vector.broadcast %367 : vector<24x1xf32> to vector<24x32xf32>
    %371 = arith.mulf %370, %369 : vector<24x32xf32>
    %372 = arith.addf %366, %371 : vector<24x32xf32>
    %373 = vector.extract_strided_slice %245 {offsets = [0, 21], sizes = [24, 1], strides = [1, 1]} : vector<24x32xf32> to vector<24x1xf32>
    %c21_152 = arith.constant 21 : index
    %c0_153 = arith.constant 0 : index
    %c0_154 = arith.constant 0 : index
    %374 = vector.load %arg4[%c21_152, %c0_153, %c0_154] : memref<32x24x32xf32, #tpu.memory_space<vmem>>, vector<1x24x32xf32>
    %375 = vector.shape_cast %374 : vector<1x24x32xf32> to vector<24x32xf32>
    %376 = vector.broadcast %373 : vector<24x1xf32> to vector<24x32xf32>
    %377 = arith.mulf %376, %375 : vector<24x32xf32>
    %378 = arith.addf %372, %377 : vector<24x32xf32>
    %379 = vector.extract_strided_slice %245 {offsets = [0, 22], sizes = [24, 1], strides = [1, 1]} : vector<24x32xf32> to vector<24x1xf32>
    %c22_155 = arith.constant 22 : index
    %c0_156 = arith.constant 0 : index
    %c0_157 = arith.constant 0 : index
    %380 = vector.load %arg4[%c22_155, %c0_156, %c0_157] : memref<32x24x32xf32, #tpu.memory_space<vmem>>, vector<1x24x32xf32>
    %381 = vector.shape_cast %380 : vector<1x24x32xf32> to vector<24x32xf32>
    %382 = vector.broadcast %379 : vector<24x1xf32> to vector<24x32xf32>
    %383 = arith.mulf %382, %381 : vector<24x32xf32>
    %384 = arith.addf %378, %383 : vector<24x32xf32>
    %385 = vector.extract_strided_slice %245 {offsets = [0, 23], sizes = [24, 1], strides = [1, 1]} : vector<24x32xf32> to vector<24x1xf32>
    %c23_158 = arith.constant 23 : index
    %c0_159 = arith.constant 0 : index
    %c0_160 = arith.constant 0 : index
    %386 = vector.load %arg4[%c23_158, %c0_159, %c0_160] : memref<32x24x32xf32, #tpu.memory_space<vmem>>, vector<1x24x32xf32>
    %387 = vector.shape_cast %386 : vector<1x24x32xf32> to vector<24x32xf32>
    %388 = vector.broadcast %385 : vector<24x1xf32> to vector<24x32xf32>
    %389 = arith.mulf %388, %387 : vector<24x32xf32>
    %390 = arith.addf %384, %389 : vector<24x32xf32>
    %391 = vector.extract_strided_slice %245 {offsets = [0, 24], sizes = [24, 1], strides = [1, 1]} : vector<24x32xf32> to vector<24x1xf32>
    %c24_161 = arith.constant 24 : index
    %c0_162 = arith.constant 0 : index
    %c0_163 = arith.constant 0 : index
    %392 = vector.load %arg4[%c24_161, %c0_162, %c0_163] : memref<32x24x32xf32, #tpu.memory_space<vmem>>, vector<1x24x32xf32>
    %393 = vector.shape_cast %392 : vector<1x24x32xf32> to vector<24x32xf32>
    %394 = vector.broadcast %391 : vector<24x1xf32> to vector<24x32xf32>
    %395 = arith.mulf %394, %393 : vector<24x32xf32>
    %396 = arith.addf %390, %395 : vector<24x32xf32>
    %397 = vector.extract_strided_slice %245 {offsets = [0, 25], sizes = [24, 1], strides = [1, 1]} : vector<24x32xf32> to vector<24x1xf32>
    %c25_164 = arith.constant 25 : index
    %c0_165 = arith.constant 0 : index
    %c0_166 = arith.constant 0 : index
    %398 = vector.load %arg4[%c25_164, %c0_165, %c0_166] : memref<32x24x32xf32, #tpu.memory_space<vmem>>, vector<1x24x32xf32>
    %399 = vector.shape_cast %398 : vector<1x24x32xf32> to vector<24x32xf32>
    %400 = vector.broadcast %397 : vector<24x1xf32> to vector<24x32xf32>
    %401 = arith.mulf %400, %399 : vector<24x32xf32>
    %402 = arith.addf %396, %401 : vector<24x32xf32>
    %403 = vector.extract_strided_slice %245 {offsets = [0, 26], sizes = [24, 1], strides = [1, 1]} : vector<24x32xf32> to vector<24x1xf32>
    %c26_167 = arith.constant 26 : index
    %c0_168 = arith.constant 0 : index
    %c0_169 = arith.constant 0 : index
    %404 = vector.load %arg4[%c26_167, %c0_168, %c0_169] : memref<32x24x32xf32, #tpu.memory_space<vmem>>, vector<1x24x32xf32>
    %405 = vector.shape_cast %404 : vector<1x24x32xf32> to vector<24x32xf32>
    %406 = vector.broadcast %403 : vector<24x1xf32> to vector<24x32xf32>
    %407 = arith.mulf %406, %405 : vector<24x32xf32>
    %408 = arith.addf %402, %407 : vector<24x32xf32>
    %409 = vector.extract_strided_slice %245 {offsets = [0, 27], sizes = [24, 1], strides = [1, 1]} : vector<24x32xf32> to vector<24x1xf32>
    %c27_170 = arith.constant 27 : index
    %c0_171 = arith.constant 0 : index
    %c0_172 = arith.constant 0 : index
    %410 = vector.load %arg4[%c27_170, %c0_171, %c0_172] : memref<32x24x32xf32, #tpu.memory_space<vmem>>, vector<1x24x32xf32>
    %411 = vector.shape_cast %410 : vector<1x24x32xf32> to vector<24x32xf32>
    %412 = vector.broadcast %409 : vector<24x1xf32> to vector<24x32xf32>
    %413 = arith.mulf %412, %411 : vector<24x32xf32>
    %414 = arith.addf %408, %413 : vector<24x32xf32>
    %415 = vector.extract_strided_slice %245 {offsets = [0, 28], sizes = [24, 1], strides = [1, 1]} : vector<24x32xf32> to vector<24x1xf32>
    %c28_173 = arith.constant 28 : index
    %c0_174 = arith.constant 0 : index
    %c0_175 = arith.constant 0 : index
    %416 = vector.load %arg4[%c28_173, %c0_174, %c0_175] : memref<32x24x32xf32, #tpu.memory_space<vmem>>, vector<1x24x32xf32>
    %417 = vector.shape_cast %416 : vector<1x24x32xf32> to vector<24x32xf32>
    %418 = vector.broadcast %415 : vector<24x1xf32> to vector<24x32xf32>
    %419 = arith.mulf %418, %417 : vector<24x32xf32>
    %420 = arith.addf %414, %419 : vector<24x32xf32>
    %421 = vector.extract_strided_slice %245 {offsets = [0, 29], sizes = [24, 1], strides = [1, 1]} : vector<24x32xf32> to vector<24x1xf32>
    %c29_176 = arith.constant 29 : index
    %c0_177 = arith.constant 0 : index
    %c0_178 = arith.constant 0 : index
    %422 = vector.load %arg4[%c29_176, %c0_177, %c0_178] : memref<32x24x32xf32, #tpu.memory_space<vmem>>, vector<1x24x32xf32>
    %423 = vector.shape_cast %422 : vector<1x24x32xf32> to vector<24x32xf32>
    %424 = vector.broadcast %421 : vector<24x1xf32> to vector<24x32xf32>
    %425 = arith.mulf %424, %423 : vector<24x32xf32>
    %426 = arith.addf %420, %425 : vector<24x32xf32>
    %427 = vector.extract_strided_slice %245 {offsets = [0, 30], sizes = [24, 1], strides = [1, 1]} : vector<24x32xf32> to vector<24x1xf32>
    %c30_179 = arith.constant 30 : index
    %c0_180 = arith.constant 0 : index
    %c0_181 = arith.constant 0 : index
    %428 = vector.load %arg4[%c30_179, %c0_180, %c0_181] : memref<32x24x32xf32, #tpu.memory_space<vmem>>, vector<1x24x32xf32>
    %429 = vector.shape_cast %428 : vector<1x24x32xf32> to vector<24x32xf32>
    %430 = vector.broadcast %427 : vector<24x1xf32> to vector<24x32xf32>
    %431 = arith.mulf %430, %429 : vector<24x32xf32>
    %432 = arith.addf %426, %431 : vector<24x32xf32>
    %433 = vector.extract_strided_slice %245 {offsets = [0, 31], sizes = [24, 1], strides = [1, 1]} : vector<24x32xf32> to vector<24x1xf32>
    %c31_182 = arith.constant 31 : index
    %c0_183 = arith.constant 0 : index
    %c0_184 = arith.constant 0 : index
    %434 = vector.load %arg4[%c31_182, %c0_183, %c0_184] : memref<32x24x32xf32, #tpu.memory_space<vmem>>, vector<1x24x32xf32>
    %435 = vector.shape_cast %434 : vector<1x24x32xf32> to vector<24x32xf32>
    %436 = vector.broadcast %433 : vector<24x1xf32> to vector<24x32xf32>
    %437 = arith.mulf %436, %435 : vector<24x32xf32>
    %438 = arith.addf %432, %437 : vector<24x32xf32>
    %cst_185 = arith.constant dense<0.000000e+00> : vector<12x32xf32>
    %439 = tpu.matmul %13, %438, %cst_185 {dimension_numbers = #tpu.dot_dimension_numbers<[1], [0], [0], [1], [0, 0, 1, 1], [], []>} : vector<12x24xf32>, vector<24x32xf32>, vector<12x32xf32> -> vector<12x32xf32>
    %cst_186 = arith.constant dense<0.000000e+00> : vector<12x96xf32>
    %440 = tpu.matmul %439, %14, %cst_186 {dimension_numbers = #tpu.dot_dimension_numbers<[1], [0], [0], [1], [0, 0, 1, 1], [], []>} : vector<12x32xf32>, vector<32x96xf32>, vector<12x96xf32> -> vector<12x96xf32>
    %441 = vector.broadcast %16 : vector<1x96xf32> to vector<12x96xf32>
    %442 = arith.addf %440, %441 : vector<12x96xf32>
    %cst_187 = arith.constant dense<0.000000e+00> : vector<12x96xf32>
    %443 = tpu.matmul %244, %15, %cst_187 {dimension_numbers = #tpu.dot_dimension_numbers<[1], [0], [0], [1], [0, 0, 1, 1], [], []>} : vector<12x32xf32>, vector<32x96xf32>, vector<12x96xf32> -> vector<12x96xf32>
    %444 = vector.broadcast %17 : vector<1x96xf32> to vector<12x96xf32>
    %445 = arith.addf %443, %444 : vector<12x96xf32>
    %446 = vector.extract_strided_slice %442 {offsets = [0, 0], sizes = [12, 32], strides = [1, 1]} : vector<12x96xf32> to vector<12x32xf32>
    %447 = vector.extract_strided_slice %445 {offsets = [0, 0], sizes = [12, 32], strides = [1, 1]} : vector<12x96xf32> to vector<12x32xf32>
    %448 = arith.addf %446, %447 : vector<12x32xf32>
    %449 = arith.negf %448 : vector<12x32xf32>
    %450 = math.exp %449 : vector<12x32xf32>
    %cst_188 = arith.constant 1.000000e+00 : f32
    %451 = vector.broadcast %cst_188 : f32 to vector<12x32xf32>
    %452 = arith.addf %451, %450 : vector<12x32xf32>
    %453 = arith.divf %451, %452 : vector<12x32xf32>
    %454 = vector.extract_strided_slice %442 {offsets = [0, 32], sizes = [12, 32], strides = [1, 1]} : vector<12x96xf32> to vector<12x32xf32>
    %455 = vector.extract_strided_slice %445 {offsets = [0, 32], sizes = [12, 32], strides = [1, 1]} : vector<12x96xf32> to vector<12x32xf32>
    %456 = arith.addf %454, %455 : vector<12x32xf32>
    %457 = arith.negf %456 : vector<12x32xf32>
    %458 = math.exp %457 : vector<12x32xf32>
    %cst_189 = arith.constant 1.000000e+00 : f32
    %459 = vector.broadcast %cst_189 : f32 to vector<12x32xf32>
    %460 = arith.addf %459, %458 : vector<12x32xf32>
    %461 = arith.divf %459, %460 : vector<12x32xf32>
    %462 = vector.extract_strided_slice %442 {offsets = [0, 64], sizes = [12, 32], strides = [1, 1]} : vector<12x96xf32> to vector<12x32xf32>
    %463 = vector.extract_strided_slice %445 {offsets = [0, 64], sizes = [12, 32], strides = [1, 1]} : vector<12x96xf32> to vector<12x32xf32>
    %464 = arith.mulf %453, %463 : vector<12x32xf32>
    %465 = arith.addf %462, %464 : vector<12x32xf32>
    %466 = math.tanh %465 : vector<12x32xf32>
    %cst_190 = arith.constant 1.000000e+00 : f32
    %467 = vector.broadcast %cst_190 : f32 to vector<12x32xf32>
    %468 = arith.subf %467, %461 : vector<12x32xf32>
    %469 = arith.mulf %468, %466 : vector<12x32xf32>
    %470 = arith.mulf %461, %244 : vector<12x32xf32>
    %471 = arith.addf %469, %470 : vector<12x32xf32>
    %c0_191 = arith.constant 0 : index
    %c0_192 = arith.constant 0 : index
    %472 = vector.load %arg9[%c0_191, %c0_192] : memref<32x64xf32, #tpu.memory_space<vmem>>, vector<32x64xf32>
    %cst_193 = arith.constant dense<0.000000e+00> : vector<12x64xf32>
    %473 = tpu.matmul %471, %472, %cst_193 {dimension_numbers = #tpu.dot_dimension_numbers<[1], [0], [0], [1], [0, 0, 1, 1], [], []>} : vector<12x32xf32>, vector<32x64xf32>, vector<12x64xf32> -> vector<12x64xf32>
    %c0_194 = arith.constant 0 : index
    %c0_195 = arith.constant 0 : index
    %474 = vector.load %arg10[%c0_194, %c0_195] : memref<8x64xf32, #tpu.memory_space<vmem>>, vector<8x64xf32>
    %cst_196 = arith.constant dense<0.000000e+00> : vector<12x64xf32>
    %475 = tpu.matmul %1, %474, %cst_196 {dimension_numbers = #tpu.dot_dimension_numbers<[1], [0], [0], [1], [0, 0, 1, 1], [], []>} : vector<12x8xf32>, vector<8x64xf32>, vector<12x64xf32> -> vector<12x64xf32>
    %476 = arith.addf %473, %475 : vector<12x64xf32>
    %c0_197 = arith.constant 0 : index
    %c0_198 = arith.constant 0 : index
    %477 = vector.load %arg11[%c0_197, %c0_198] : memref<1x64xf32, #tpu.memory_space<vmem>>, vector<1x64xf32>
    %478 = vector.broadcast %477 : vector<1x64xf32> to vector<12x64xf32>
    %479 = arith.addf %476, %478 : vector<12x64xf32>
    %c0_199 = arith.constant 0 : index
    %c0_200 = arith.constant 0 : index
    %480 = vector.load %arg12[%c0_199, %c0_200] : memref<12x64xf32, #tpu.memory_space<vmem>>, vector<12x64xf32>
    tpu.vector_store %arg12[%c0_199, %c0_200], %479 {strides = array<i32>} : memref<12x64xf32, #tpu.memory_space<vmem>>, vector<12x64xf32>,
    return
  }
}

module attributes {stable_mosaic.version = 11 : i64} {
  func.func @_s2s_head_kernel(%arg0: memref<12x64xf32, #tpu.memory_space<vmem>>, %arg1: memref<1x12xi32, #tpu.memory_space<vmem>>, %arg2: memref<128x256xf32, #tpu.memory_space<vmem>>, %arg3: memref<64x256xf32, #tpu.memory_space<vmem>>, %arg4: memref<1x256xf32, #tpu.memory_space<vmem>>, %arg5: memref<64x256xf32, #tpu.memory_space<vmem>>, %arg6: memref<64x256xf32, #tpu.memory_space<vmem>>, %arg7: memref<1x256xf32, #tpu.memory_space<vmem>>, %arg8: memref<128x256xf32, #tpu.memory_space<vmem>>, %arg9: memref<1x256xf32, #tpu.memory_space<vmem>>, %arg10: memref<256x3xf32, #tpu.memory_space<vmem>>, %arg11: memref<1x3xf32, #tpu.memory_space<vmem>>, %arg12: memref<2x3xf32, #tpu.memory_space<vmem>>) attributes {dimension_semantics = [], scalar_prefetch = 0 : i64, scratch_operands = 0 : i64, tpu.core_type = #tpu.core_type<tc>} {
    %c0 = arith.constant 0 : index
    %c0_0 = arith.constant 0 : index
    %0 = vector.load %arg0[%c0, %c0_0] : memref<12x64xf32, #tpu.memory_space<vmem>>, vector<12x64xf32>
    %1 = tpu.iota {dimensions = array<i32: 0>} : vector<2x12xi32>
    %c0_1 = arith.constant 0 : index
    %c0_2 = arith.constant 0 : index
    %2 = vector.load %arg1[%c0_1, %c0_2] : memref<1x12xi32, #tpu.memory_space<vmem>>, vector<1x12xi32>
    %3 = vector.broadcast %2 : vector<1x12xi32> to vector<2x12xi32>
    %4 = arith.cmpi eq, %1, %3 : vector<2x12xi32>
    %5 = arith.extui %4 : vector<2x12xi1> to vector<2x12xi32>
    %6 = arith.sitofp %5 : vector<2x12xi32> to vector<2x12xf32>
    %c0_3 = arith.constant 0 : index
    %c0_4 = arith.constant 0 : index
    %7 = vector.load %arg2[%c0_3, %c0_4] : memref<128x256xf32, #tpu.memory_space<vmem>>, vector<128x256xf32>
    %8 = vector.extract_strided_slice %7 {offsets = [0, 0], sizes = [64, 256], strides = [1, 1]} : vector<128x256xf32> to vector<64x256xf32>
    %9 = vector.extract_strided_slice %7 {offsets = [64, 0], sizes = [64, 256], strides = [1, 1]} : vector<128x256xf32> to vector<64x256xf32>
    %cst = arith.constant 0.000000e+00 : f32
    %10 = vector.broadcast %cst : f32 to vector<2x64xf32>
    %cst_5 = arith.constant dense<0.000000e+00> : vector<2x256xf32>
    %11 = tpu.matmul %10, %8, %cst_5 {dimension_numbers = #tpu.dot_dimension_numbers<[1], [0], [0], [1], [0, 0, 1, 1], [], []>} : vector<2x64xf32>, vector<64x256xf32>, vector<2x256xf32> -> vector<2x256xf32>
    %cst_6 = arith.constant dense<0.000000e+00> : vector<2x256xf32>
    %12 = tpu.matmul %10, %9, %cst_6 {dimension_numbers = #tpu.dot_dimension_numbers<[1], [0], [0], [1], [0, 0, 1, 1], [], []>} : vector<2x64xf32>, vector<64x256xf32>, vector<2x256xf32> -> vector<2x256xf32>
    %13 = arith.addf %11, %12 : vector<2x256xf32>
    %c0_7 = arith.constant 0 : index
    %c0_8 = arith.constant 0 : index
    %14 = vector.load %arg3[%c0_7, %c0_8] : memref<64x256xf32, #tpu.memory_space<vmem>>, vector<64x256xf32>
    %cst_9 = arith.constant dense<0.000000e+00> : vector<2x256xf32>
    %15 = tpu.matmul %10, %14, %cst_9 {dimension_numbers = #tpu.dot_dimension_numbers<[1], [0], [0], [1], [0, 0, 1, 1], [], []>} : vector<2x64xf32>, vector<64x256xf32>, vector<2x256xf32> -> vector<2x256xf32>
    %16 = arith.addf %13, %15 : vector<2x256xf32>
    %c0_10 = arith.constant 0 : index
    %c0_11 = arith.constant 0 : index
    %17 = vector.load %arg4[%c0_10, %c0_11] : memref<1x256xf32, #tpu.memory_space<vmem>>, vector<1x256xf32>
    %18 = vector.broadcast %17 : vector<1x256xf32> to vector<2x256xf32>
    %19 = arith.addf %16, %18 : vector<2x256xf32>
    %20 = vector.extract_strided_slice %19 {offsets = [0, 0], sizes = [2, 64], strides = [1, 1]} : vector<2x256xf32> to vector<2x64xf32>
    %21 = arith.negf %20 : vector<2x64xf32>
    %22 = math.exp %21 : vector<2x64xf32>
    %cst_12 = arith.constant 1.000000e+00 : f32
    %23 = vector.broadcast %cst_12 : f32 to vector<2x64xf32>
    %24 = arith.addf %23, %22 : vector<2x64xf32>
    %25 = arith.divf %23, %24 : vector<2x64xf32>
    %26 = vector.extract_strided_slice %19 {offsets = [0, 64], sizes = [2, 64], strides = [1, 1]} : vector<2x256xf32> to vector<2x64xf32>
    %27 = arith.negf %26 : vector<2x64xf32>
    %28 = math.exp %27 : vector<2x64xf32>
    %cst_13 = arith.constant 1.000000e+00 : f32
    %29 = vector.broadcast %cst_13 : f32 to vector<2x64xf32>
    %30 = arith.addf %29, %28 : vector<2x64xf32>
    %31 = arith.divf %29, %30 : vector<2x64xf32>
    %32 = vector.extract_strided_slice %19 {offsets = [0, 128], sizes = [2, 64], strides = [1, 1]} : vector<2x256xf32> to vector<2x64xf32>
    %33 = math.tanh %32 : vector<2x64xf32>
    %34 = vector.extract_strided_slice %19 {offsets = [0, 192], sizes = [2, 64], strides = [1, 1]} : vector<2x256xf32> to vector<2x64xf32>
    %35 = arith.negf %34 : vector<2x64xf32>
    %36 = math.exp %35 : vector<2x64xf32>
    %cst_14 = arith.constant 1.000000e+00 : f32
    %37 = vector.broadcast %cst_14 : f32 to vector<2x64xf32>
    %38 = arith.addf %37, %36 : vector<2x64xf32>
    %39 = arith.divf %37, %38 : vector<2x64xf32>
    %40 = arith.mulf %31, %10 : vector<2x64xf32>
    %41 = arith.mulf %25, %33 : vector<2x64xf32>
    %42 = arith.addf %40, %41 : vector<2x64xf32>
    %43 = math.tanh %42 : vector<2x64xf32>
    %44 = arith.mulf %39, %43 : vector<2x64xf32>
    %c0_15 = arith.constant 0 : index
    %c0_16 = arith.constant 0 : index
    %45 = vector.load %arg5[%c0_15, %c0_16] : memref<64x256xf32, #tpu.memory_space<vmem>>, vector<64x256xf32>
    %cst_17 = arith.constant dense<0.000000e+00> : vector<2x256xf32>
    %46 = tpu.matmul %44, %45, %cst_17 {dimension_numbers = #tpu.dot_dimension_numbers<[1], [0], [0], [1], [0, 0, 1, 1], [], []>} : vector<2x64xf32>, vector<64x256xf32>, vector<2x256xf32> -> vector<2x256xf32>
    %c0_18 = arith.constant 0 : index
    %c0_19 = arith.constant 0 : index
    %47 = vector.load %arg6[%c0_18, %c0_19] : memref<64x256xf32, #tpu.memory_space<vmem>>, vector<64x256xf32>
    %cst_20 = arith.constant dense<0.000000e+00> : vector<2x256xf32>
    %48 = tpu.matmul %10, %47, %cst_20 {dimension_numbers = #tpu.dot_dimension_numbers<[1], [0], [0], [1], [0, 0, 1, 1], [], []>} : vector<2x64xf32>, vector<64x256xf32>, vector<2x256xf32> -> vector<2x256xf32>
    %49 = arith.addf %46, %48 : vector<2x256xf32>
    %c0_21 = arith.constant 0 : index
    %c0_22 = arith.constant 0 : index
    %50 = vector.load %arg7[%c0_21, %c0_22] : memref<1x256xf32, #tpu.memory_space<vmem>>, vector<1x256xf32>
    %51 = vector.broadcast %50 : vector<1x256xf32> to vector<2x256xf32>
    %52 = arith.addf %49, %51 : vector<2x256xf32>
    %53 = vector.extract_strided_slice %52 {offsets = [0, 0], sizes = [2, 64], strides = [1, 1]} : vector<2x256xf32> to vector<2x64xf32>
    %54 = arith.negf %53 : vector<2x64xf32>
    %55 = math.exp %54 : vector<2x64xf32>
    %cst_23 = arith.constant 1.000000e+00 : f32
    %56 = vector.broadcast %cst_23 : f32 to vector<2x64xf32>
    %57 = arith.addf %56, %55 : vector<2x64xf32>
    %58 = arith.divf %56, %57 : vector<2x64xf32>
    %59 = vector.extract_strided_slice %52 {offsets = [0, 64], sizes = [2, 64], strides = [1, 1]} : vector<2x256xf32> to vector<2x64xf32>
    %60 = arith.negf %59 : vector<2x64xf32>
    %61 = math.exp %60 : vector<2x64xf32>
    %cst_24 = arith.constant 1.000000e+00 : f32
    %62 = vector.broadcast %cst_24 : f32 to vector<2x64xf32>
    %63 = arith.addf %62, %61 : vector<2x64xf32>
    %64 = arith.divf %62, %63 : vector<2x64xf32>
    %65 = vector.extract_strided_slice %52 {offsets = [0, 128], sizes = [2, 64], strides = [1, 1]} : vector<2x256xf32> to vector<2x64xf32>
    %66 = math.tanh %65 : vector<2x64xf32>
    %67 = vector.extract_strided_slice %52 {offsets = [0, 192], sizes = [2, 64], strides = [1, 1]} : vector<2x256xf32> to vector<2x64xf32>
    %68 = arith.negf %67 : vector<2x64xf32>
    %69 = math.exp %68 : vector<2x64xf32>
    %cst_25 = arith.constant 1.000000e+00 : f32
    %70 = vector.broadcast %cst_25 : f32 to vector<2x64xf32>
    %71 = arith.addf %70, %69 : vector<2x64xf32>
    %72 = arith.divf %70, %71 : vector<2x64xf32>
    %73 = arith.mulf %64, %10 : vector<2x64xf32>
    %74 = arith.mulf %58, %66 : vector<2x64xf32>
    %75 = arith.addf %73, %74 : vector<2x64xf32>
    %76 = math.tanh %75 : vector<2x64xf32>
    %77 = arith.mulf %72, %76 : vector<2x64xf32>
    %cst_26 = arith.constant dense<0.000000e+00> : vector<2x12xf32>
    %78 = tpu.matmul %77, %0, %cst_26 {dimension_numbers = #tpu.dot_dimension_numbers<[1], [1], [0], [0], [0, 0, 1, 0], [], []>} : vector<2x64xf32>, vector<12x64xf32>, vector<2x12xf32> -> vector<2x12xf32>
    %cst_27 = arith.constant 0.000000e+00 : f32
    %79 = vector.broadcast %cst_27 : f32 to vector<2x12xf32>
    %80 = arith.cmpf ogt, %6, %79 : vector<2x12xf32>
    %cst_28 = arith.constant -1.000000e+30 : f32
    %81 = vector.broadcast %cst_28 : f32 to vector<2x12xf32>
    %82 = arith.select %80, %78, %81 : vector<2x12xi1>, vector<2x12xf32>
    %cst_29 = arith.constant dense<0xFF800000> : vector<2xf32>
    %83 = vector.multi_reduction <maximumf>, %82, %cst_29 [1] : vector<2x12xf32> to vector<2xf32>
    %84 = vector.shape_cast %83 : vector<2xf32> to vector<2x1xf32>
    %cst_30 = arith.constant 0.000000e+00 : f32
    %85 = vector.broadcast %cst_30 : f32 to vector<2x12xf32>
    %86 = arith.cmpf ogt, %6, %85 : vector<2x12xf32>
    %87 = vector.broadcast %84 : vector<2x1xf32> to vector<2x12xf32>
    %88 = arith.subf %78, %87 : vector<2x12xf32>
    %89 = math.exp %88 : vector<2x12xf32>
    %cst_31 = arith.constant 0.000000e+00 : f32
    %90 = vector.broadcast %cst_31 : f32 to vector<2x12xf32>
    %91 = arith.select %86, %89, %90 : vector<2x12xi1>, vector<2x12xf32>
    %cst_32 = arith.constant dense<0.000000e+00> : vector<2xf32>
    %92 = vector.multi_reduction <add>, %91, %cst_32 [1] : vector<2x12xf32> to vector<2xf32>
    %93 = vector.shape_cast %92 : vector<2xf32> to vector<2x1xf32>
    %cst_33 = arith.constant 1.000000e-30 : f32
    %94 = vector.broadcast %cst_33 : f32 to vector<2x1xf32>
    %95 = arith.maximumf %93, %94 : vector<2x1xf32>
    %96 = vector.broadcast %95 : vector<2x1xf32> to vector<2x12xf32>
    %97 = arith.divf %91, %96 : vector<2x12xf32>
    %cst_34 = arith.constant dense<0.000000e+00> : vector<2x64xf32>
    %98 = tpu.matmul %97, %0, %cst_34 {dimension_numbers = #tpu.dot_dimension_numbers<[1], [0], [0], [1], [0, 0, 1, 1], [], []>} : vector<2x12xf32>, vector<12x64xf32>, vector<2x64xf32> -> vector<2x64xf32>
    %cst_35 = arith.constant dense<0.000000e+00> : vector<2x256xf32>
    %99 = tpu.matmul %77, %8, %cst_35 {dimension_numbers = #tpu.dot_dimension_numbers<[1], [0], [0], [1], [0, 0, 1, 1], [], []>} : vector<2x64xf32>, vector<64x256xf32>, vector<2x256xf32> -> vector<2x256xf32>
    %cst_36 = arith.constant dense<0.000000e+00> : vector<2x256xf32>
    %100 = tpu.matmul %98, %9, %cst_36 {dimension_numbers = #tpu.dot_dimension_numbers<[1], [0], [0], [1], [0, 0, 1, 1], [], []>} : vector<2x64xf32>, vector<64x256xf32>, vector<2x256xf32> -> vector<2x256xf32>
    %101 = arith.addf %99, %100 : vector<2x256xf32>
    %c0_37 = arith.constant 0 : index
    %c0_38 = arith.constant 0 : index
    %102 = vector.load %arg3[%c0_37, %c0_38] : memref<64x256xf32, #tpu.memory_space<vmem>>, vector<64x256xf32>
    %cst_39 = arith.constant dense<0.000000e+00> : vector<2x256xf32>
    %103 = tpu.matmul %44, %102, %cst_39 {dimension_numbers = #tpu.dot_dimension_numbers<[1], [0], [0], [1], [0, 0, 1, 1], [], []>} : vector<2x64xf32>, vector<64x256xf32>, vector<2x256xf32> -> vector<2x256xf32>
    %104 = arith.addf %101, %103 : vector<2x256xf32>
    %c0_40 = arith.constant 0 : index
    %c0_41 = arith.constant 0 : index
    %105 = vector.load %arg4[%c0_40, %c0_41] : memref<1x256xf32, #tpu.memory_space<vmem>>, vector<1x256xf32>
    %106 = vector.broadcast %105 : vector<1x256xf32> to vector<2x256xf32>
    %107 = arith.addf %104, %106 : vector<2x256xf32>
    %108 = vector.extract_strided_slice %107 {offsets = [0, 0], sizes = [2, 64], strides = [1, 1]} : vector<2x256xf32> to vector<2x64xf32>
    %109 = arith.negf %108 : vector<2x64xf32>
    %110 = math.exp %109 : vector<2x64xf32>
    %cst_42 = arith.constant 1.000000e+00 : f32
    %111 = vector.broadcast %cst_42 : f32 to vector<2x64xf32>
    %112 = arith.addf %111, %110 : vector<2x64xf32>
    %113 = arith.divf %111, %112 : vector<2x64xf32>
    %114 = vector.extract_strided_slice %107 {offsets = [0, 64], sizes = [2, 64], strides = [1, 1]} : vector<2x256xf32> to vector<2x64xf32>
    %115 = arith.negf %114 : vector<2x64xf32>
    %116 = math.exp %115 : vector<2x64xf32>
    %cst_43 = arith.constant 1.000000e+00 : f32
    %117 = vector.broadcast %cst_43 : f32 to vector<2x64xf32>
    %118 = arith.addf %117, %116 : vector<2x64xf32>
    %119 = arith.divf %117, %118 : vector<2x64xf32>
    %120 = vector.extract_strided_slice %107 {offsets = [0, 128], sizes = [2, 64], strides = [1, 1]} : vector<2x256xf32> to vector<2x64xf32>
    %121 = math.tanh %120 : vector<2x64xf32>
    %122 = vector.extract_strided_slice %107 {offsets = [0, 192], sizes = [2, 64], strides = [1, 1]} : vector<2x256xf32> to vector<2x64xf32>
    %123 = arith.negf %122 : vector<2x64xf32>
    %124 = math.exp %123 : vector<2x64xf32>
    %cst_44 = arith.constant 1.000000e+00 : f32
    %125 = vector.broadcast %cst_44 : f32 to vector<2x64xf32>
    %126 = arith.addf %125, %124 : vector<2x64xf32>
    %127 = arith.divf %125, %126 : vector<2x64xf32>
    %128 = arith.mulf %119, %42 : vector<2x64xf32>
    %129 = arith.mulf %113, %121 : vector<2x64xf32>
    %130 = arith.addf %128, %129 : vector<2x64xf32>
    %131 = math.tanh %130 : vector<2x64xf32>
    %132 = arith.mulf %127, %131 : vector<2x64xf32>
    %c0_45 = arith.constant 0 : index
    %c0_46 = arith.constant 0 : index
    %133 = vector.load %arg5[%c0_45, %c0_46] : memref<64x256xf32, #tpu.memory_space<vmem>>, vector<64x256xf32>
    %cst_47 = arith.constant dense<0.000000e+00> : vector<2x256xf32>
    %134 = tpu.matmul %132, %133, %cst_47 {dimension_numbers = #tpu.dot_dimension_numbers<[1], [0], [0], [1], [0, 0, 1, 1], [], []>} : vector<2x64xf32>, vector<64x256xf32>, vector<2x256xf32> -> vector<2x256xf32>
    %c0_48 = arith.constant 0 : index
    %c0_49 = arith.constant 0 : index
    %135 = vector.load %arg6[%c0_48, %c0_49] : memref<64x256xf32, #tpu.memory_space<vmem>>, vector<64x256xf32>
    %cst_50 = arith.constant dense<0.000000e+00> : vector<2x256xf32>
    %136 = tpu.matmul %77, %135, %cst_50 {dimension_numbers = #tpu.dot_dimension_numbers<[1], [0], [0], [1], [0, 0, 1, 1], [], []>} : vector<2x64xf32>, vector<64x256xf32>, vector<2x256xf32> -> vector<2x256xf32>
    %137 = arith.addf %134, %136 : vector<2x256xf32>
    %c0_51 = arith.constant 0 : index
    %c0_52 = arith.constant 0 : index
    %138 = vector.load %arg7[%c0_51, %c0_52] : memref<1x256xf32, #tpu.memory_space<vmem>>, vector<1x256xf32>
    %139 = vector.broadcast %138 : vector<1x256xf32> to vector<2x256xf32>
    %140 = arith.addf %137, %139 : vector<2x256xf32>
    %141 = vector.extract_strided_slice %140 {offsets = [0, 0], sizes = [2, 64], strides = [1, 1]} : vector<2x256xf32> to vector<2x64xf32>
    %142 = arith.negf %141 : vector<2x64xf32>
    %143 = math.exp %142 : vector<2x64xf32>
    %cst_53 = arith.constant 1.000000e+00 : f32
    %144 = vector.broadcast %cst_53 : f32 to vector<2x64xf32>
    %145 = arith.addf %144, %143 : vector<2x64xf32>
    %146 = arith.divf %144, %145 : vector<2x64xf32>
    %147 = vector.extract_strided_slice %140 {offsets = [0, 64], sizes = [2, 64], strides = [1, 1]} : vector<2x256xf32> to vector<2x64xf32>
    %148 = arith.negf %147 : vector<2x64xf32>
    %149 = math.exp %148 : vector<2x64xf32>
    %cst_54 = arith.constant 1.000000e+00 : f32
    %150 = vector.broadcast %cst_54 : f32 to vector<2x64xf32>
    %151 = arith.addf %150, %149 : vector<2x64xf32>
    %152 = arith.divf %150, %151 : vector<2x64xf32>
    %153 = vector.extract_strided_slice %140 {offsets = [0, 128], sizes = [2, 64], strides = [1, 1]} : vector<2x256xf32> to vector<2x64xf32>
    %154 = math.tanh %153 : vector<2x64xf32>
    %155 = vector.extract_strided_slice %140 {offsets = [0, 192], sizes = [2, 64], strides = [1, 1]} : vector<2x256xf32> to vector<2x64xf32>
    %156 = arith.negf %155 : vector<2x64xf32>
    %157 = math.exp %156 : vector<2x64xf32>
    %cst_55 = arith.constant 1.000000e+00 : f32
    %158 = vector.broadcast %cst_55 : f32 to vector<2x64xf32>
    %159 = arith.addf %158, %157 : vector<2x64xf32>
    %160 = arith.divf %158, %159 : vector<2x64xf32>
    %161 = arith.mulf %152, %75 : vector<2x64xf32>
    %162 = arith.mulf %146, %154 : vector<2x64xf32>
    %163 = arith.addf %161, %162 : vector<2x64xf32>
    %164 = math.tanh %163 : vector<2x64xf32>
    %165 = arith.mulf %160, %164 : vector<2x64xf32>
    %cst_56 = arith.constant dense<0.000000e+00> : vector<2x12xf32>
    %166 = tpu.matmul %165, %0, %cst_56 {dimension_numbers = #tpu.dot_dimension_numbers<[1], [1], [0], [0], [0, 0, 1, 0], [], []>} : vector<2x64xf32>, vector<12x64xf32>, vector<2x12xf32> -> vector<2x12xf32>
    %cst_57 = arith.constant 0.000000e+00 : f32
    %167 = vector.broadcast %cst_57 : f32 to vector<2x12xf32>
    %168 = arith.cmpf ogt, %6, %167 : vector<2x12xf32>
    %cst_58 = arith.constant -1.000000e+30 : f32
    %169 = vector.broadcast %cst_58 : f32 to vector<2x12xf32>
    %170 = arith.select %168, %166, %169 : vector<2x12xi1>, vector<2x12xf32>
    %cst_59 = arith.constant dense<0xFF800000> : vector<2xf32>
    %171 = vector.multi_reduction <maximumf>, %170, %cst_59 [1] : vector<2x12xf32> to vector<2xf32>
    %172 = vector.shape_cast %171 : vector<2xf32> to vector<2x1xf32>
    %cst_60 = arith.constant 0.000000e+00 : f32
    %173 = vector.broadcast %cst_60 : f32 to vector<2x12xf32>
    %174 = arith.cmpf ogt, %6, %173 : vector<2x12xf32>
    %175 = vector.broadcast %172 : vector<2x1xf32> to vector<2x12xf32>
    %176 = arith.subf %166, %175 : vector<2x12xf32>
    %177 = math.exp %176 : vector<2x12xf32>
    %cst_61 = arith.constant 0.000000e+00 : f32
    %178 = vector.broadcast %cst_61 : f32 to vector<2x12xf32>
    %179 = arith.select %174, %177, %178 : vector<2x12xi1>, vector<2x12xf32>
    %cst_62 = arith.constant dense<0.000000e+00> : vector<2xf32>
    %180 = vector.multi_reduction <add>, %179, %cst_62 [1] : vector<2x12xf32> to vector<2xf32>
    %181 = vector.shape_cast %180 : vector<2xf32> to vector<2x1xf32>
    %cst_63 = arith.constant 1.000000e-30 : f32
    %182 = vector.broadcast %cst_63 : f32 to vector<2x1xf32>
    %183 = arith.maximumf %181, %182 : vector<2x1xf32>
    %184 = vector.broadcast %183 : vector<2x1xf32> to vector<2x12xf32>
    %185 = arith.divf %179, %184 : vector<2x12xf32>
    %cst_64 = arith.constant dense<0.000000e+00> : vector<2x64xf32>
    %186 = tpu.matmul %185, %0, %cst_64 {dimension_numbers = #tpu.dot_dimension_numbers<[1], [0], [0], [1], [0, 0, 1, 1], [], []>} : vector<2x12xf32>, vector<12x64xf32>, vector<2x64xf32> -> vector<2x64xf32>
    %cst_65 = arith.constant dense<0.000000e+00> : vector<2x256xf32>
    %187 = tpu.matmul %165, %8, %cst_65 {dimension_numbers = #tpu.dot_dimension_numbers<[1], [0], [0], [1], [0, 0, 1, 1], [], []>} : vector<2x64xf32>, vector<64x256xf32>, vector<2x256xf32> -> vector<2x256xf32>
    %cst_66 = arith.constant dense<0.000000e+00> : vector<2x256xf32>
    %188 = tpu.matmul %186, %9, %cst_66 {dimension_numbers = #tpu.dot_dimension_numbers<[1], [0], [0], [1], [0, 0, 1, 1], [], []>} : vector<2x64xf32>, vector<64x256xf32>, vector<2x256xf32> -> vector<2x256xf32>
    %189 = arith.addf %187, %188 : vector<2x256xf32>
    %c0_67 = arith.constant 0 : index
    %c0_68 = arith.constant 0 : index
    %190 = vector.load %arg3[%c0_67, %c0_68] : memref<64x256xf32, #tpu.memory_space<vmem>>, vector<64x256xf32>
    %cst_69 = arith.constant dense<0.000000e+00> : vector<2x256xf32>
    %191 = tpu.matmul %132, %190, %cst_69 {dimension_numbers = #tpu.dot_dimension_numbers<[1], [0], [0], [1], [0, 0, 1, 1], [], []>} : vector<2x64xf32>, vector<64x256xf32>, vector<2x256xf32> -> vector<2x256xf32>
    %192 = arith.addf %189, %191 : vector<2x256xf32>
    %c0_70 = arith.constant 0 : index
    %c0_71 = arith.constant 0 : index
    %193 = vector.load %arg4[%c0_70, %c0_71] : memref<1x256xf32, #tpu.memory_space<vmem>>, vector<1x256xf32>
    %194 = vector.broadcast %193 : vector<1x256xf32> to vector<2x256xf32>
    %195 = arith.addf %192, %194 : vector<2x256xf32>
    %196 = vector.extract_strided_slice %195 {offsets = [0, 0], sizes = [2, 64], strides = [1, 1]} : vector<2x256xf32> to vector<2x64xf32>
    %197 = arith.negf %196 : vector<2x64xf32>
    %198 = math.exp %197 : vector<2x64xf32>
    %cst_72 = arith.constant 1.000000e+00 : f32
    %199 = vector.broadcast %cst_72 : f32 to vector<2x64xf32>
    %200 = arith.addf %199, %198 : vector<2x64xf32>
    %201 = arith.divf %199, %200 : vector<2x64xf32>
    %202 = vector.extract_strided_slice %195 {offsets = [0, 64], sizes = [2, 64], strides = [1, 1]} : vector<2x256xf32> to vector<2x64xf32>
    %203 = arith.negf %202 : vector<2x64xf32>
    %204 = math.exp %203 : vector<2x64xf32>
    %cst_73 = arith.constant 1.000000e+00 : f32
    %205 = vector.broadcast %cst_73 : f32 to vector<2x64xf32>
    %206 = arith.addf %205, %204 : vector<2x64xf32>
    %207 = arith.divf %205, %206 : vector<2x64xf32>
    %208 = vector.extract_strided_slice %195 {offsets = [0, 128], sizes = [2, 64], strides = [1, 1]} : vector<2x256xf32> to vector<2x64xf32>
    %209 = math.tanh %208 : vector<2x64xf32>
    %210 = vector.extract_strided_slice %195 {offsets = [0, 192], sizes = [2, 64], strides = [1, 1]} : vector<2x256xf32> to vector<2x64xf32>
    %211 = arith.negf %210 : vector<2x64xf32>
    %212 = math.exp %211 : vector<2x64xf32>
    %cst_74 = arith.constant 1.000000e+00 : f32
    %213 = vector.broadcast %cst_74 : f32 to vector<2x64xf32>
    %214 = arith.addf %213, %212 : vector<2x64xf32>
    %215 = arith.divf %213, %214 : vector<2x64xf32>
    %216 = arith.mulf %207, %130 : vector<2x64xf32>
    %217 = arith.mulf %201, %209 : vector<2x64xf32>
    %218 = arith.addf %216, %217 : vector<2x64xf32>
    %219 = math.tanh %218 : vector<2x64xf32>
    %220 = arith.mulf %215, %219 : vector<2x64xf32>
    %c0_75 = arith.constant 0 : index
    %c0_76 = arith.constant 0 : index
    %221 = vector.load %arg5[%c0_75, %c0_76] : memref<64x256xf32, #tpu.memory_space<vmem>>, vector<64x256xf32>
    %cst_77 = arith.constant dense<0.000000e+00> : vector<2x256xf32>
    %222 = tpu.matmul %220, %221, %cst_77 {dimension_numbers = #tpu.dot_dimension_numbers<[1], [0], [0], [1], [0, 0, 1, 1], [], []>} : vector<2x64xf32>, vector<64x256xf32>, vector<2x256xf32> -> vector<2x256xf32>
    %c0_78 = arith.constant 0 : index
    %c0_79 = arith.constant 0 : index
    %223 = vector.load %arg6[%c0_78, %c0_79] : memref<64x256xf32, #tpu.memory_space<vmem>>, vector<64x256xf32>
    %cst_80 = arith.constant dense<0.000000e+00> : vector<2x256xf32>
    %224 = tpu.matmul %165, %223, %cst_80 {dimension_numbers = #tpu.dot_dimension_numbers<[1], [0], [0], [1], [0, 0, 1, 1], [], []>} : vector<2x64xf32>, vector<64x256xf32>, vector<2x256xf32> -> vector<2x256xf32>
    %225 = arith.addf %222, %224 : vector<2x256xf32>
    %c0_81 = arith.constant 0 : index
    %c0_82 = arith.constant 0 : index
    %226 = vector.load %arg7[%c0_81, %c0_82] : memref<1x256xf32, #tpu.memory_space<vmem>>, vector<1x256xf32>
    %227 = vector.broadcast %226 : vector<1x256xf32> to vector<2x256xf32>
    %228 = arith.addf %225, %227 : vector<2x256xf32>
    %229 = vector.extract_strided_slice %228 {offsets = [0, 0], sizes = [2, 64], strides = [1, 1]} : vector<2x256xf32> to vector<2x64xf32>
    %230 = arith.negf %229 : vector<2x64xf32>
    %231 = math.exp %230 : vector<2x64xf32>
    %cst_83 = arith.constant 1.000000e+00 : f32
    %232 = vector.broadcast %cst_83 : f32 to vector<2x64xf32>
    %233 = arith.addf %232, %231 : vector<2x64xf32>
    %234 = arith.divf %232, %233 : vector<2x64xf32>
    %235 = vector.extract_strided_slice %228 {offsets = [0, 64], sizes = [2, 64], strides = [1, 1]} : vector<2x256xf32> to vector<2x64xf32>
    %236 = arith.negf %235 : vector<2x64xf32>
    %237 = math.exp %236 : vector<2x64xf32>
    %cst_84 = arith.constant 1.000000e+00 : f32
    %238 = vector.broadcast %cst_84 : f32 to vector<2x64xf32>
    %239 = arith.addf %238, %237 : vector<2x64xf32>
    %240 = arith.divf %238, %239 : vector<2x64xf32>
    %241 = vector.extract_strided_slice %228 {offsets = [0, 128], sizes = [2, 64], strides = [1, 1]} : vector<2x256xf32> to vector<2x64xf32>
    %242 = math.tanh %241 : vector<2x64xf32>
    %243 = vector.extract_strided_slice %228 {offsets = [0, 192], sizes = [2, 64], strides = [1, 1]} : vector<2x256xf32> to vector<2x64xf32>
    %244 = arith.negf %243 : vector<2x64xf32>
    %245 = math.exp %244 : vector<2x64xf32>
    %cst_85 = arith.constant 1.000000e+00 : f32
    %246 = vector.broadcast %cst_85 : f32 to vector<2x64xf32>
    %247 = arith.addf %246, %245 : vector<2x64xf32>
    %248 = arith.divf %246, %247 : vector<2x64xf32>
    %249 = arith.mulf %240, %163 : vector<2x64xf32>
    %250 = arith.mulf %234, %242 : vector<2x64xf32>
    %251 = arith.addf %249, %250 : vector<2x64xf32>
    %252 = math.tanh %251 : vector<2x64xf32>
    %253 = arith.mulf %248, %252 : vector<2x64xf32>
    %cst_86 = arith.constant dense<0.000000e+00> : vector<2x12xf32>
    %254 = tpu.matmul %253, %0, %cst_86 {dimension_numbers = #tpu.dot_dimension_numbers<[1], [1], [0], [0], [0, 0, 1, 0], [], []>} : vector<2x64xf32>, vector<12x64xf32>, vector<2x12xf32> -> vector<2x12xf32>
    %cst_87 = arith.constant 0.000000e+00 : f32
    %255 = vector.broadcast %cst_87 : f32 to vector<2x12xf32>
    %256 = arith.cmpf ogt, %6, %255 : vector<2x12xf32>
    %cst_88 = arith.constant -1.000000e+30 : f32
    %257 = vector.broadcast %cst_88 : f32 to vector<2x12xf32>
    %258 = arith.select %256, %254, %257 : vector<2x12xi1>, vector<2x12xf32>
    %cst_89 = arith.constant dense<0xFF800000> : vector<2xf32>
    %259 = vector.multi_reduction <maximumf>, %258, %cst_89 [1] : vector<2x12xf32> to vector<2xf32>
    %260 = vector.shape_cast %259 : vector<2xf32> to vector<2x1xf32>
    %cst_90 = arith.constant 0.000000e+00 : f32
    %261 = vector.broadcast %cst_90 : f32 to vector<2x12xf32>
    %262 = arith.cmpf ogt, %6, %261 : vector<2x12xf32>
    %263 = vector.broadcast %260 : vector<2x1xf32> to vector<2x12xf32>
    %264 = arith.subf %254, %263 : vector<2x12xf32>
    %265 = math.exp %264 : vector<2x12xf32>
    %cst_91 = arith.constant 0.000000e+00 : f32
    %266 = vector.broadcast %cst_91 : f32 to vector<2x12xf32>
    %267 = arith.select %262, %265, %266 : vector<2x12xi1>, vector<2x12xf32>
    %cst_92 = arith.constant dense<0.000000e+00> : vector<2xf32>
    %268 = vector.multi_reduction <add>, %267, %cst_92 [1] : vector<2x12xf32> to vector<2xf32>
    %269 = vector.shape_cast %268 : vector<2xf32> to vector<2x1xf32>
    %cst_93 = arith.constant 1.000000e-30 : f32
    %270 = vector.broadcast %cst_93 : f32 to vector<2x1xf32>
    %271 = arith.maximumf %269, %270 : vector<2x1xf32>
    %272 = vector.broadcast %271 : vector<2x1xf32> to vector<2x12xf32>
    %273 = arith.divf %267, %272 : vector<2x12xf32>
    %cst_94 = arith.constant dense<0.000000e+00> : vector<2x64xf32>
    %274 = tpu.matmul %273, %0, %cst_94 {dimension_numbers = #tpu.dot_dimension_numbers<[1], [0], [0], [1], [0, 0, 1, 1], [], []>} : vector<2x12xf32>, vector<12x64xf32>, vector<2x64xf32> -> vector<2x64xf32>
    %c0_95 = arith.constant 0 : index
    %c0_96 = arith.constant 0 : index
    %275 = vector.load %arg8[%c0_95, %c0_96] : memref<128x256xf32, #tpu.memory_space<vmem>>, vector<128x256xf32>
    %276 = vector.extract_strided_slice %275 {offsets = [0, 0], sizes = [64, 256], strides = [1, 1]} : vector<128x256xf32> to vector<64x256xf32>
    %cst_97 = arith.constant dense<0.000000e+00> : vector<2x256xf32>
    %277 = tpu.matmul %253, %276, %cst_97 {dimension_numbers = #tpu.dot_dimension_numbers<[1], [0], [0], [1], [0, 0, 1, 1], [], []>} : vector<2x64xf32>, vector<64x256xf32>, vector<2x256xf32> -> vector<2x256xf32>
    %278 = vector.extract_strided_slice %275 {offsets = [64, 0], sizes = [64, 256], strides = [1, 1]} : vector<128x256xf32> to vector<64x256xf32>
    %cst_98 = arith.constant dense<0.000000e+00> : vector<2x256xf32>
    %279 = tpu.matmul %274, %278, %cst_98 {dimension_numbers = #tpu.dot_dimension_numbers<[1], [0], [0], [1], [0, 0, 1, 1], [], []>} : vector<2x64xf32>, vector<64x256xf32>, vector<2x256xf32> -> vector<2x256xf32>
    %280 = arith.addf %277, %279 : vector<2x256xf32>
    %c0_99 = arith.constant 0 : index
    %c0_100 = arith.constant 0 : index
    %281 = vector.load %arg9[%c0_99, %c0_100] : memref<1x256xf32, #tpu.memory_space<vmem>>, vector<1x256xf32>
    %282 = vector.broadcast %281 : vector<1x256xf32> to vector<2x256xf32>
    %283 = arith.addf %280, %282 : vector<2x256xf32>
    %cst_101 = arith.constant 0.000000e+00 : f32
    %284 = vector.broadcast %cst_101 : f32 to vector<2x256xf32>
    %285 = arith.maximumf %283, %284 : vector<2x256xf32>
    %c0_102 = arith.constant 0 : index
    %c0_103 = arith.constant 0 : index
    %286 = vector.load %arg10[%c0_102, %c0_103] : memref<256x3xf32, #tpu.memory_space<vmem>>, vector<256x3xf32>
    %cst_104 = arith.constant dense<0.000000e+00> : vector<2x3xf32>
    %287 = tpu.matmul %285, %286, %cst_104 {dimension_numbers = #tpu.dot_dimension_numbers<[1], [0], [0], [1], [0, 0, 1, 1], [], []>} : vector<2x256xf32>, vector<256x3xf32>, vector<2x3xf32> -> vector<2x3xf32>
    %c0_105 = arith.constant 0 : index
    %c0_106 = arith.constant 0 : index
    %288 = vector.load %arg11[%c0_105, %c0_106] : memref<1x3xf32, #tpu.memory_space<vmem>>, vector<1x3xf32>
    %289 = vector.broadcast %288 : vector<1x3xf32> to vector<2x3xf32>
    %290 = arith.addf %287, %289 : vector<2x3xf32>
    %c0_107 = arith.constant 0 : index
    %c0_108 = arith.constant 0 : index
    %291 = vector.load %arg12[%c0_107, %c0_108] : memref<2x3xf32, #tpu.memory_space<vmem>>, vector<2x3xf32>
    tpu.vector_store %arg12[%c0_107, %c0_108], %290 {strides = array<i32>} : memref<2x3xf32, #tpu.memory_space<vmem>>, vector<2x3xf32>,
    return
  }
}

</mosaic_0001>

<bundles_post_ra>
// kernel: gnn_forward.3
= control target key start
LH: loop header
LB: loop body
LE: loop exit
PB: predicated region body
PF: predicated region fallthrough
CT: control target
= control target key end

     0   :  { %12 = vsyncpa [#allocation3], 0  ;;  %s783_s24 = smov [#allocation2]   ;;  %s980_s0 = inlined_call_operand.vmem [shape: f32[24,4], index: 0, kind: input, shape index: {}]   ;;  %s981_s1 = inlined_call_operand.vmem [shape: f32[4,32], index: 1, kind: input, shape index: {}]   ;;  %s982_s2 = inlined_call_operand.vmem [shape: f32[1,32], index: 2, kind: input, shape index: {}]   ;;  %s983_s3 = inlined_call_operand.vmem [shape: f32[32,32], index: 3, kind: input, shape index: {}]   ;;  %s984_s4 = inlined_call_operand.vmem [shape: f32[1,32], index: 4, kind: input, shape index: {}]   ;;  %s985_s5 = inlined_call_operand.hbm [shape: f32[32,1024], index: 5, kind: input, shape index: {}]   ;;  %s986_s6 = inlined_call_operand.vmem [shape: f32[1,1024], index: 6, kind: input, shape index: {}]   ;;  %s987_s7 = inlined_call_operand.vmem [shape: f32[24,1024], index: 7, kind: output, shape index: {}]  }
   0x1   :  { %s28_s25 = sshll.u32 %s783_s24, 4  ;;  %s29_s25 = int_to_ptr.vmem [resolvable:$true] %s28_s25 }
   0x2   :  { %s769_s26 = scalar_lea.vmem %s29_s25, 4096  ;;  %p774_p1 = scmp.lt.s32.totalorder %s29_s25, %s29_s25 }
   0x3   :  { %p770_p0 = scmp.ne.s32.totalorder %s29_s25, %s769_s26  ;;  %p775_p2 = scmp.lt.s32.totalorder %s769_s26, %s769_s26 }
   0x5   :  { %p776_p3 = por %p775_p2, %p774_p1 }
   0x7   :  { %p777_p4 = pnand %p776_p3, %p770_p0 }
   0x9   :  { %780 = shalt.err (!%p777_p4)
}
   0xa   :  { %s784_s27 = smov 1024   ;;  %s785_s28 = smov 64  }
   0xb   :  { %34 = dma.hbm_to_vmem [thread:$0]  %s985_s5, 4096, %s29_s25, [#allocation3], %s784_s27, %s784_s27, %s785_s28  }
   0xc   :  { %781 = dma.done.wait [#allocation3], 4096  }
   0xd   :  { %782 = vsyncadd [#allocation3], 4294963200  ;;  %v786_v0 = vmov 0.0   ;;  %vm787_vm0 = vmmov 0   ;;  %vm61_vm1 = vcmask 1043456   ;;  %vm51_vm2 = vcmask 31744  }
   0xe   :  { %728 = vmatprep.subr.mxu0 %v786_v0  ;;  %730 = vmatprep.mubr.msk.f32.mxu0 %vm787_vm0, %v786_v0  ;;  %v43_v1 = vld [vmem:[%s981_s1] sm:$0xf]  ;;  %v151_v3 = vld [vmem:[%s983_s3 + $0x18] sm:$0xff]  ;;  %v41_v4 = vld [vmem:[%s980_s0 + $0x8] sm:$0xff]  ;;  %vm159_vm3 = vcmask 261120  }
   0xf   :  { %739 = vmatprep.subr.mxu1 %v786_v0  ;;  %747 = vmatprep.mubr.msk.f32.mxu1 %vm787_vm0, %v786_v0  ;;  %v40_v2 = vld [vmem:[%s980_s0] sm:$0xff]  ;;  %v42_v5 = vld [vmem:[%s980_s0 + $0x10] sm:$0xff]  ;;  %v149_v7 = vld [vmem:[%s983_s3 + $0x8] sm:$0xff] }
  0x10   :  { %729 = vmatpush3.msk.msra.mxu0 %vm61_vm1, %v43_v1  ;;  %740 = vmatpush3.msra.mxu1 %v151_v3  ;;  %v150_v6 = vld [vmem:[%s983_s3 + $0x10] sm:$0xff]  ;;  %v148_v8 = vld [vmem:[%s983_s3] sm:$0xff]  ;;  %v277_v9 = vld [vmem:[#allocation2 + $0xc8] sm:$0xff] }
  0x11   :  { %731 = vmatmul.mubr.msk.f32.vlgmr.msra.gmra.mxu0 %vm51_vm2, %v40_v2  ;;  %741 = vmatprep.subr.mxu1 %v786_v0  ;;  %v279_v10 = vld [vmem:[#allocation2 + $0xd8] sm:$0xff]  ;;  %v276_v11 = vld [vmem:[#allocation2 + $0xc0] sm:$0xff]  ;;  %v269_v12 = vld [vmem:[#allocation2 + $0x88] sm:$0xff] }
  0x12   :  { %733 = vmatprep.mubr.msk.f32.mxu0 %vm787_vm0, %v786_v0  ;;  %742 = vmatpush3.msra.mxu1 %v150_v6  ;;  %v268_v13 = vld [vmem:[#allocation2 + $0x80] sm:$0xff]  ;;  %v261_v14 = vld [vmem:[#allocation2 + $0x48] sm:$0xff]  ;;  %v278_v21 = vld [vmem:[#allocation2 + $0xd0] sm:$0xff] }
  0x13   :  { %743 = vmatprep.subr.mxu1 %v786_v0  ;;  %359 = vmatprep.subr.mxu0 %v277_v9  ;;  %v260_v15 = vld [vmem:[#allocation2 + $0x40] sm:$0xff]  ;;  %v271_v23 = vld [vmem:[#allocation2 + $0x98] sm:$0xff]  ;;  %v270_v25 = vld [vmem:[#allocation2 + $0x90] sm:$0xff] }
  0x14   :  { %744 = vmatpush3.msra.mxu1 %v149_v7  ;;  %360 = vmatpush1.msra.mxu0 %v276_v11  ;;  %v696_v16 = vld [vmem:[%s982_s2] ss:$0 sm:$0xff]  ;;  %v263_v27 = vld [vmem:[#allocation2 + $0x58] sm:$0xff]  ;;  %v262_v29 = vld [vmem:[#allocation2 + $0x50] sm:$0xff] }
  0x15   :  { %734 = vmatmul.mubr.msk.f32.gmra.mxu0 %vm51_vm2, %v41_v4  ;;  %745 = vmatprep.subr.mxu1 %v786_v0  ;;  %v253_v34 = vld [vmem:[#allocation2 + $0x8] sm:$0xff]  ;;  %v255_v35 = vld [vmem:[#allocation2 + $0x18] sm:$0xff]  ;;  %v252_v36 = vld [vmem:[#allocation2] sm:$0xff]  ;;  %v286_v4 = vlaneseq }
  0x16   :  { %736 = vmatprep.mubr.msk.f32.mxu0 %vm787_vm0, %v786_v0  ;;  %746 = vmatpush3.msra.mxu1 %v148_v8  ;;  %v254_v37 = vld [vmem:[#allocation2 + $0x10] sm:$0xff]  ;;  %v281_v38 = vld [vmem:[#allocation2 + $0xe8] sm:$0xff]  ;;  %v283_v39 = vld [vmem:[#allocation2 + $0xf8] sm:$0xff] }
  0x17   :  { %442 = vmatprep.subr.mxu1 %v279_v10  ;;  %361 = vmatprep.subr.mxu0 %v269_v12  ;;  %v701_v40 = vld [vmem:[%s984_s4] ss:$0 sm:$0xff]  ;;  %v282_v46 = vld [vmem:[#allocation2 + $0xf0] sm:$0xff]  ;;  %v273_v48 = vld [vmem:[#allocation2 + $0xa8] sm:$0xff] }
  0x18   :  { %362 = vmatpush1.msra.mxu0 %v268_v13  ;;  %v280_v45 = vld [vmem:[#allocation2 + $0xe0] sm:$0xff]  ;;  %v275_v49 = vld [vmem:[#allocation2 + $0xb8] sm:$0xff]  ;;  %v274_v53 = vld [vmem:[#allocation2 + $0xb0] sm:$0xff] }
  0x19   :  { %737 = vmatmul.mubr.msk.f32.gmra.mxu0 %vm51_vm2, %v42_v5  ;;  %363 = vmatprep.subr.mxu0 %v261_v14  ;;  %v272_v52 = vld [vmem:[#allocation2 + $0xa0] sm:$0xff]  ;;  %v265_v56 = vld [vmem:[#allocation2 + $0x68] sm:$0xff]  ;;  %v267_v57 = vld [vmem:[#allocation2 + $0x78] sm:$0xff]  ;;  %v287_v5 = vshrl.u32 %v286_v4, 7 }
  0x1a   :  { %399 = vmatprep.mubr.f32.mxu0 %v786_v0  ;;  %364 = vmatpush1.msra.mxu0 %v260_v15  ;;  %v264_v59 = vld [vmem:[#allocation2 + $0x60] sm:$0xff]  ;;  %v266_v60 = vld [vmem:[#allocation2 + $0x70] sm:$0xff]  ;;  %v257_v63 = vld [vmem:[#allocation2 + $0x28] sm:$0xff] }
  0x1b   :  { %365 = vmatprep.subr.mxu0 %v253_v34  ;;  %v259_v1 = vld [vmem:[#allocation2 + $0x38] sm:$0xff]  ;;  %v256_v2 = vld [vmem:[#allocation2 + $0x20] sm:$0xff]  ;;  %v258_v3 = vld [vmem:[#allocation2 + $0x30] sm:$0xff]  ;;  %v288_v6 = vsub.s32 0, %v287_v5  ;;  %v296_v7 = vsub.s32 2, %v287_v5  ;;  %v292_v9 = vsub.s32 1, %v287_v5 }
  0x1c   :  { %366 = vmatpush1.msra.mxu0 %v252_v36  ;;  %v284_v8 = vld [vmem:[%s986_s6] sm:$0xff]  ;;  %v300_v10 = vsub.s32 3, %v287_v5 }
  0x1d   :  { %525 = vmatprep.subr.mxu0 %v281_v38  ;;  %v289_v11 = vrot.slane %v284_v8, %v288_v6  ;;  %v297_v12 = vrot.slane %v284_v8, %v296_v7  ;;  %v293_v13 = vrot.slane %v284_v8, %v292_v9 }
  0x1e   :  { %v301_v14 = vrot.slane %v284_v8, %v300_v10 }
  0xd1   :  { %v131_v17 = vpop.f32.mrf.mxu0 }
  0xd2   :  { %v132_v18 = vadd.f32 %v696_v16, %v131_v17 }
  0xd3   :  { %v732_v19 = vpop.f32.mrf.mxu0 }
  0xd4   :  { %v145_v20 = vmax.f32 %v132_v18, 0.0 }
  0xd5   :  { %v136_v22 = vpop.f32.mrf.mxu0 }
  0xd6   :  { %v137_v24 = vadd.f32 %v696_v16, %v136_v22  ;;  %748 = vmatmul.mubr.msk.f32.vlgmr.msra.gmra.mxu1 %vm159_vm3, %v145_v20 }
  0xd7   :  { %v735_v26 = vpop.f32.mrf.mxu0  ;;  %750 = vmatprep.mubr.msk.f32.mxu1 %vm787_vm0, %v786_v0  ;;  %443 = vmatpush1.msra.mxu1 %v278_v21 }
  0xd8   :  { %v146_v28 = vmax.f32 %v137_v24, 0.0  ;;  %444 = vmatprep.subr.mxu1 %v271_v23  ;;  %v304_v26 = vsub.s32 4, %v287_v5 }
  0xd9   :  { %v141_v30 = vpop.f32.mrf.mxu0  ;;  %445 = vmatpush1.msra.mxu1 %v270_v25 }
  0xda   :  { %v142_v31 = vadd.f32 %v696_v16, %v141_v30  ;;  %751 = vmatmul.mubr.msk.f32.gmra.mxu1 %vm159_vm3, %v146_v28  ;;  %446 = vmatprep.subr.mxu1 %v263_v27  ;;  %v312_v27 = vsub.s32 6, %v287_v5  ;;  %v305_v38 = vrot.slane %v284_v8, %v304_v26 }
  0xdb   :  { %v738_v32 = vpop.f32.mrf.mxu0  ;;  %753 = vmatprep.mubr.msk.f32.mxu1 %vm787_vm0, %v786_v0  ;;  %447 = vmatpush1.msra.mxu1 %v262_v29 }
  0xdc   :  { %v147_v33 = vmax.f32 %v142_v31, 0.0  ;;  %448 = vmatprep.subr.mxu1 %v255_v35  ;;  %v308_v32 = vsub.s32 5, %v287_v5 }
  0xdd   :  { %449 = vmatpush1.msra.mxu1 %v254_v37 }
  0xde   :  { %754 = vmatmul.mubr.msk.f32.gmra.mxu1 %vm159_vm3, %v147_v33  ;;  %608 = vmatprep.subr.mxu1 %v283_v39  ;;  %v316_v33 = vsub.s32 7, %v287_v5  ;;  %v313_v39 = vrot.slane %v284_v8, %v312_v27 }
  0xdf   :  { %482 = vmatprep.mubr.f32.mxu1 %v786_v0 }
 0x196   :  { %v235_v41 = vpop.f32.mrf.mxu1 }
 0x197   :  { %v236_v42 = vadd.f32 %v701_v40, %v235_v41 }
 0x198   :  { %v749_v43 = vpop.f32.mrf.mxu1 }
 0x199   :  { %v249_v44 = vmax.f32 %v236_v42, 0.0 }
 0x19a   :  { %v240_v47 = vpop.f32.mrf.mxu1 }
 0x19b   :  { %v241_v50 = vadd.f32 %v701_v40, %v240_v47  ;;  %705 = vmatmul.mubr.msk.f32.vlgmr.msra.gmra.mxu0 %vm159_vm3, %v249_v44  ;;  %708 = vmatmul.mubr.msk.f32.vlgmr.msra.gmra.mxu1 %vm159_vm3, %v249_v44 }
 0x19c   :  { %526 = vmatpush1.msra.mxu0 %v280_v45  ;;  %609 = vmatpush1.msra.mxu1 %v282_v46  ;;  %v752_v51 = vpop.f32.mrf.mxu1  ;;  %v317_v45 = vrot.slane %v284_v8, %v316_v33 }
 0x19d   :  { %v250_v54 = vmax.f32 %v241_v50, 0.0  ;;  %527 = vmatprep.subr.mxu0 %v273_v48  ;;  %610 = vmatprep.subr.mxu1 %v275_v49 }
 0x19e   :  { %v245_v55 = vpop.f32.mrf.mxu1  ;;  %405 = vmatprep.mubr.f32.mxu0 %v786_v0  ;;  %488 = vmatprep.mubr.f32.mxu1 %v786_v0 }
 0x19f   :  { %v246_v58 = vadd.f32 %v701_v40, %v245_v55  ;;  %528 = vmatpush1.msra.mxu0 %v272_v52  ;;  %611 = vmatpush1.msra.mxu1 %v274_v53 }
 0x1a0   :  { %706 = vmatmul.mubr.msk.f32.gmra.mxu0 %vm159_vm3, %v250_v54  ;;  %709 = vmatmul.mubr.msk.f32.gmra.mxu1 %vm159_vm3, %v250_v54  ;;  %v755_v61 = vpop.f32.mrf.mxu1 }
 0x1a1   :  { %v251_v62 = vmax.f32 %v246_v58, 0.0  ;;  %529 = vmatprep.subr.mxu0 %v265_v56  ;;  %612 = vmatprep.subr.mxu1 %v267_v57 }
 0x1a2   :  { %530 = vmatpush1.msra.mxu0 %v264_v59  ;;  %613 = vmatpush1.msra.mxu1 %v266_v60 }
 0x1a3   :  { %411 = vmatprep.mubr.f32.mxu0 %v786_v0  ;;  %494 = vmatprep.mubr.f32.mxu1 %v786_v0 }
 0x1a4   :  { %707 = vmatmul.mubr.msk.f32.gmra.mxu0 %vm159_vm3, %v251_v62  ;;  %710 = vmatmul.mubr.msk.f32.gmra.mxu1 %vm159_vm3, %v251_v62 }
 0x1a5   :  { %531 = vmatprep.subr.mxu0 %v257_v63  ;;  %614 = vmatprep.subr.mxu1 %v259_v1 }
 0x1a6   :  { %532 = vmatpush1.msra.mxu0 %v256_v2  ;;  %615 = vmatpush1.msra.mxu1 %v258_v3 }
 0x1a7   :  { %565 = vmatprep.mubr.f32.mxu0 %v786_v0  ;;  %648 = vmatprep.mubr.f32.mxu1 %v786_v0 }
 0x1a8   :  { %711 = vmatmul.mubr.msk.f32.vlgmr.msra.gmra.mxu0 %vm159_vm3, %v249_v44  ;;  %714 = vmatmul.mubr.msk.f32.vlgmr.msra.gmra.mxu1 %vm159_vm3, %v249_v44  ;;  %v309_v44 = vrot.slane %v284_v8, %v308_v32 }
 0x1a9   :  { %571 = vmatprep.mubr.f32.mxu0 %v786_v0  ;;  %654 = vmatprep.mubr.f32.mxu1 %v786_v0 }
 0x1ac   :  { %712 = vmatmul.mubr.msk.f32.gmra.mxu0 %vm159_vm3, %v250_v54  ;;  %715 = vmatmul.mubr.msk.f32.gmra.mxu1 %vm159_vm3, %v250_v54 }
 0x1ad   :  { %577 = vmatprep.mubr.f32.mxu0 %v786_v0  ;;  %660 = vmatprep.mubr.f32.mxu1 %v786_v0 }
 0x1b0   :  { %713 = vmatmul.mubr.msk.f32.gmra.mxu0 %vm159_vm3, %v251_v62  ;;  %716 = vmatmul.mubr.msk.f32.gmra.mxu1 %vm159_vm3, %v251_v62 }
 0x25b   :  { %v401_v15 = vpop.f32.mrf.mxu0  ;;  %v484_v0 = vpop.f32.mrf.mxu1 }
 0x25c   :  { %v402_v16 = vadd.f32 %v401_v15, %v289_v11  ;;  %v485_v17 = vadd.f32 %v484_v0, %v297_v12 }
 0x25d   :  { %v403_v18 = vpop.f32.mrf.mxu0  ;;  %v486_v19 = vpop.f32.mrf.mxu1 }
 0x25e   :  { %667 = vst [vmem:[%s987_s7] sm:$0xff] %v402_v16  ;;  %669 = vst [vmem:[%s987_s7 + $0x10] sm:$0xff] %v485_v17  ;;  %v404_v20 = vadd.f32 %v403_v18, %v293_v13  ;;  %v487_v21 = vadd.f32 %v486_v19, %v301_v14 }
 0x260   :  { %668 = vst [vmem:[%s987_s7 + $0x8] sm:$0xff] %v404_v20  ;;  %670 = vst [vmem:[%s987_s7 + $0x18] sm:$0xff] %v487_v21  ;;  %v407_v22 = vpop.f32.mrf.mxu0  ;;  %v490_v23 = vpop.f32.mrf.mxu1 }
 0x261   :  { %v408_v24 = vadd.f32 %v407_v22, %v289_v11  ;;  %v491_v25 = vadd.f32 %v490_v23, %v297_v12 }
 0x262   :  { %v409_v28 = vpop.f32.mrf.mxu0  ;;  %v492_v29 = vpop.f32.mrf.mxu1 }
 0x263   :  { %675 = vst [vmem:[%s987_s7 + $0x40] sm:$0xff] %v408_v24  ;;  %677 = vst [vmem:[%s987_s7 + $0x50] sm:$0xff] %v491_v25  ;;  %v410_v30 = vadd.f32 %v409_v28, %v293_v13  ;;  %v493_v31 = vadd.f32 %v492_v29, %v301_v14 }
 0x264   :  { %v413_v34 = vpop.f32.mrf.mxu0  ;;  %v496_v35 = vpop.f32.mrf.mxu1 }
 0x265   :  { %676 = vst [vmem:[%s987_s7 + $0x48] sm:$0xff] %v410_v30  ;;  %678 = vst [vmem:[%s987_s7 + $0x58] sm:$0xff] %v493_v31  ;;  %v414_v36 = vadd.f32 %v413_v34, %v289_v11  ;;  %v497_v37 = vadd.f32 %v496_v35, %v297_v12 }
 0x266   :  { %v415_v40 = vpop.f32.mrf.mxu0  ;;  %v498_v41 = vpop.f32.mrf.mxu1 }
 0x267   :  { %683 = vst [vmem:[%s987_s7 + $0x80] sm:$0xff] %v414_v36  ;;  %685 = vst [vmem:[%s987_s7 + $0x90] sm:$0xff] %v497_v37  ;;  %v416_v42 = vadd.f32 %v415_v40, %v293_v13  ;;  %v499_v43 = vadd.f32 %v498_v41, %v301_v14 }
 0x268   :  { %v567_v46 = vpop.f32.mrf.mxu0  ;;  %v650_v47 = vpop.f32.mrf.mxu1 }
 0x269   :  { %684 = vst [vmem:[%s987_s7 + $0x88] sm:$0xff] %v416_v42  ;;  %686 = vst [vmem:[%s987_s7 + $0x98] sm:$0xff] %v499_v43  ;;  %v568_v48 = vadd.f32 %v567_v46, %v305_v38  ;;  %v651_v49 = vadd.f32 %v650_v47, %v313_v39 }
 0x26a   :  { %v569_v50 = vpop.f32.mrf.mxu0  ;;  %v652_v51 = vpop.f32.mrf.mxu1 }
 0x26b   :  { %671 = vst [vmem:[%s987_s7 + $0x20] sm:$0xff] %v568_v48  ;;  %673 = vst [vmem:[%s987_s7 + $0x30] sm:$0xff] %v651_v49  ;;  %v570_v52 = vadd.f32 %v569_v50, %v309_v44  ;;  %v653_v53 = vadd.f32 %v652_v51, %v317_v45 }
 0x26c   :  { %v573_v54 = vpop.f32.mrf.mxu0  ;;  %v656_v55 = vpop.f32.mrf.mxu1 }
 0x26d   :  { %672 = vst [vmem:[%s987_s7 + $0x28] sm:$0xff] %v570_v52  ;;  %674 = vst [vmem:[%s987_s7 + $0x38] sm:$0xff] %v653_v53  ;;  %v574_v56 = vadd.f32 %v573_v54, %v305_v38  ;;  %v657_v57 = vadd.f32 %v656_v55, %v313_v39 }
 0x26e   :  { %v575_v58 = vpop.f32.mrf.mxu0  ;;  %v658_v59 = vpop.f32.mrf.mxu1 }
 0x26f   :  { %679 = vst [vmem:[%s987_s7 + $0x60] sm:$0xff] %v574_v56  ;;  %681 = vst [vmem:[%s987_s7 + $0x70] sm:$0xff] %v657_v57  ;;  %v576_v60 = vadd.f32 %v575_v58, %v309_v44  ;;  %v659_v61 = vadd.f32 %v658_v59, %v317_v45 }
 0x270   :  { %v579_v62 = vpop.f32.mrf.mxu0  ;;  %v662_v63 = vpop.f32.mrf.mxu1 }
 0x271   :  { %680 = vst [vmem:[%s987_s7 + $0x68] sm:$0xff] %v576_v60  ;;  %682 = vst [vmem:[%s987_s7 + $0x78] sm:$0xff] %v659_v61  ;;  %v580_v1 = vadd.f32 %v579_v62, %v305_v38  ;;  %v663_v2 = vadd.f32 %v662_v63, %v313_v39 }
 0x272   :  { %v581_v3 = vpop.f32.mrf.mxu0  ;;  %v664_v4 = vpop.f32.mrf.mxu1 }
 0x273   :  { %687 = vst [vmem:[%s987_s7 + $0xa0] sm:$0xff] %v580_v1  ;;  %689 = vst [vmem:[%s987_s7 + $0xb0] sm:$0xff] %v663_v2  ;;  %v582_v5 = vadd.f32 %v581_v3, %v309_v44  ;;  %v665_v6 = vadd.f32 %v664_v4, %v317_v45 }
 0x275   :  { %688 = vst [vmem:[%s987_s7 + $0xa8] sm:$0xff] %v582_v5  ;;  %690 = vst [vmem:[%s987_s7 + $0xb8] sm:$0xff] %v665_v6 }
 0x276   :  { %695 = vsyncpa [#allocation3], 1 }

// kernel: gnn_forward.4
= control target key start
LH: loop header
LB: loop body
LE: loop exit
PB: predicated region body
PF: predicated region fallthrough
CT: control target
= control target key end

     0   :  { %v4704_v0 = vmov 0   ;;  %vm102_vm0 = vcmask 1043456   ;;  %v4706_v5 = vmov 0.0   ;;  %vm2963_vm1 = vmmov 0   ;;  %s2995_s14 = smov 64   ;;  %s2996_s17 = smov 32   ;;  %s4630_s2 = inlined_call_operand.vmem [shape: s32[24,1], index: 2, kind: input, shape index: {}]   ;;  %s4631_s0 = inlined_call_operand.vmem [shape: f32[12,32], index: 0, kind: input, shape index: {}]   ;;  %s4632_s3 = inlined_call_operand.vmem [shape: s32[1,24], index: 3, kind: input, shape index: {}]   ;;  %s4633_s6 = inlined_call_operand.vmem [shape: f32[32,96], index: 6, kind: input, shape index: {}]   ;;  %s4634_s4 = inlined_call_operand.vmem [shape: f32[32,24,32], index: 4, kind: input, shape index: {}]   ;;  %s4635_s5 = inlined_call_operand.vmem [shape: f32[32,96], index: 5, kind: input, shape index: {}]   ;;  %s4636_s8 = inlined_call_operand.vmem [shape: f32[1,96], index: 8, kind: input, shape index: {}]   ;;  %s4637_s7 = inlined_call_operand.vmem [shape: f32[1,96], index: 7, kind: input, shape index: {}]   ;;  %s4638_s9 = inlined_call_operand.vmem [shape: f32[32,64], index: 9, kind: input, shape index: {}]   ;;  %s4639_s10 = inlined_call_operand.vmem [shape: f32[8,64], index: 10, kind: input, shape index: {}]   ;;  %s4640_s1 = inlined_call_operand.vmem [shape: f32[12,8], index: 1, kind: input, shape index: {}]   ;;  %s4641_s11 = inlined_call_operand.vmem [shape: f32[1,64], index: 11, kind: input, shape index: {}]   ;;  %s4642_s12 = inlined_call_operand.vmem [shape: f32[12,64], index: 12, kind: output, shape index: {}]  }
   0x1   :  { %2674 = vset.pattern.permute.xlu0 %v4704_v0  ;;  %v47_v1 = vld [vmem:[%s4630_s2] sm:$0xff]  ;;  %2675 = vset.pattern.permute.xlu1 %v4704_v0  ;;  %v49_v2 = vld [vmem:[%s4630_s2 + $0x10] sm:$0xff]  ;;  %v3074_v3 = vld [vmem:[%s4631_s0 + $0x8] sm:$0xf]  ;;  %v4695_v7 = vmov 2   ;;  %v45_v8 = vlaneseq  ;;  %vm92_vm2 = vcmask 97280  }
   0x2   :  { %51 = vperm.xlu0 %2674, %v47_v1   ;;  %57 = vperm.xlu1 %2675, %v49_v2   ;;  %v48_v4 = vld [vmem:[%s4630_s2 + $0x8] sm:$0xff]  ;;  %v3083_v6 = vld [vmem:[%s4631_s0] sm:$0xff]  ;;  %v4698_v19 = vmov 1   ;;  %v4696_v22 = vmov 3   ;;  %v4691_v24 = vmov 4   ;;  %v4689_v25 = vmov 5  }
   0x3   :  { %2533 = vmatprep.subr.mxu0 %v4706_v5  ;;  %2537 = vmatprep.mubr.msk.f32.mxu0 %vm2963_vm1, %v4706_v5  ;;  %v46_v9 = vand.u32 127, %v45_v8  ;;  %v4685_v26 = vmov 6   ;;  %v4683_v27 = vmov 7   ;;  %v4681_v28 = vmov 8   ;;  %s2997_s20 = smov 96  }
   0x4   :  { %2534 = vmatpush3.msk.msra.mxu0 %vm102_vm0, %v3074_v3  ;;  %v4677_v29 = vmov 9   ;;  %v4675_v30 = vmov 10   ;;  %v4671_v31 = vmov 11   ;;  %v4669_v32 = vmov 12  }
   0x5   :  { %2535 = vmatprep.subr.mxu0 %v4706_v5  ;;  %v4665_v33 = vmov 13   ;;  %v4663_v34 = vmov 14   ;;  %v4659_v35 = vmov 15   ;;  %v4657_v36 = vmov 16  }
   0x6   :  { %54 = vperm.xlu0 %2674, %v48_v4   ;;  %2536 = vmatpush3.msra.mxu0 %v3083_v6  ;;  %v4655_v37 = vmov 17   ;;  %v4653_v38 = vmov 18   ;;  %v4649_v39 = vmov 19   ;;  %v4643_v40 = vmov 20  }
   0x7   :  { %v4645_v41 = vmov 21   ;;  %v4647_v42 = vmov 22   ;;  %v4651_v43 = vmov 23   ;;  %v4661_v44 = vmov 24  }
   0x8   :  { %v4667_v46 = vmov 25   ;;  %v4673_v48 = vmov 26   ;;  %v4679_v50 = vmov 27   ;;  %v4687_v52 = vmov 28  }
   0x9   :  { %v4693_v54 = vmov 29   ;;  %v4700_v56 = vmov 30   ;;  %v4702_v58 = vmov 31   ;;  %vm892_vm8 = vcmask 195584  }
   0xa   :  { %2677 = vset.pattern.permute.xlu0 %v4695_v7  ;;  %vm980_vm9 = vcmask 261120   ;;  %vm2166_vm10 = vcmask 64512   ;;  %vm2344_vm11 = vcmask 519168   ;;  %vm2342_vm12 = vcmask 523264  }
  0x7d   :  { %v52_v10 = vpop.permute.xlu0 %51  ;;  %v58_v12 = vpop.permute.xlu1 %57 }
  0x7e   :  { %vm59_vm3 = vcmp.eq.s32.totalorder %v46_v9, %v52_v10  ;;  %vm61_vm5 = vcmp.eq.s32.totalorder %v46_v9, %v58_v12 }
  0x7f   :  { %v3094_v11 = vsel %vm59_vm3, 1.0, %v4706_v5  ;;  %v3106_v15 = vsel %vm61_vm5, 1.0, %v4706_v5 }
  0x80   :  { %4721 = vst [vmem:[#allocation2_spill] sm:$0xff] %v3094_v11  ;;  %2538 = vmatmul.mubr.msk.f32.vlgmr.msra.gmra.mxu0 %vm92_vm2, %v3094_v11  ;;  %4723 = vst [vmem:[#allocation4_spill] sm:$0xff] %v3106_v15 }
  0x81   :  { %v55_v13 = vpop.permute.xlu0 %54  ;;  %2540 = vmatprep.mubr.msk.f32.mxu0 %vm2963_vm1, %v4706_v5 }
  0x82   :  { %vm60_vm4 = vcmp.eq.s32.totalorder %v46_v9, %v55_v13 }
  0x83   :  { %v3101_v14 = vsel %vm60_vm4, 1.0, %v4706_v5 }
  0x84   :  { %4722 = vst [vmem:[#allocation3_spill] sm:$0xff] %v3101_v14  ;;  %2541 = vmatmul.mubr.msk.f32.gmra.mxu0 %vm92_vm2, %v3101_v14 }
  0x85   :  { %2543 = vmatprep.mubr.msk.f32.mxu0 %vm2963_vm1, %v4706_v5 }
  0x88   :  { %2544 = vmatmul.mubr.msk.f32.gmra.mxu0 %vm92_vm2, %v3106_v15  ;;  %v3444_v15 = vld [vmem:[%s4633_s6] sm:$0xff] }
  0x89   :  { %2574 = vmatprep.mubr.msk.f32.mxu0 %vm980_vm9, %v3083_v6  ;;  %4738 = vst [vmem:[#allocation19_spill] sm:$0xff] %v3444_v15 }
 0x140   :  { %v3112_v16 = vpop.f32.mrf.mxu0 }
 0x141   :  { %237 = vperm.xlu0 %2677, %v3112_v16   ;;  %191 = vperm.xlu1 %2675, %v3112_v16  }
 0x142   :  { %v2539_v17 = vpop.f32.mrf.mxu0 }
 0x144   :  { %v3116_v18 = vpop.f32.mrf.mxu0 }
 0x145   :  { %2676 = vset.pattern.permute.xlu1 %v4698_v19  ;;  %241 = vperm.xlu0 %2677, %v3116_v18  }
 0x146   :  { %215 = vperm.xlu1 %2676, %v3112_v16   ;;  %v2542_v20 = vpop.f32.mrf.mxu0 }
 0x148   :  { %v3121_v21 = vpop.f32.mrf.mxu0 }
 0x149   :  { %2723 = vset.pattern.permute.xlu0 %v4698_v19 }
 0x14a   :  { %2678 = vset.pattern.permute.xlu1 %v4696_v22  ;;  %223 = vperm.xlu0 %2723, %v3121_v21   ;;  %v2545_v23 = vpop.f32.mrf.mxu0 }
 0x14b   :  { %259 = vperm.xlu1 %2678, %v3112_v16  }
 0x14e   :  { %2724 = vset.pattern.permute.xlu0 %v4695_v7 }
 0x14f   :  { %2679 = vset.pattern.permute.xlu1 %v4691_v24  ;;  %245 = vperm.xlu0 %2724, %v3121_v21  }
 0x150   :  { %281 = vperm.xlu1 %2679, %v3112_v16  }
 0x153   :  { %2734 = vset.pattern.permute.xlu0 %v4691_v24 }
 0x154   :  { %2680 = vset.pattern.permute.xlu1 %v4689_v25  ;;  %289 = vperm.xlu0 %2734, %v3121_v21  }
 0x155   :  { %303 = vperm.xlu1 %2680, %v3112_v16  }
 0x158   :  { %2735 = vset.pattern.permute.xlu0 %v4689_v25 }
 0x159   :  { %2681 = vset.pattern.permute.xlu1 %v4685_v26  ;;  %311 = vperm.xlu0 %2735, %v3121_v21  }
 0x15a   :  { %325 = vperm.xlu1 %2681, %v3112_v16  }
 0x15d   :  { %2736 = vset.pattern.permute.xlu0 %v4685_v26 }
 0x15e   :  { %2682 = vset.pattern.permute.xlu1 %v4683_v27  ;;  %333 = vperm.xlu0 %2736, %v3121_v21  }
 0x15f   :  { %347 = vperm.xlu1 %2682, %v3112_v16  }
 0x162   :  { %2737 = vset.pattern.permute.xlu0 %v4683_v27 }
 0x163   :  { %2683 = vset.pattern.permute.xlu1 %v4681_v28  ;;  %355 = vperm.xlu0 %2737, %v3121_v21  }
 0x164   :  { %369 = vperm.xlu1 %2683, %v3112_v16  }
 0x167   :  { %2738 = vset.pattern.permute.xlu0 %v4681_v28 }
 0x168   :  { %2684 = vset.pattern.permute.xlu1 %v4677_v29  ;;  %377 = vperm.xlu0 %2738, %v3121_v21  }
 0x169   :  { %391 = vperm.xlu1 %2684, %v3112_v16  }
 0x16c   :  { %2739 = vset.pattern.permute.xlu0 %v4677_v29 }
 0x16d   :  { %2685 = vset.pattern.permute.xlu1 %v4675_v30  ;;  %399 = vperm.xlu0 %2739, %v3121_v21  }
 0x16e   :  { %413 = vperm.xlu1 %2685, %v3112_v16  }
 0x171   :  { %2740 = vset.pattern.permute.xlu0 %v4675_v30 }
 0x172   :  { %2686 = vset.pattern.permute.xlu1 %v4671_v31  ;;  %421 = vperm.xlu0 %2740, %v3121_v21  }
 0x173   :  { %435 = vperm.xlu1 %2686, %v3112_v16  }
 0x176   :  { %2741 = vset.pattern.permute.xlu0 %v4671_v31 }
 0x177   :  { %2687 = vset.pattern.permute.xlu1 %v4669_v32  ;;  %443 = vperm.xlu0 %2741, %v3121_v21  }
 0x178   :  { %457 = vperm.xlu1 %2687, %v3112_v16  }
 0x17b   :  { %2742 = vset.pattern.permute.xlu0 %v4669_v32 }
 0x17c   :  { %2688 = vset.pattern.permute.xlu1 %v4665_v33  ;;  %465 = vperm.xlu0 %2742, %v3121_v21  }
 0x17d   :  { %479 = vperm.xlu1 %2688, %v3112_v16  }
 0x180   :  { %2743 = vset.pattern.permute.xlu0 %v4665_v33 }
 0x181   :  { %2689 = vset.pattern.permute.xlu1 %v4663_v34  ;;  %487 = vperm.xlu0 %2743, %v3121_v21  }
 0x182   :  { %501 = vperm.xlu1 %2689, %v3112_v16  }
 0x185   :  { %2744 = vset.pattern.permute.xlu0 %v4663_v34 }
 0x186   :  { %2690 = vset.pattern.permute.xlu1 %v4659_v35  ;;  %509 = vperm.xlu0 %2744, %v3121_v21  }
 0x187   :  { %523 = vperm.xlu1 %2690, %v3112_v16  }
 0x18a   :  { %2745 = vset.pattern.permute.xlu0 %v4659_v35 }
 0x18b   :  { %2691 = vset.pattern.permute.xlu1 %v4657_v36  ;;  %531 = vperm.xlu0 %2745, %v3121_v21  }
 0x18c   :  { %545 = vperm.xlu1 %2691, %v3112_v16  }
 0x18f   :  { %2746 = vset.pattern.permute.xlu0 %v4657_v36 }
 0x190   :  { %2692 = vset.pattern.permute.xlu1 %v4655_v37  ;;  %553 = vperm.xlu0 %2746, %v3121_v21  }
 0x191   :  { %567 = vperm.xlu1 %2692, %v3112_v16  }
 0x194   :  { %2747 = vset.pattern.permute.xlu0 %v4655_v37 }
 0x195   :  { %2693 = vset.pattern.permute.xlu1 %v4653_v38  ;;  %575 = vperm.xlu0 %2747, %v3121_v21  }
 0x196   :  { %589 = vperm.xlu1 %2693, %v3112_v16  }
 0x199   :  { %2748 = vset.pattern.permute.xlu0 %v4653_v38 }
 0x19a   :  { %2694 = vset.pattern.permute.xlu1 %v4649_v39  ;;  %597 = vperm.xlu0 %2748, %v3121_v21  }
 0x19b   :  { %611 = vperm.xlu1 %2694, %v3112_v16  }
 0x19e   :  { %2749 = vset.pattern.permute.xlu0 %v4649_v39 }
 0x19f   :  { %2695 = vset.pattern.permute.xlu1 %v4643_v40  ;;  %619 = vperm.xlu0 %2749, %v3121_v21  }
 0x1a0   :  { %633 = vperm.xlu1 %2695, %v3112_v16  }
 0x1a3   :  { %2750 = vset.pattern.permute.xlu0 %v4643_v40 }
 0x1a4   :  { %2696 = vset.pattern.permute.xlu1 %v4645_v41  ;;  %641 = vperm.xlu0 %2750, %v3121_v21  }
 0x1a5   :  { %655 = vperm.xlu1 %2696, %v3112_v16  }
 0x1a8   :  { %2751 = vset.pattern.permute.xlu0 %v4645_v41 }
 0x1a9   :  { %2697 = vset.pattern.permute.xlu1 %v4647_v42  ;;  %663 = vperm.xlu0 %2751, %v3121_v21  }
 0x1aa   :  { %677 = vperm.xlu1 %2697, %v3112_v16  }
 0x1ad   :  { %2752 = vset.pattern.permute.xlu0 %v4647_v42 }
 0x1ae   :  { %2698 = vset.pattern.permute.xlu1 %v4651_v43  ;;  %685 = vperm.xlu0 %2752, %v3121_v21  }
 0x1af   :  { %699 = vperm.xlu1 %2698, %v3112_v16  }
 0x1b2   :  { %2753 = vset.pattern.permute.xlu0 %v4651_v43 }
 0x1b3   :  { %2699 = vset.pattern.permute.xlu1 %v4704_v0  ;;  %707 = vperm.xlu0 %2753, %v3121_v21  }
 0x1b4   :  { %196 = vperm.xlu1 %2699, %v3116_v18  }
 0x1b7   :  { %2754 = vset.pattern.permute.xlu0 %v4661_v44 }
 0x1b8   :  { %2700 = vset.pattern.permute.xlu1 %v4698_v19  ;;  %729 = vperm.xlu0 %2754, %v3121_v21  }
 0x1b9   :  { %219 = vperm.xlu1 %2700, %v3116_v18  }
 0x1bc   :  { %v3215_v45 = vpop.permute.xlu1 %191  ;;  %2755 = vset.pattern.permute.xlu0 %v4667_v46 }
 0x1bd   :  { %2701 = vset.pattern.permute.xlu1 %v4696_v22  ;;  %751 = vperm.xlu0 %2755, %v3121_v21  }
 0x1be   :  { %263 = vperm.xlu1 %2701, %v3116_v18  }
 0x1c1   :  { %v3221_v47 = vpop.permute.xlu1 %215  ;;  %2756 = vset.pattern.permute.xlu0 %v4673_v48 }
 0x1c2   :  { %2702 = vset.pattern.permute.xlu1 %v4691_v24  ;;  %773 = vperm.xlu0 %2756, %v3121_v21  }
 0x1c3   :  { %285 = vperm.xlu1 %2702, %v3116_v18  }
 0x1c6   :  { %v3227_v49 = vpop.permute.xlu1 %259  ;;  %2757 = vset.pattern.permute.xlu0 %v4679_v50 }
 0x1c7   :  { %2703 = vset.pattern.permute.xlu1 %v4689_v25  ;;  %795 = vperm.xlu0 %2757, %v3121_v21  }
 0x1c8   :  { %307 = vperm.xlu1 %2703, %v3116_v18  }
 0x1cb   :  { %v3233_v51 = vpop.permute.xlu1 %281  ;;  %2758 = vset.pattern.permute.xlu0 %v4687_v52 }
 0x1cc   :  { %2704 = vset.pattern.permute.xlu1 %v4685_v26  ;;  %817 = vperm.xlu0 %2758, %v3121_v21  }
 0x1cd   :  { %329 = vperm.xlu1 %2704, %v3116_v18  }
 0x1d0   :  { %v3239_v53 = vpop.permute.xlu1 %303  ;;  %2759 = vset.pattern.permute.xlu0 %v4693_v54 }
 0x1d1   :  { %2705 = vset.pattern.permute.xlu1 %v4683_v27  ;;  %839 = vperm.xlu0 %2759, %v3121_v21  }
 0x1d2   :  { %351 = vperm.xlu1 %2705, %v3116_v18  }
 0x1d5   :  { %v3245_v55 = vpop.permute.xlu1 %325  ;;  %2760 = vset.pattern.permute.xlu0 %v4700_v56 }
 0x1d6   :  { %2706 = vset.pattern.permute.xlu1 %v4681_v28  ;;  %861 = vperm.xlu0 %2760, %v3121_v21  }
 0x1d7   :  { %373 = vperm.xlu1 %2706, %v3116_v18  }
 0x1da   :  { %v3251_v57 = vpop.permute.xlu1 %347  ;;  %2761 = vset.pattern.permute.xlu0 %v4702_v58 }
 0x1db   :  { %2707 = vset.pattern.permute.xlu1 %v4677_v29  ;;  %883 = vperm.xlu0 %2761, %v3121_v21  }
 0x1dc   :  { %395 = vperm.xlu1 %2707, %v3116_v18  }
 0x1df   :  { %v3257_v59 = vpop.permute.xlu1 %369  ;;  %875 = vperm.xlu0 %2761, %v3112_v16  }
 0x1e0   :  { %2708 = vset.pattern.permute.xlu1 %v4675_v30 }
 0x1e1   :  { %417 = vperm.xlu1 %2708, %v3116_v18  }
 0x1e3   :  { %2764 = vset.pattern.permute.xlu0 %v4695_v7  ;;  %v69_v7 = vshrl.u32 %v45_v8, 7 }
 0x1e4   :  { %v3263_v60 = vpop.permute.xlu1 %391 }
 0x1e5   :  { %2709 = vset.pattern.permute.xlu1 %v4671_v31  ;;  %v3401_v19 = vadd.s32 8, %v69_v7 }
 0x1e6   :  { %439 = vperm.xlu1 %2709, %v3116_v18  }
 0x1e7   :  { %4733 = vst [vmem:[#allocation14_spill] sm:$0xff] %v3401_v19 }
 0x1e9   :  { %v3267_v61 = vpop.permute.xlu1 %413 }
 0x1ea   :  { %2710 = vset.pattern.permute.xlu1 %v4669_v32 }
 0x1eb   :  { %461 = vperm.xlu1 %2710, %v3116_v18  }
 0x1ee   :  { %v3271_v62 = vpop.permute.xlu1 %435 }
 0x1ef   :  { %2711 = vset.pattern.permute.xlu1 %v4665_v33 }
 0x1f0   :  { %483 = vperm.xlu1 %2711, %v3116_v18  }
 0x1f3   :  { %v3275_v63 = vpop.permute.xlu1 %457 }
 0x1f4   :  { %2712 = vset.pattern.permute.xlu1 %v4663_v34 }
 0x1f5   :  { %505 = vperm.xlu1 %2712, %v3116_v18  }
 0x1f8   :  { %v3279_v1 = vpop.permute.xlu1 %479 }
 0x1f9   :  { %2713 = vset.pattern.permute.xlu1 %v4659_v35 }
 0x1fa   :  { %527 = vperm.xlu1 %2713, %v3116_v18  }
 0x1fd   :  { %v3283_v2 = vpop.permute.xlu1 %501 }
 0x1fe   :  { %2714 = vset.pattern.permute.xlu1 %v4657_v36 }
 0x1ff   :  { %549 = vperm.xlu1 %2714, %v3116_v18  }
 0x202   :  { %v3287_v4 = vpop.permute.xlu1 %523 }
 0x203   :  { %4724 = vst [vmem:[#allocation5_spill] sm:$0xff] %v3287_v4  ;;  %2715 = vset.pattern.permute.xlu1 %v4655_v37 }
 0x204   :  { %571 = vperm.xlu1 %2715, %v3116_v18  }
 0x207   :  { %v3291_v9 = vpop.permute.xlu1 %545 }
 0x208   :  { %4725 = vst [vmem:[#allocation6_spill] sm:$0xff] %v3291_v9  ;;  %2716 = vset.pattern.permute.xlu1 %v4653_v38  ;;  %v2360_v9 = vld [vmem:[%s4634_s4 + $0x18] sm:$0xff] }
 0x209   :  { %593 = vperm.xlu1 %2716, %v3116_v18  }
 0x20c   :  { %v3295_v10 = vpop.permute.xlu1 %567 }
 0x20d   :  { %4726 = vst [vmem:[#allocation7_spill] sm:$0xff] %v3295_v10  ;;  %2717 = vset.pattern.permute.xlu1 %v4649_v39  ;;  %v2368_v10 = vld [vmem:[%s4634_s4 + $0x58] sm:$0xff] }
 0x20e   :  { %615 = vperm.xlu1 %2717, %v3116_v18  }
 0x211   :  { %v3299_v12 = vpop.permute.xlu1 %589 }
 0x212   :  { %4727 = vst [vmem:[#allocation8_spill] sm:$0xff] %v3299_v12  ;;  %2718 = vset.pattern.permute.xlu1 %v4643_v40  ;;  %v3317_v40 = vpop.permute.xlu0 %237 }
 0x213   :  { %637 = vperm.xlu1 %2718, %v3116_v18  }
 0x216   :  { %v3303_v13 = vpop.permute.xlu1 %611 }
 0x217   :  { %4728 = vst [vmem:[#allocation9_spill] sm:$0xff] %v3303_v13  ;;  %2719 = vset.pattern.permute.xlu1 %v4645_v41 }
 0x218   :  { %659 = vperm.xlu1 %2719, %v3116_v18  }
 0x21b   :  { %v3307_v17 = vpop.permute.xlu1 %633 }
 0x21c   :  { %4729 = vst [vmem:[#allocation10_spill] sm:$0xff] %v3307_v17  ;;  %2720 = vset.pattern.permute.xlu1 %v4647_v42  ;;  %v3324_v42 = vpop.permute.xlu0 %241  ;;  %v2362_v17 = vld [vmem:[%s4634_s4 + $0x28] sm:$0xff] }
 0x21d   :  { %681 = vperm.xlu1 %2720, %v3116_v18  }
 0x220   :  { %v3311_v20 = vpop.permute.xlu1 %655 }
 0x221   :  { %4730 = vst [vmem:[#allocation11_spill] sm:$0xff] %v3311_v20  ;;  %2721 = vset.pattern.permute.xlu1 %v4651_v43  ;;  %v3329_v43 = vpop.permute.xlu0 %223 }
 0x222   :  { %703 = vperm.xlu1 %2721, %v3116_v18  }
 0x225   :  { %v3315_v23 = vpop.permute.xlu1 %677  ;;  %v3336_v37 = vpop.permute.xlu0 %245 }
 0x226   :  { %4731 = vst [vmem:[#allocation12_spill] sm:$0xff] %v3315_v23  ;;  %2722 = vset.pattern.permute.xlu1 %v4704_v0 }
 0x227   :  { %201 = vperm.xlu1 %2722, %v3121_v21  }
 0x22a   :  { %v3321_v41 = vpop.permute.xlu1 %699 }
 0x22b   :  { %4732 = vst [vmem:[#allocation13_spill] sm:$0xff] %v3321_v41  ;;  %2725 = vset.pattern.permute.xlu1 %v4696_v22 }
 0x22c   :  { %267 = vperm.xlu1 %2725, %v3121_v21   ;;  %v3342_v21 = vpop.permute.xlu0 %289 }
 0x22f   :  { %v3327_v39 = vpop.permute.xlu1 %196 }
 0x230   :  { %2726 = vset.pattern.permute.xlu1 %v4661_v44  ;;  %v3347_v44 = vpop.permute.xlu0 %311 }
 0x231   :  { %725 = vperm.xlu1 %2726, %v3116_v18  }
 0x234   :  { %v3333_v38 = vpop.permute.xlu1 %219  ;;  %v3354_v33 = vpop.permute.xlu0 %333 }
 0x235   :  { %721 = vperm.xlu1 %2726, %v3112_v16  }
 0x238   :  { %v3362_v31 = vpop.permute.xlu0 %355 }
 0x239   :  { %v3338_v36 = vpop.permute.xlu1 %263  ;;  %2727 = vset.pattern.permute.xlu1 %v4667_v46 }
 0x23a   :  { %747 = vperm.xlu1 %2727, %v3116_v18  }
 0x23c   :  { %v3367_v30 = vpop.permute.xlu0 %377 }
 0x23e   :  { %v3344_v35 = vpop.permute.xlu1 %285  ;;  %743 = vperm.xlu1 %2727, %v3112_v16  }
 0x242   :  { %2728 = vset.pattern.permute.xlu1 %v4673_v48 }
 0x243   :  { %v3350_v34 = vpop.permute.xlu1 %307  ;;  %769 = vperm.xlu1 %2728, %v3116_v18  }
 0x247   :  { %765 = vperm.xlu1 %2728, %v3112_v16  }
 0x248   :  { %v3356_v46 = vpop.permute.xlu1 %329 }
 0x24b   :  { %2729 = vset.pattern.permute.xlu1 %v4679_v50  ;;  %v3374_v50 = vpop.permute.xlu0 %399 }
 0x24c   :  { %791 = vperm.xlu1 %2729, %v3116_v18  }
 0x24d   :  { %v3360_v32 = vpop.permute.xlu1 %351 }
 0x24f   :  { %v3380_v27 = vpop.permute.xlu0 %421 }
 0x250   :  { %787 = vperm.xlu1 %2729, %v3112_v16  }
 0x252   :  { %v3365_v48 = vpop.permute.xlu1 %373 }
 0x254   :  { %2730 = vset.pattern.permute.xlu1 %v4687_v52  ;;  %v3385_v52 = vpop.permute.xlu0 %443 }
 0x255   :  { %813 = vperm.xlu1 %2730, %v3116_v18  }
 0x257   :  { %v3371_v29 = vpop.permute.xlu1 %395 }
 0x259   :  { %809 = vperm.xlu1 %2730, %v3112_v16  }
 0x25c   :  { %v3376_v28 = vpop.permute.xlu1 %417 }
 0x25d   :  { %2731 = vset.pattern.permute.xlu1 %v4693_v54  ;;  %v3394_v54 = vpop.permute.xlu0 %465 }
 0x25e   :  { %835 = vperm.xlu1 %2731, %v3116_v18  }
 0x261   :  { %v3382_v26 = vpop.permute.xlu1 %439 }
 0x262   :  { %831 = vperm.xlu1 %2731, %v3112_v16  }
 0x266   :  { %v3387_v25 = vpop.permute.xlu1 %461  ;;  %2732 = vset.pattern.permute.xlu1 %v4700_v56  ;;  %v3406_v56 = vld [vmem:[%s4632_s3] ss:$0 sm:$0xff] }
 0x267   :  { %857 = vperm.xlu1 %2732, %v3116_v18   ;;  %4734 = vst [vmem:[#allocation15_spill] sm:$0xff] %v3406_v56  ;;  %vm76_vm6 = vcmp.eq.s32.totalorder %v69_v7, %v3406_v56  ;;  %vm77_vm7 = vcmp.eq.s32.totalorder %v3401_v19, %v3406_v56  ;;  %v3426_v7 = vld [vmem:[%s4633_s6 + $0x10] sm:$0xff] }
 0x268   :  { %v2354_v8 = vsel %vm76_vm6, 1.0, %v4706_v5  ;;  %4736 = vst [vmem:[#allocation17_spill] sm:$0xff] %v3426_v7 }
 0x269   :  { %2552 = vmatprep.mubr.msk.f32.mxu1 %vm892_vm8, %v2354_v8 }
 0x26b   :  { %v3391_v24 = vpop.permute.xlu1 %483  ;;  %853 = vperm.xlu1 %2732, %v3112_v16   ;;  %v3409_v16 = vpop.permute.xlu0 %487 }
 0x26f   :  { %2733 = vset.pattern.permute.xlu1 %v4702_v58  ;;  %v3421_v58 = vld [vmem:[%s4633_s6 + $0x18] sm:$0xff]  ;;  %v3437_v5 = vpop.permute.xlu0 %509 }
 0x270   :  { %v3398_v22 = vpop.permute.xlu1 %505  ;;  %879 = vperm.xlu1 %2733, %v3116_v18   ;;  %4735 = vst [vmem:[#allocation16_spill] sm:$0xff] %v3421_v58  ;;  %2566 = vmatprep.subr.mxu0 %v3421_v58 }
 0x271   :  { %2567 = vmatpush3.msra.mxu0 %v3421_v58 }
 0x272   :  { %2568 = vmatprep.subr.mxu0 %v3426_v7 }
 0x273   :  { %2569 = vmatpush3.msra.mxu0 %v3426_v7  ;;  %v3452_v14 = vpop.permute.xlu0 %531 }
 0x274   :  { %2762 = vset.pattern.permute.xlu1 %v4704_v0  ;;  %v3435_v0 = vld [vmem:[%s4633_s6 + $0x8] sm:$0xff] }
 0x275   :  { %v3416_v18 = vpop.permute.xlu1 %527  ;;  %4737 = vst [vmem:[#allocation18_spill] sm:$0xff] %v3435_v0  ;;  %2570 = vmatprep.subr.mxu0 %v3435_v0 }
 0x276   :  { %2571 = vmatpush3.msra.mxu0 %v3435_v0 }
 0x277   :  { %2572 = vmatprep.subr.mxu0 %v3444_v15  ;;  %v3459_v58 = vpop.permute.xlu0 %553 }
 0x278   :  { %2573 = vmatpush3.msra.mxu0 %v3444_v15 }
 0x279   :  { %2575 = vmatmul.mubr.msk.f32.vlgmr.msra.gmra.mxu0 %vm980_vm9, %v3074_v3 }
 0x27a   :  { %v3446_v6 = vpop.permute.xlu1 %549  ;;  %2596 = vmatprep.mubr.msk.f32.mxu0 %vm892_vm8, %v2354_v8 }
 0x27b   :  { %4739 = vst [vmem:[#allocation20_spill] sm:$0xff] %v3446_v6  ;;  %v3465_v0 = vpop.permute.xlu0 %575 }
 0x27f   :  { %v3456_v7 = vpop.permute.xlu1 %571  ;;  %v3469_v15 = vpop.permute.xlu0 %597 }
 0x280   :  { %4740 = vst [vmem:[#allocation21_spill] sm:$0xff] %v3456_v7  ;;  %v2361_v7 = vld [vmem:[%s4634_s4 + $0x20] sm:$0xff] }
 0x283   :  { %v3473_v23 = vpop.permute.xlu0 %619 }
 0x284   :  { %v3461_v11 = vpop.permute.xlu1 %593 }
 0x285   :  { %4741 = vst [vmem:[#allocation22_spill] sm:$0xff] %v3461_v11 }
 0x287   :  { %v3477_v20 = vpop.permute.xlu0 %641 }
 0x288   :  { %4746 = vst [vmem:[#allocation27_spill] sm:$0xff] %v3477_v20  ;;  %v2364_v20 = vld [vmem:[%s4634_s4 + $0x38] sm:$0xff] }
 0x289   :  { %v3463_v56 = vpop.permute.xlu1 %615 }
 0x28a   :  { %4742 = vst [vmem:[#allocation23_spill] sm:$0xff] %v3463_v56 }
 0x28b   :  { %v3490_v13 = vpop.permute.xlu0 %663 }
 0x28c   :  { %4748 = vst [vmem:[#allocation29_spill] sm:$0xff] %v3490_v13  ;;  %v227_v13 = vmul.f32 %v2361_v7, %v3333_v38 }
 0x28e   :  { %v3467_v19 = vpop.permute.xlu1 %637 }
 0x28f   :  { %4743 = vst [vmem:[#allocation24_spill] sm:$0xff] %v3467_v19  ;;  %v188_v19 = vld [vmem:[%s4634_s4 + $0x10] sm:$0xff] }
 0x293   :  { %v3471_v41 = vpop.permute.xlu1 %659 }
 0x294   :  { %4744 = vst [vmem:[#allocation25_spill] sm:$0xff] %v3471_v41  ;;  %v2365_v41 = vld [vmem:[%s4634_s4 + $0x40] sm:$0xff] }
 0x298   :  { %v3475_v3 = vpop.permute.xlu1 %681 }
 0x299   :  { %4745 = vst [vmem:[#allocation26_spill] sm:$0xff] %v3475_v3  ;;  %v228_v3 = vmul.f32 %v2362_v17, %v3329_v43  ;;  %v2371_v43 = vld [vmem:[%s4634_s4 + $0x70] sm:$0xff]  ;;  %v186_v17 = vld [vmem:[%s4634_s4] sm:$0xff] }
 0x29d   :  { %v3479_v8 = vpop.permute.xlu1 %703 }
 0x29e   :  { %4747 = vst [vmem:[#allocation28_spill] sm:$0xff] %v3479_v8  ;;  %v250_v8 = vmul.f32 %v2365_v41, %v3336_v37  ;;  %v187_v37 = vld [vmem:[%s4634_s4 + $0x8] sm:$0xff]  ;;  %v3509_v41 = vpop.permute.xlu0 %685 }
 0x29f   :  { %4749 = vst [vmem:[#allocation30_spill] sm:$0xff] %v3509_v41  ;;  %v2377_v41 = vld [vmem:[%s4634_s4 + $0xa0] sm:$0xff] }
 0x2a2   :  { %v202_v56 = vpop.permute.xlu1 %201 }
 0x2a3   :  { %v206_v12 = vmul.f32 %v202_v56, %v188_v19 }
 0x2a5   :  { %v231_v11 = vadd.f32 %v228_v3, %v206_v12  ;;  %v2374_v3 = vld [vmem:[%s4634_s4 + $0x88] sm:$0xff] }
 0x2a6   :  { %v316_v4 = vmul.f32 %v2374_v3, %v3347_v44  ;;  %v2367_v44 = vld [vmem:[%s4634_s4 + $0x50] sm:$0xff] }
 0x2a7   :  { %v253_v19 = vadd.f32 %v250_v8, %v231_v11  ;;  %v268_v56 = vpop.permute.xlu1 %267  ;;  %v226_v11 = vmul.f32 %v2360_v9, %v3221_v47  ;;  %v294_v8 = vmul.f32 %v2371_v43, %v3342_v21  ;;  %v2363_v47 = vld [vmem:[%s4634_s4 + $0x30] sm:$0xff]  ;;  %v2380_v9 = vld [vmem:[%s4634_s4 + $0xb8] sm:$0xff]  ;;  %v3538_v43 = vpop.permute.xlu0 %707 }
 0x2a8   :  { %v272_v12 = vmul.f32 %v2368_v10, %v268_v56  ;;  %v205_v10 = vmul.f32 %v3327_v39, %v187_v37  ;;  %v204_v56 = vmul.f32 %v3215_v45, %v186_v17  ;;  %v338_v45 = vmul.f32 %v2377_v41, %v3354_v33  ;;  %v2366_v37 = vld [vmem:[%s4634_s4 + $0x48] sm:$0xff] }
 0x2a9   :  { %v360_v33 = vmul.f32 %v2380_v9, %v3362_v31  ;;  %v2370_v41 = vld [vmem:[%s4634_s4 + $0x68] sm:$0xff]  ;;  %v270_v31 = vmul.f32 %v2366_v37, %v3227_v49 }
 0x2aa   :  { %v275_v6 = vadd.f32 %v272_v12, %v253_v19  ;;  %v230_v39 = vadd.f32 %v227_v13, %v205_v10  ;;  %v229_v21 = vadd.f32 %v226_v11, %v204_v56  ;;  %v249_v19 = vmul.f32 %v2364_v20, %v3324_v42  ;;  %v2383_v13 = vld [vmem:[%s4634_s4 + $0xd0] sm:$0xff]  ;;  %v2369_v42 = vld [vmem:[%s4634_s4 + $0x60] sm:$0xff]  ;;  %v2386_v20 = vld [vmem:[%s4634_s4 + $0xe8] sm:$0xff] }
 0x2ab   :  { %v248_v12 = vmul.f32 %v2363_v47, %v3317_v40  ;;  %v271_v40 = vmul.f32 %v2367_v44, %v3338_v36  ;;  %v2373_v10 = vld [vmem:[%s4634_s4 + $0x80] sm:$0xff]  ;;  %v293_v36 = vmul.f32 %v2370_v41, %v3344_v35  ;;  %v292_v9 = vmul.f32 %v2369_v42, %v3233_v51  ;;  %v2392_v44 = vld [vmem:[%s4634_s4 + $0x118] sm:$0xff] }
 0x2ac   :  { %v297_v38 = vadd.f32 %v294_v8, %v275_v6  ;;  %v3529_v7 = vpop.permute.xlu1 %725  ;;  %v252_v3 = vadd.f32 %v249_v19, %v230_v39  ;;  %v382_v8 = vmul.f32 %v2383_v13, %v3367_v30  ;;  %v2389_v47 = vld [vmem:[%s4634_s4 + $0x100] sm:$0xff]  ;;  %v404_v49 = vmul.f32 %v2386_v20, %v3374_v50  ;;  %v3578_v30 = vpop.permute.xlu0 %729  ;;  %v2376_v39 = vld [vmem:[%s4634_s4 + $0x98] sm:$0xff]  ;;  %v2379_v13 = vld [vmem:[%s4634_s4 + $0xb0] sm:$0xff] }
 0x2ad   :  { %v251_v11 = vadd.f32 %v248_v12, %v229_v21  ;;  %v315_v51 = vmul.f32 %v2373_v10, %v3350_v34  ;;  %v426_v37 = vmul.f32 %v2389_v47, %v3380_v27  ;;  %v2395_v34 = vld [vmem:[%s4634_s4 + $0x130] sm:$0xff]  ;;  %v448_v27 = vmul.f32 %v2392_v44, %v3385_v52  ;;  %v2382_v20 = vld [vmem:[%s4634_s4 + $0xc8] sm:$0xff] }
 0x2ae   :  { %v319_v6 = vadd.f32 %v316_v4, %v297_v38  ;;  %v2372_v38 = vld [vmem:[%s4634_s4 + $0x78] sm:$0xff]  ;;  %v274_v35 = vadd.f32 %v271_v40, %v252_v3  ;;  %v2381_v40 = vld [vmem:[%s4634_s4 + $0xc0] sm:$0xff]  ;;  %v470_v10 = vmul.f32 %v2395_v34, %v3394_v54  ;;  %v3642_v44 = vld [vmem:[%s4634_s4 + $0xf0] sm:$0xff] }
 0x2af   :  { %v273_v50 = vadd.f32 %v270_v31, %v251_v11  ;;  %v314_v19 = vmul.f32 %v2372_v38, %v3239_v53  ;;  %v2398_v11 = vld [vmem:[%s4634_s4 + $0x148] sm:$0xff]  ;;  %v2385_v38 = vld [vmem:[%s4634_s4 + $0xe0] sm:$0xff]  ;;  %v424_v34 = vmul.f32 %v3642_v44, %v3267_v61 }
 0x2b0   :  { %v341_v17 = vadd.f32 %v338_v45, %v319_v6  ;;  %v3555_v4 = vpop.permute.xlu1 %721  ;;  %v2375_v45 = vld [vmem:[%s4634_s4 + $0x90] sm:$0xff]  ;;  %v296_v41 = vadd.f32 %v293_v36, %v274_v35  ;;  %v3628_v36 = vld [vmem:[%s4634_s4 + $0xd8] sm:$0xff] }
 0x2b1   :  { %v295_v42 = vadd.f32 %v292_v9, %v273_v50  ;;  %v336_v53 = vmul.f32 %v2375_v45, %v3245_v55  ;;  %v2404_v35 = vld [vmem:[%s4634_s4 + $0x178] sm:$0xff] }
 0x2b2   :  { %v363_v56 = vadd.f32 %v360_v33, %v341_v17  ;;  %v2378_v33 = vld [vmem:[%s4634_s4 + $0xa8] sm:$0xff]  ;;  %v337_v17 = vmul.f32 %v2376_v39, %v3356_v46  ;;  %v318_v31 = vadd.f32 %v315_v51, %v296_v41  ;;  %v359_v46 = vmul.f32 %v2379_v13, %v3360_v32  ;;  %v2401_v32 = vld [vmem:[%s4634_s4 + $0x160] sm:$0xff] }
 0x2b3   :  { %v317_v55 = vadd.f32 %v314_v19, %v295_v42  ;;  %v358_v52 = vmul.f32 %v2378_v33, %v3251_v57  ;;  %v381_v57 = vmul.f32 %v2382_v20, %v3365_v48  ;;  %v492_v39 = vmul.f32 %v2398_v11, %v3409_v16  ;;  %v2391_v19 = vld [vmem:[%s4634_s4 + $0x110] sm:$0xff]  ;;  %v2394_v42 = vld [vmem:[%s4634_s4 + $0x128] sm:$0xff]  ;;  %v2397_v11 = vld [vmem:[%s4634_s4 + $0x140] sm:$0xff] }
 0x2b4   :  { %v385_v21 = vadd.f32 %v382_v8, %v363_v56  ;;  %v3620_v56 = vpop.permute.xlu0 %751  ;;  %v340_v9 = vadd.f32 %v337_v17, %v318_v31  ;;  %v403_v51 = vmul.f32 %v2385_v38, %v3371_v29  ;;  %v402_v16 = vmul.f32 %v3628_v36, %v3263_v60  ;;  %v2407_v29 = vld [vmem:[%s4634_s4 + $0x190] sm:$0xff] }
 0x2b5   :  { %v3590_v6 = vpop.permute.xlu1 %747  ;;  %v339_v54 = vadd.f32 %v336_v53, %v317_v55  ;;  %v514_v50 = vmul.f32 %v2401_v32, %v3437_v5  ;;  %v536_v41 = vmul.f32 %v2404_v35, %v3452_v14  ;;  %v447_v61 = vmul.f32 %v2391_v19, %v3382_v26  ;;  %v3693_v55 = vld [vmem:[%s4634_s4 + $0x138] sm:$0xff]  ;;  %v2413_v26 = vld [vmem:[%s4634_s4 + $0x1c0] sm:$0xff]  ;;  %v3725_v35 = vld [vmem:[%s4634_s4 + $0x168] sm:$0xff] }
 0x2b6   :  { %v407_v12 = vadd.f32 %v404_v49, %v385_v21  ;;  %v380_v49 = vmul.f32 %v2381_v40, %v3257_v59  ;;  %v2388_v21 = vld [vmem:[%s4634_s4 + $0xf8] sm:$0xff]  ;;  %v362_v48 = vadd.f32 %v359_v46, %v340_v9  ;;  %v558_v40 = vmul.f32 %v2407_v29, %v3459_v58  ;;  %v3708_v9 = vld [vmem:[%s4634_s4 + $0x150] sm:$0xff] }
 0x2b7   :  { %v361_v59 = vadd.f32 %v358_v52, %v339_v54  ;;  %v425_v60 = vmul.f32 %v2388_v21, %v3376_v28  ;;  %v2410_v28 = vld [vmem:[%s4634_s4 + $0x1a8] sm:$0xff]  ;;  %v491_v54 = vmul.f32 %v2397_v11, %v3391_v24  ;;  %v2403_v21 = vld [vmem:[%s4634_s4 + $0x170] sm:$0xff] }
 0x2b8   :  { %v429_v3 = vadd.f32 %v426_v37, %v407_v12  ;;  %v3659_v12 = vld [vmem:[%s4634_s4 + $0x108] sm:$0xff]  ;;  %v384_v33 = vadd.f32 %v381_v57, %v362_v48  ;;  %v3668_v17 = vpop.permute.xlu0 %773  ;;  %v580_v38 = vmul.f32 %v2410_v28, %v3465_v0  ;;  %v490_v0 = vmul.f32 %v3693_v55, %v3279_v1  ;;  %v2419_v24 = vld [vmem:[%s4634_s4 + $0x1f0] sm:$0xff] }
 0x2b9   :  { %v3616_v8 = vpop.permute.xlu1 %743  ;;  %v383_v5 = vadd.f32 %v380_v49, %v361_v59  ;;  %v602_v49 = vmul.f32 %v2413_v26, %v3469_v15  ;;  %v512_v59 = vmul.f32 %v3708_v9, %v3283_v2 }
 0x2ba   :  { %v451_v47 = vadd.f32 %v448_v27, %v429_v3  ;;  %v3676_v27 = vld [vmem:[%s4634_s4 + $0x120] sm:$0xff]  ;;  %v406_v20 = vadd.f32 %v403_v51, %v384_v33  ;;  %v446_v3 = vmul.f32 %v3659_v12, %v3271_v62  ;;  %v469_v62 = vmul.f32 %v2394_v42, %v3387_v25  ;;  %v2416_v25 = vld [vmem:[%s4634_s4 + $0x1d8] sm:$0xff] }
 0x2bb   :  { %v405_v14 = vadd.f32 %v402_v16, %v383_v5  ;;  %v624_v16 = vmul.f32 %v2416_v25, %v3473_v23  ;;  %v535_v33 = vmul.f32 %v2403_v21, %v3416_v18  ;;  %v4751_v5 = vld [vmem:[#allocation27_spill] sm:$0xff]  ;;  %v2425_v18 = vld [vmem:[%s4634_s4 + $0x220] sm:$0xff]  ;;  %v2415_v21 = vld [vmem:[%s4634_s4 + $0x1d0] sm:$0xff] }
 0x2bc   :  { %v473_v45 = vadd.f32 %v470_v10, %v451_v47  ;;  %v428_v52 = vadd.f32 %v425_v60, %v406_v20  ;;  %v468_v10 = vmul.f32 %v3676_v27, %v3275_v63  ;;  %v2400_v47 = vld [vmem:[%s4634_s4 + $0x158] sm:$0xff]  ;;  %v4752_v20 = vld [vmem:[#allocation20_spill] sm:$0xff] }
 0x2bd   :  { %v427_v58 = vadd.f32 %v424_v34, %v405_v14  ;;  %v513_v1 = vmul.f32 %v2400_v47, %v3398_v22  ;;  %v2422_v22 = vld [vmem:[%s4634_s4 + $0x208] sm:$0xff]  ;;  %v4750_v60 = vld [vmem:[#allocation5_spill] sm:$0xff]  ;;  %v646_v34 = vmul.f32 %v2419_v24, %v4751_v5 }
 0x2be   :  { %v495_v37 = vadd.f32 %v492_v39, %v473_v45  ;;  %v3654_v13 = vpop.permute.xlu1 %769  ;;  %v450_v57 = vadd.f32 %v447_v61, %v428_v52  ;;  %v3717_v39 = vpop.permute.xlu0 %795  ;;  %v534_v23 = vmul.f32 %v3725_v35, %v4750_v60  ;;  %v3791_v24 = vld [vmem:[%s4634_s4 + $0x1c8] sm:$0xff]  ;;  %v3808_v60 = vld [vmem:[%s4634_s4 + $0x1e0] sm:$0xff] }
 0x2bf   :  { %v449_v63 = vadd.f32 %v446_v3, %v427_v58 }
 0x2c0   :  { %v517_v53 = vadd.f32 %v514_v50, %v495_v37  ;;  %v472_v48 = vadd.f32 %v469_v62, %v450_v57  ;;  %v2406_v50 = vld [vmem:[%s4634_s4 + $0x188] sm:$0xff]  ;;  %v3742_v37 = vld [vmem:[%s4634_s4 + $0x180] sm:$0xff]  ;;  %v2412_v62 = vld [vmem:[%s4634_s4 + $0x1b8] sm:$0xff] }
 0x2c1   :  { %v471_v51 = vadd.f32 %v468_v10, %v449_v63  ;;  %v557_v61 = vmul.f32 %v2406_v50, %v4752_v20  ;;  %v3776_v10 = vld [vmem:[%s4634_s4 + $0x1b0] sm:$0xff] }
 0x2c2   :  { %v539_v31 = vadd.f32 %v536_v41, %v517_v53  ;;  %v3688_v46 = vpop.permute.xlu1 %765  ;;  %v494_v29 = vadd.f32 %v491_v54, %v472_v48  ;;  %v2409_v41 = vld [vmem:[%s4634_s4 + $0x1a0] sm:$0xff]  ;;  %v3757_v53 = vld [vmem:[%s4634_s4 + $0x198] sm:$0xff]  ;;  %v3768_v52 = vpop.permute.xlu0 %817  ;;  %v4756_v54 = vld [vmem:[#allocation7_spill] sm:$0xff] }
 0x2c3   :  { %v493_v2 = vadd.f32 %v490_v0, %v471_v51  ;;  %v578_v63 = vmul.f32 %v3757_v53, %v4756_v54  ;;  %v4757_v0 = vld [vmem:[#allocation30_spill] sm:$0xff]  ;;  %v2431_v48 = vld [vmem:[%s4634_s4 + $0x250] sm:$0xff] }
 0x2c4   :  { %v561_v32 = vadd.f32 %v558_v40, %v539_v31  ;;  %v516_v28 = vadd.f32 %v513_v1, %v494_v29  ;;  %v4753_v40 = vld [vmem:[#allocation6_spill] sm:$0xff]  ;;  %v4754_v31 = vld [vmem:[#allocation29_spill] sm:$0xff]  ;;  %v4759_v50 = vld [vmem:[#allocation8_spill] sm:$0xff] }
 0x2c5   :  { %v515_v3 = vadd.f32 %v512_v59, %v493_v2  ;;  %v556_v11 = vmul.f32 %v3742_v37, %v4753_v40  ;;  %v668_v26 = vmul.f32 %v2422_v22, %v4754_v31  ;;  %v4758_v51 = vld [vmem:[#allocation22_spill] sm:$0xff]  ;;  %v2418_v29 = vld [vmem:[%s4634_s4 + $0x1e8] sm:$0xff]  ;;  %v3823_v40 = vld [vmem:[%s4634_s4 + $0x1f8] sm:$0xff] }
 0x2c6   :  { %v583_v45 = vadd.f32 %v580_v38, %v561_v32  ;;  %v2428_v38 = vld [vmem:[%s4634_s4 + $0x238] sm:$0xff]  ;;  %v538_v47 = vadd.f32 %v535_v33, %v516_v28  ;;  %v601_v59 = vmul.f32 %v2412_v62, %v4758_v51  ;;  %v734_v28 = vmul.f32 %v2431_v48, %v3578_v30  ;;  %v840_v20 = vpop.permute.xlu0 %839  ;;  %v4763_v30 = vld [vmem:[#allocation10_spill] sm:$0xff]  ;;  %v3840_v54 = vld [vmem:[%s4634_s4 + $0x210] sm:$0xff] }
 0x2c7   :  { %v3731_v15 = vpop.permute.xlu1 %791  ;;  %v4755_v32 = vld [vmem:[#allocation21_spill] sm:$0xff]  ;;  %v537_v57 = vadd.f32 %v534_v23, %v515_v3  ;;  %v712_v22 = vmul.f32 %v2428_v38, %v3538_v43  ;;  %v2434_v23 = vld [vmem:[%s4634_s4 + $0x268] sm:$0xff]  ;;  %v644_v38 = vmul.f32 %v3808_v60, %v4763_v30  ;;  %v2427_v51 = vld [vmem:[%s4634_s4 + $0x230] sm:$0xff] }
 0x2c8   :  { %v605_v19 = vadd.f32 %v602_v49, %v583_v45  ;;  %v579_v25 = vmul.f32 %v2409_v41, %v4755_v32  ;;  %v690_v49 = vmul.f32 %v2425_v18, %v4757_v0  ;;  %v560_v1 = vadd.f32 %v557_v61, %v538_v47  ;;  %v2421_v61 = vld [vmem:[%s4634_s4 + $0x200] sm:$0xff]  ;;  %v2424_v32 = vld [vmem:[%s4634_s4 + $0x218] sm:$0xff] }
 0x2c9   :  { %v756_v47 = vmul.f32 %v2434_v23, %v3620_v56  ;;  %v4767_v23 = vld [vmem:[#allocation12_spill] sm:$0xff] }
 0x2ca   :  { %v627_v42 = vadd.f32 %v624_v16, %v605_v19  ;;  %v559_v16 = vadd.f32 %v556_v11, %v537_v57  ;;  %v600_v19 = vmul.f32 %v3776_v10, %v4759_v50  ;;  %v582_v5 = vadd.f32 %v579_v25, %v560_v1  ;;  %v2437_v11 = vld [vmem:[%s4634_s4 + $0x280] sm:$0xff]  ;;  %v2443_v50 = vld [vmem:[%s4634_s4 + $0x2b0] sm:$0xff] }
 0x2cb   :  { %v3763_v14 = vpop.permute.xlu1 %787  ;;  %v778_v1 = vmul.f32 %v2437_v11, %v3668_v17  ;;  %v688_v17 = vmul.f32 %v3840_v54, %v4767_v23 }
 0x2cc   :  { %v649_v58 = vadd.f32 %v646_v34, %v627_v42  ;;  %v4760_v34 = vld [vmem:[#allocation23_spill] sm:$0xff]  ;;  %v581_v43 = vadd.f32 %v578_v63, %v559_v16  ;;  %v4761_v42 = vld [vmem:[#allocation9_spill] sm:$0xff]  ;;  %v604_v31 = vadd.f32 %v601_v59, %v582_v5 }
 0x2cd   :  { %v623_v41 = vmul.f32 %v2415_v21, %v4760_v34  ;;  %v622_v18 = vmul.f32 %v3791_v24, %v4761_v42  ;;  %v2440_v63 = vld [vmem:[%s4634_s4 + $0x298] sm:$0xff]  ;;  %v3855_v16 = vld [vmem:[%s4634_s4 + $0x228] sm:$0xff]  ;;  %v862_v34 = vpop.permute.xlu0 %861 }
 0x2ce   :  { %v671_v45 = vadd.f32 %v668_v26, %v649_v58  ;;  %v4762_v26 = vld [vmem:[#allocation24_spill] sm:$0xff]  ;;  %v603_v58 = vadd.f32 %v600_v19, %v581_v43  ;;  %v800_v5 = vmul.f32 %v2440_v63, %v3717_v39  ;;  %v2446_v42 = vld [vmem:[%s4634_s4 + $0x2c8] sm:$0xff]  ;;  %v4769_v39 = vld [vmem:[#allocation13_spill] sm:$0xff] }
 0x2cf   :  { %v645_v62 = vmul.f32 %v2418_v29, %v4762_v26  ;;  %v626_v0 = vadd.f32 %v623_v41, %v604_v31  ;;  %v2430_v41 = vld [vmem:[%s4634_s4 + $0x248] sm:$0xff]  ;;  %v710_v26 = vmul.f32 %v3855_v16, %v4769_v39 }
 0x2d0   :  { %v3803_v33 = vpop.permute.xlu1 %813  ;;  %v693_v2 = vadd.f32 %v690_v49, %v671_v45  ;;  %v4764_v49 = vld [vmem:[#allocation25_spill] sm:$0xff]  ;;  %v625_v56 = vadd.f32 %v622_v18, %v603_v58  ;;  %v4765_v45 = vld [vmem:[#allocation11_spill] sm:$0xff]  ;;  %v2433_v58 = vld [vmem:[%s4634_s4 + $0x260] sm:$0xff] }
 0x2d1   :  { %v667_v21 = vmul.f32 %v2421_v61, %v4764_v49  ;;  %v666_v48 = vmul.f32 %v3823_v40, %v4765_v45  ;;  %v648_v19 = vadd.f32 %v645_v62, %v626_v0  ;;  %v822_v62 = vmul.f32 %v2443_v50, %v3768_v52  ;;  %v2452_v52 = vld [vmem:[%s4634_s4 + $0x2f8] sm:$0xff] }
 0x2d2   :  { %v715_v3 = vadd.f32 %v712_v22, %v693_v2  ;;  %v4766_v22 = vld [vmem:[#allocation26_spill] sm:$0xff]  ;;  %v647_v2 = vadd.f32 %v644_v38, %v625_v56  ;;  %v844_v0 = vmul.f32 %v2446_v42, %v840_v20  ;;  %v755_v45 = vmul.f32 %v2433_v58, %v3590_v6  ;;  %v2439_v6 = vld [vmem:[%s4634_s4 + $0x290] sm:$0xff] }
 0x2d3   :  { %v689_v29 = vmul.f32 %v2424_v32, %v4766_v22  ;;  %v670_v18 = vadd.f32 %v667_v21, %v648_v19  ;;  %v2449_v38 = vld [vmem:[%s4634_s4 + $0x2e0] sm:$0xff]  ;;  %v733_v32 = vmul.f32 %v2430_v41, %v3529_v7  ;;  %v2436_v7 = vld [vmem:[%s4634_s4 + $0x278] sm:$0xff]  ;;  %v799_v42 = vmul.f32 %v2439_v6, %v3731_v15  ;;  %v83_v6 = vld [vmem:[%s4635_s5 + $0x8] sm:$0xff] }
 0x2d4   :  { %v3835_v25 = vpop.permute.xlu1 %809  ;;  %v737_v57 = vadd.f32 %v734_v28, %v715_v3  ;;  %v4768_v28 = vld [vmem:[#allocation28_spill] sm:$0xff]  ;;  %v2429_v3 = vld [vmem:[%s4634_s4 + $0x240] sm:$0xff]  ;;  %v669_v31 = vadd.f32 %v666_v48, %v647_v2  ;;  %v777_v23 = vmul.f32 %v2436_v7, %v3654_v13  ;;  %v2448_v15 = vld [vmem:[%s4634_s4 + $0x2d8] sm:$0xff] }
 0x2d5   :  { %v711_v61 = vmul.f32 %v2427_v51, %v4768_v28  ;;  %v732_v49 = vmul.f32 %v2429_v3, %v3555_v4  ;;  %v2435_v48 = vld [vmem:[%s4634_s4 + $0x270] sm:$0xff]  ;;  %v866_v51 = vmul.f32 %v2449_v38, %v862_v34  ;;  %v2441_v41 = vld [vmem:[%s4634_s4 + $0x2a0] sm:$0xff] }
 0x2d6   :  { %v759_v59 = vadd.f32 %v756_v47, %v737_v57  ;;  %v692_v47 = vadd.f32 %v689_v29, %v670_v18  ;;  %v2432_v57 = vld [vmem:[%s4634_s4 + $0x258] sm:$0xff]  ;;  %v691_v63 = vadd.f32 %v688_v17, %v669_v31  ;;  %v2438_v29 = vld [vmem:[%s4634_s4 + $0x288] sm:$0xff]  ;;  %v776_v17 = vmul.f32 %v2435_v48, %v3688_v46  ;;  %v2445_v13 = vld [vmem:[%s4634_s4 + $0x2c0] sm:$0xff] }
 0x2d7   :  { %v754_v50 = vmul.f32 %v2432_v57, %v3616_v8  ;;  %v2442_v8 = vld [vmem:[%s4634_s4 + $0x2a8] sm:$0xff]  ;;  %v798_v18 = vmul.f32 %v2438_v29, %v3763_v14  ;;  %v2444_v46 = vld [vmem:[%s4634_s4 + $0x2b8] sm:$0xff]  ;;  %v2447_v14 = vld [vmem:[%s4634_s4 + $0x2d0] sm:$0xff] }
 0x2d8   :  { %v781_v43 = vadd.f32 %v778_v1, %v759_v59  ;;  %v714_v56 = vadd.f32 %v711_v61, %v692_v47  ;;  %v713_v20 = vadd.f32 %v710_v26, %v691_v63  ;;  %v884_v59 = vpop.permute.xlu0 %883  ;;  %v821_v39 = vmul.f32 %v2442_v8, %v3803_v33  ;;  %v82_v29 = vld [vmem:[%s4635_s5] sm:$0xff] }
 0x2d9   :  { %v836_v11 = vpop.permute.xlu1 %835  ;;  %v888_v4 = vmul.f32 %v2452_v52, %v884_v59  ;;  %v820_v26 = vmul.f32 %v2441_v41, %v3835_v25  ;;  %v2451_v25 = vld [vmem:[%s4634_s4 + $0x2f0] sm:$0xff] }
 0x2da   :  { %v803_v30 = vadd.f32 %v800_v5, %v781_v43  ;;  %v736_v22 = vadd.f32 %v733_v32, %v714_v56  ;;  %v735_v2 = vadd.f32 %v732_v49, %v713_v20  ;;  %v2450_v49 = vld [vmem:[%s4634_s4 + $0x2e8] sm:$0xff] }
 0x2dc   :  { %v825_v21 = vadd.f32 %v822_v62, %v803_v30  ;;  %v758_v34 = vadd.f32 %v755_v45, %v736_v22  ;;  %v757_v43 = vadd.f32 %v754_v50, %v735_v2  ;;  %v843_v30 = vmul.f32 %v2445_v13, %v836_v11  ;;  %v84_v22 = vld [vmem:[%s4635_s5 + $0x10] sm:$0xff]  ;;  %v3959_v2 = vld [vmem:[%s4636_s8] ss:$0 sm:$0xff] }
 0x2dd   :  { %v832_v1 = vpop.permute.xlu1 %831 }
 0x2de   :  { %v847_v19 = vadd.f32 %v844_v0, %v825_v21  ;;  %v780_v3 = vadd.f32 %v777_v23, %v758_v34  ;;  %v779_v31 = vadd.f32 %v776_v17, %v757_v43  ;;  %v842_v38 = vmul.f32 %v2444_v46, %v832_v1  ;;  %v876_v21 = vpop.permute.xlu0 %875  ;;  %v2455_v43 = vld [vmem:[%s4637_s7] ss:$0 sm:$0xff] }
 0x2df   :  { %v886_v48 = vmul.f32 %v2450_v49, %v876_v21 }
 0x2e0   :  { %v869_v5 = vadd.f32 %v866_v51, %v847_v19  ;;  %v802_v62 = vadd.f32 %v799_v42, %v780_v3  ;;  %v801_v58 = vadd.f32 %v798_v18, %v779_v31  ;;  %v4770_v51 = vmov 0.0  }
 0x2e1   :  { %v3939_v19 = vsel %vm77_vm7, 1.0, %v4770_v51 }
 0x2e2   :  { %v858_v28 = vpop.permute.xlu1 %857  ;;  %v891_v61 = vadd.f32 %v888_v4, %v869_v5  ;;  %v824_v32 = vadd.f32 %v821_v39, %v802_v62  ;;  %v823_v57 = vadd.f32 %v820_v26, %v801_v58  ;;  %v85_v4 = vld [vmem:[%s4635_s5 + $0x18] sm:$0xff] }
 0x2e3   :  { %v865_v33 = vmul.f32 %v2448_v15, %v858_v28 }
 0x2e4   :  { %2546 = vmatprep.subr.mxu1 %v891_v61  ;;  %v846_v0 = vadd.f32 %v843_v30, %v824_v32  ;;  %v845_v52 = vadd.f32 %v842_v38, %v823_v57  ;;  %v2873_v57 = vld [vmem:[%s4631_s0 + $0x8] sm:$0xf] }
 0x2e5   :  { %2547 = vmatpush3.msra.mxu1 %v891_v61 }
 0x2e6   :  { %v854_v47 = vpop.permute.xlu1 %853  ;;  %v868_v45 = vadd.f32 %v865_v33, %v846_v0  ;;  %v2874_v33 = vld [vmem:[%s4631_s0] sm:$0xff] }
 0x2e7   :  { %v864_v63 = vmul.f32 %v2447_v14, %v854_v47 }
 0x2e9   :  { %v867_v11 = vadd.f32 %v864_v63, %v845_v52 }
 0x2eb   :  { %v880_v56 = vpop.permute.xlu1 %879  ;;  %v889_v20 = vadd.f32 %v886_v48, %v867_v11 }
 0x2ec   :  { %v887_v7 = vmul.f32 %v2451_v25, %v880_v56 }
 0x2ee   :  { %v890_v1 = vadd.f32 %v887_v7, %v868_v45 }
 0x2f0   :  { %2548 = vmatprep.subr.mxu1 %v890_v1 }
 0x2f1   :  { %2549 = vmatpush3.msra.mxu1 %v890_v1 }
 0x2f2   :  { %2550 = vmatprep.subr.mxu1 %v889_v20 }
 0x2f3   :  { %2551 = vmatpush3.msra.mxu1 %v889_v20 }
 0x2f4   :  { %2553 = vmatmul.mubr.msk.f32.vlgmr.msra.gmra.mxu1 %vm892_vm8, %v3939_v19  ;;  %2555 = vmatprep.subr.mxu1 %v85_v4 }
 0x2f5   :  { %2556 = vmatpush3.msra.mxu1 %v85_v4 }
 0x2f6   :  { %2557 = vmatprep.subr.mxu1 %v84_v22 }
 0x2f7   :  { %2558 = vmatpush3.msra.mxu1 %v84_v22 }
 0x2f8   :  { %2559 = vmatprep.subr.mxu1 %v83_v6 }
 0x2f9   :  { %2560 = vmatpush3.msra.mxu1 %v83_v6 }
 0x2fa   :  { %2561 = vmatprep.subr.mxu1 %v82_v29 }
 0x2fb   :  { %2562 = vmatpush3.msra.mxu1 %v82_v29 }
 0x2fc   :  { %2577 = vmatprep.subr.mxu1 %v4770_v51 }
 0x339   :  { %v2576_v23 = vpop.f32.mrf.mxu0 }
 0x33a   :  { %v1145_v17 = vadd.f32 %v2576_v23, %v3959_v2 }
 0x33b   :  { %v1139_v5 = vpop.f32.mrf.mxu0 }
 0x33c   :  { %v1140_v34 = vadd.f32 %v3959_v2, %v1139_v5  ;;  %1166 = vrot.lane.b32.xlu1 %v1145_v17, %s2995_s14  ;;  %v4774_v5 = vld [vmem:[#allocation16_spill] sm:$0xff] }
 0x33e   :  { %1164 = vrot.lane.b32.xlu0 %v1140_v34, %s2995_s14 }
 0x3ae   :  { %v1167_v62 = vpop.permute.xlu1 %1166 }
 0x3b0   :  { %v1165_v47 = vpop.permute.xlu0 %1164 }
 0x3b4   :  { %v2554_v8 = vpop.f32.mrf.mxu1 }
 0x3b6   :  { %v965_v41 = vpop.f32.mrf.mxu1 }
 0x3b7   :  { %2563 = vmatprep.mubr.msk.f32.mxu1 %vm980_vm9, %v965_v41  ;;  %v4777_v41 = vld [vmem:[#allocation18_spill] sm:$0xff] }
 0x3b8   :  { %2564 = vmatmul.mubr.msk.f32.vlgmr.msra.gmra.mxu1 %vm980_vm9, %v2554_v8  ;;  %v4776_v8 = vld [vmem:[#allocation3_spill] sm:$0xff] }
 0x3b9   :  { %2581 = vmatprep.mubr.msk.f32.mxu1 %vm2963_vm1, %v4770_v51 }
 0x478   :  { %v2565_v42 = vpop.f32.mrf.mxu1 }
 0x479   :  { %v1059_v18 = vadd.f32 %v2565_v42, %v2455_v43  ;;  %v4779_v42 = vld [vmem:[#allocation4_spill] sm:$0xff] }
 0x47a   :  { %v1053_v28 = vpop.f32.mrf.mxu1 }
 0x47b   :  { %v1149_v61 = vadd.f32 %v1145_v17, %v1059_v18  ;;  %v1054_v13 = vadd.f32 %v2455_v43, %v1053_v28  ;;  %v4773_v17 = vld [vmem:[#allocation2_spill] sm:$0xff]  ;;  %v4778_v43 = vld [vmem:[#allocation19_spill] sm:$0xff] }
 0x47d   :  { %v2462_v46 = vmul.f32 -1.442695, %v1149_v61  ;;  %v1148_v3 = vadd.f32 %v1140_v34, %v1054_v13  ;;  %v4775_v34 = vld [vmem:[#allocation17_spill] sm:$0xff]  ;;  %v4780_v61 = vmov 1  }
 0x47f   :  { %2849 = vpow2.f32 %v2462_v46  ;;  %v2461_v31 = vmul.f32 -1.442695, %v1148_v3  ;;  %v4781_v3 = vmov 3  }
 0x481   :  { %2851 = vpow2.f32 %v2461_v31 }
 0x48c   :  { %v2850_v39 = vpop.eup %2849 }
 0x48d   :  { %v1157_v26 = vadd.f32 1.0, %v2850_v39  ;;  %v4782_v39 = vmov 2  }
 0x48e   :  { %v2852_v15 = vpop.eup %2851 }
 0x48f   :  { %2853 = vrcp.f32 %v1157_v26  ;;  %v1156_v14 = vadd.f32 1.0, %v2852_v15  ;;  %v4783_v26 = vmov 4   ;;  %v4784_v15 = vmov 5  }
 0x491   :  { %2855 = vrcp.f32 %v1156_v14  ;;  %v4785_v14 = vmov 6  }
 0x49c   :  { %v2854_v58 = vpop.eup %2853 }
 0x49d   :  { %v1171_v30 = vmul.f32 %v2854_v58, %v1167_v62  ;;  %v1185_v45 = vsub.f32 1.0, %v2854_v58  ;;  %v4786_v62 = vmov 7  }
 0x49e   :  { %v2856_v38 = vpop.eup %2855 }
 0x49f   :  { %v1170_v32 = vmul.f32 %v2856_v38, %v1165_v47  ;;  %1176 = vrot.lane.b32.xlu1 %v1171_v30, %s2995_s14  ;;  %v1184_v59 = vsub.f32 1.0, %v2856_v38  ;;  %v4788_v30 = vmov 9   ;;  %v4790_v47 = vmov 11  }
 0x4a1   :  { %1174 = vrot.lane.b32.xlu0 %v1170_v32, %s2995_s14  ;;  %v4791_v32 = vmov 12  }
 0x4a5   :  { %1198 = vrot.lane.b32.xlu0 %v2873_v57, %s2996_s17  ;;  %v4792_v57 = vmov 13  }
 0x4a9   :  { %1196 = vrot.lane.b32.xlu0 %v2874_v33, %s2996_s17  ;;  %v4793_v33 = vmov 14  }
 0x511   :  { %v1177_v63 = vpop.permute.xlu1 %1176 }
 0x512   :  { %v1181_v25 = vadd.f32 %v1177_v63, %v1059_v18  ;;  %v4794_v63 = vmov 15  }
 0x513   :  { %v1175_v0 = vpop.permute.xlu0 %1174 }
 0x514   :  { %2857 = vtanh.f32 %v1181_v25  ;;  %v1180_v52 = vadd.f32 %v1175_v0, %v1054_v13  ;;  %v4795_v25 = vmov 16   ;;  %v4796_v0 = vmov 17  }
 0x516   :  { %2859 = vtanh.f32 %v1180_v52  ;;  %v4797_v52 = vmov 18  }
 0x517   :  { %v1199_v56 = vpop.permute.xlu0 %1198 }
 0x518   :  { %v1203_v7 = vmul.f32 %v2854_v58, %v1199_v56  ;;  %v4787_v58 = vmov 8   ;;  %v4800_v56 = vmov 21  }
 0x51b   :  { %v1197_v1 = vpop.permute.xlu0 %1196 }
 0x51c   :  { %v1202_v4 = vmul.f32 %v2856_v38, %v1197_v1  ;;  %v4789_v38 = vmov 10  }
 0x521   :  { %v2858_v49 = vpop.eup %2857 }
 0x522   :  { %1190 = vrot.lane.b32.xlu1 %v2858_v49, %s2997_s20  ;;  %v4798_v49 = vmov 19  }
 0x523   :  { %v2860_v21 = vpop.eup %2859 }
 0x526   :  { %1188 = vrot.lane.b32.xlu1 %v2860_v21, %s2997_s20  ;;  %v4799_v21 = vmov 20  }
 0x594   :  { %v1191_v11 = vpop.permute.xlu1 %1190 }
 0x595   :  { %v1195_v48 = vmul.f32 %v1191_v11, %v1185_v45  ;;  %v4801_v45 = vmov 22   ;;  %v4802_v11 = vmov 23  }
 0x597   :  { %v3982_v20 = vadd.f32 %v1203_v7, %v1195_v48  ;;  %v4803_v7 = vmov 0   ;;  %v4804_v48 = vmov 24  }
 0x598   :  { %v1189_v50 = vpop.permute.xlu1 %1188 }
 0x599   :  { %v1194_v22 = vmul.f32 %v1189_v50, %v1184_v59  ;;  %1210 = vrot.lane.b32.xlu1 %v3982_v20, %s2997_s20  ;;  %v4805_v59 = vmov 25  }
 0x59b   :  { %v3986_v6 = vadd.f32 %v1202_v4, %v1194_v22  ;;  %v4806_v4 = vmov 26  }
 0x59d   :  { %1208 = vrot.lane.b32.xlu0 %v3986_v6, %s2997_s20 }
 0x60b   :  { %v1211_v29 = vpop.permute.xlu1 %1210 }
 0x60c   :  { %2578 = vmatpush3.msk.msra.mxu1 %vm102_vm0, %v1211_v29 }
 0x60d   :  { %2579 = vmatprep.subr.mxu1 %v4770_v51 }
 0x60f   :  { %v1209_v23 = vpop.permute.xlu0 %1208 }
 0x610   :  { %2580 = vmatpush3.msra.mxu1 %v1209_v23 }
 0x611   :  { %2582 = vmatmul.mubr.msk.f32.vlgmr.msra.gmra.mxu1 %vm92_vm2, %v4773_v17  ;;  %2610 = vmatprep.subr.mxu1 %v4774_v5  ;;  %v4808_v17 = vmov 28  }
 0x612   :  { %2584 = vmatprep.mubr.msk.f32.mxu1 %vm2963_vm1, %v4770_v51  ;;  %2611 = vmatpush3.msra.mxu1 %v4774_v5 }
 0x613   :  { %2612 = vmatprep.subr.mxu1 %v4775_v34 }
 0x614   :  { %2613 = vmatpush3.msra.mxu1 %v4775_v34  ;;  %v4809_v34 = vmov 29  }
 0x615   :  { %2585 = vmatmul.mubr.msk.f32.gmra.mxu1 %vm92_vm2, %v4776_v8  ;;  %2614 = vmatprep.subr.mxu1 %v4777_v41 }
 0x616   :  { %2587 = vmatprep.mubr.msk.f32.mxu1 %vm2963_vm1, %v4770_v51  ;;  %2615 = vmatpush3.msra.mxu1 %v4777_v41  ;;  %v4810_v41 = vmov 30  }
 0x617   :  { %2616 = vmatprep.subr.mxu1 %v4778_v43 }
 0x618   :  { %2617 = vmatpush3.msra.mxu1 %v4778_v43 }
 0x619   :  { %2588 = vmatmul.mubr.msk.f32.gmra.mxu1 %vm92_vm2, %v4779_v42  ;;  %v4811_v42 = vmov 31  }
 0x61a   :  { %2618 = vmatprep.mubr.msk.f32.mxu1 %vm980_vm9, %v1209_v23 }
 0x61d   :  { %2619 = vmatmul.mubr.msk.f32.vlgmr.msra.gmra.mxu1 %vm980_vm9, %v1211_v29  ;;  %v4807_v29 = vmov 27  }
 0x6d1   :  { %v4012_v18 = vpop.f32.mrf.mxu1 }
 0x6d2   :  { %1335 = vperm.xlu0 %2764, %v4012_v18   ;;  %1297 = vperm.xlu1 %2762, %v4012_v18  }
 0x6d3   :  { %v2583_v51 = vpop.f32.mrf.mxu1 }
 0x6d5   :  { %v4016_v28 = vpop.f32.mrf.mxu1 }
 0x6d6   :  { %2763 = vset.pattern.permute.xlu1 %v4780_v61  ;;  %1339 = vperm.xlu0 %2764, %v4016_v28  }
 0x6d7   :  { %1317 = vperm.xlu1 %2763, %v4012_v18   ;;  %v2586_v13 = vpop.f32.mrf.mxu1 }
 0x6d9   :  { %v4021_v46 = vpop.f32.mrf.mxu1 }
 0x6da   :  { %2810 = vset.pattern.permute.xlu0 %v4780_v61 }
 0x6db   :  { %2765 = vset.pattern.permute.xlu1 %v4781_v3  ;;  %1325 = vperm.xlu0 %2810, %v4021_v46   ;;  %v2589_v31 = vpop.f32.mrf.mxu1 }
 0x6dc   :  { %1353 = vperm.xlu1 %2765, %v4012_v18  }
 0x6dd   :  { %v2620_v51 = vpop.f32.mrf.mxu1 }
 0x6de   :  { %v4146_v13 = vadd.f32 %v2620_v51, %v3959_v2 }
 0x6df   :  { %2811 = vset.pattern.permute.xlu0 %v4782_v39 }
 0x6e0   :  { %2766 = vset.pattern.permute.xlu1 %v4783_v26  ;;  %1343 = vperm.xlu0 %2811, %v4021_v46  }
 0x6e1   :  { %1371 = vperm.xlu1 %2766, %v4012_v18  }
 0x6e4   :  { %2821 = vset.pattern.permute.xlu0 %v4783_v26 }
 0x6e5   :  { %2767 = vset.pattern.permute.xlu1 %v4784_v15  ;;  %1379 = vperm.xlu0 %2821, %v4021_v46  }
 0x6e6   :  { %1389 = vperm.xlu1 %2767, %v4012_v18  }
 0x6e9   :  { %2822 = vset.pattern.permute.xlu0 %v4784_v15 }
 0x6ea   :  { %2768 = vset.pattern.permute.xlu1 %v4785_v14  ;;  %1397 = vperm.xlu0 %2822, %v4021_v46  }
 0x6eb   :  { %1407 = vperm.xlu1 %2768, %v4012_v18  }
 0x6ee   :  { %2823 = vset.pattern.permute.xlu0 %v4785_v14 }
 0x6ef   :  { %2769 = vset.pattern.permute.xlu1 %v4786_v62  ;;  %1415 = vperm.xlu0 %2823, %v4021_v46  }
 0x6f0   :  { %1425 = vperm.xlu1 %2769, %v4012_v18  }
 0x6f3   :  { %2824 = vset.pattern.permute.xlu0 %v4786_v62 }
 0x6f4   :  { %2770 = vset.pattern.permute.xlu1 %v4787_v58  ;;  %1433 = vperm.xlu0 %2824, %v4021_v46  }
 0x6f5   :  { %1443 = vperm.xlu1 %2770, %v4012_v18  }
 0x6f8   :  { %2825 = vset.pattern.permute.xlu0 %v4787_v58 }
 0x6f9   :  { %2771 = vset.pattern.permute.xlu1 %v4788_v30  ;;  %1451 = vperm.xlu0 %2825, %v4021_v46  }
 0x6fa   :  { %1461 = vperm.xlu1 %2771, %v4012_v18  }
 0x6fd   :  { %2826 = vset.pattern.permute.xlu0 %v4788_v30 }
 0x6fe   :  { %2772 = vset.pattern.permute.xlu1 %v4789_v38  ;;  %1469 = vperm.xlu0 %2826, %v4021_v46  }
 0x6ff   :  { %1479 = vperm.xlu1 %2772, %v4012_v18  }
 0x702   :  { %2827 = vset.pattern.permute.xlu0 %v4789_v38 }
 0x703   :  { %2773 = vset.pattern.permute.xlu1 %v4790_v47  ;;  %1487 = vperm.xlu0 %2827, %v4021_v46  }
 0x704   :  { %1497 = vperm.xlu1 %2773, %v4012_v18  }
 0x707   :  { %2828 = vset.pattern.permute.xlu0 %v4790_v47 }
 0x708   :  { %2774 = vset.pattern.permute.xlu1 %v4791_v32  ;;  %1505 = vperm.xlu0 %2828, %v4021_v46  }
 0x709   :  { %1515 = vperm.xlu1 %2774, %v4012_v18  }
 0x70c   :  { %2829 = vset.pattern.permute.xlu0 %v4791_v32 }
 0x70d   :  { %2775 = vset.pattern.permute.xlu1 %v4792_v57  ;;  %1523 = vperm.xlu0 %2829, %v4021_v46  }
 0x70e   :  { %1533 = vperm.xlu1 %2775, %v4012_v18  }
 0x711   :  { %2830 = vset.pattern.permute.xlu0 %v4792_v57 }
 0x712   :  { %2776 = vset.pattern.permute.xlu1 %v4793_v33  ;;  %1541 = vperm.xlu0 %2830, %v4021_v46  }
 0x713   :  { %1551 = vperm.xlu1 %2776, %v4012_v18  }
 0x716   :  { %2831 = vset.pattern.permute.xlu0 %v4793_v33 }
 0x717   :  { %2777 = vset.pattern.permute.xlu1 %v4794_v63  ;;  %1559 = vperm.xlu0 %2831, %v4021_v46  }
 0x718   :  { %1569 = vperm.xlu1 %2777, %v4012_v18  }
 0x71b   :  { %2832 = vset.pattern.permute.xlu0 %v4794_v63 }
 0x71c   :  { %2778 = vset.pattern.permute.xlu1 %v4795_v25  ;;  %1577 = vperm.xlu0 %2832, %v4021_v46  }
 0x71d   :  { %1587 = vperm.xlu1 %2778, %v4012_v18  }
 0x720   :  { %2833 = vset.pattern.permute.xlu0 %v4795_v25 }
 0x721   :  { %2779 = vset.pattern.permute.xlu1 %v4796_v0  ;;  %1595 = vperm.xlu0 %2833, %v4021_v46  }
 0x722   :  { %1605 = vperm.xlu1 %2779, %v4012_v18  }
 0x725   :  { %2834 = vset.pattern.permute.xlu0 %v4796_v0 }
 0x726   :  { %2780 = vset.pattern.permute.xlu1 %v4797_v52  ;;  %1613 = vperm.xlu0 %2834, %v4021_v46  }
 0x727   :  { %1623 = vperm.xlu1 %2780, %v4012_v18  }
 0x72a   :  { %2835 = vset.pattern.permute.xlu0 %v4797_v52 }
 0x72b   :  { %2781 = vset.pattern.permute.xlu1 %v4798_v49  ;;  %1631 = vperm.xlu0 %2835, %v4021_v46  }
 0x72c   :  { %1641 = vperm.xlu1 %2781, %v4012_v18  }
 0x72f   :  { %2836 = vset.pattern.permute.xlu0 %v4798_v49 }
 0x730   :  { %2782 = vset.pattern.permute.xlu1 %v4799_v21  ;;  %1649 = vperm.xlu0 %2836, %v4021_v46  }
 0x731   :  { %1659 = vperm.xlu1 %2782, %v4012_v18  }
 0x734   :  { %2837 = vset.pattern.permute.xlu0 %v4799_v21 }
 0x735   :  { %2783 = vset.pattern.permute.xlu1 %v4800_v56  ;;  %1667 = vperm.xlu0 %2837, %v4021_v46  }
 0x736   :  { %1677 = vperm.xlu1 %2783, %v4012_v18  }
 0x739   :  { %2838 = vset.pattern.permute.xlu0 %v4800_v56 }
 0x73a   :  { %2784 = vset.pattern.permute.xlu1 %v4801_v45  ;;  %1685 = vperm.xlu0 %2838, %v4021_v46  }
 0x73b   :  { %1695 = vperm.xlu1 %2784, %v4012_v18  }
 0x73e   :  { %2839 = vset.pattern.permute.xlu0 %v4801_v45 }
 0x73f   :  { %2785 = vset.pattern.permute.xlu1 %v4802_v11  ;;  %1703 = vperm.xlu0 %2839, %v4021_v46  }
 0x740   :  { %1713 = vperm.xlu1 %2785, %v4012_v18  }
 0x743   :  { %2840 = vset.pattern.permute.xlu0 %v4802_v11 }
 0x744   :  { %2786 = vset.pattern.permute.xlu1 %v4803_v7  ;;  %1721 = vperm.xlu0 %2840, %v4021_v46  }
 0x745   :  { %1302 = vperm.xlu1 %2786, %v4016_v28  }
 0x748   :  { %2841 = vset.pattern.permute.xlu0 %v4804_v48 }
 0x749   :  { %2787 = vset.pattern.permute.xlu1 %v4780_v61  ;;  %1739 = vperm.xlu0 %2841, %v4021_v46  }
 0x74a   :  { %1321 = vperm.xlu1 %2787, %v4016_v28  }
 0x74d   :  { %v1298_v1 = vpop.permute.xlu1 %1297  ;;  %2842 = vset.pattern.permute.xlu0 %v4805_v59 }
 0x74e   :  { %2788 = vset.pattern.permute.xlu1 %v4781_v3  ;;  %1757 = vperm.xlu0 %2842, %v4021_v46  }
 0x74f   :  { %1357 = vperm.xlu1 %2788, %v4016_v28  }
 0x752   :  { %v1318_v50 = vpop.permute.xlu1 %1317  ;;  %2843 = vset.pattern.permute.xlu0 %v4806_v4 }
 0x753   :  { %2789 = vset.pattern.permute.xlu1 %v4783_v26  ;;  %1775 = vperm.xlu0 %2843, %v4021_v46   ;;  %v2875_v26 = vld [vmem:[%s4634_s4 + $0x18] sm:$0xff] }
 0x754   :  { %1375 = vperm.xlu1 %2789, %v4016_v28  }
 0x757   :  { %v1354_v22 = vpop.permute.xlu1 %1353  ;;  %2844 = vset.pattern.permute.xlu0 %v4807_v29 }
 0x758   :  { %2790 = vset.pattern.permute.xlu1 %v4784_v15  ;;  %1793 = vperm.xlu0 %2844, %v4021_v46   ;;  %v1328_v15 = vmul.f32 %v2875_v26, %v1318_v50  ;;  %v2878_v26 = vld [vmem:[%s4634_s4 + $0x48] sm:$0xff] }
 0x759   :  { %1393 = vperm.xlu1 %2790, %v4016_v28  }
 0x75c   :  { %v1372_v23 = vpop.permute.xlu1 %1371  ;;  %2845 = vset.pattern.permute.xlu0 %v4808_v17 }
 0x75d   :  { %2791 = vset.pattern.permute.xlu1 %v4785_v14  ;;  %1811 = vperm.xlu0 %2845, %v4021_v46  }
 0x75e   :  { %1411 = vperm.xlu1 %2791, %v4016_v28  }
 0x761   :  { %v1390_v5 = vpop.permute.xlu1 %1389  ;;  %2846 = vset.pattern.permute.xlu0 %v4809_v34 }
 0x762   :  { %2792 = vset.pattern.permute.xlu1 %v4786_v62  ;;  %1829 = vperm.xlu0 %2846, %v4021_v46   ;;  %v2876_v62 = vld [vmem:[%s4634_s4] sm:$0xff] }
 0x763   :  { %1429 = vperm.xlu1 %2792, %v4016_v28  }
 0x766   :  { %v1408_v8 = vpop.permute.xlu1 %1407  ;;  %2847 = vset.pattern.permute.xlu0 %v4810_v41 }
 0x767   :  { %2793 = vset.pattern.permute.xlu1 %v4787_v58  ;;  %1847 = vperm.xlu0 %2847, %v4021_v46   ;;  %v1310_v58 = vmul.f32 %v2876_v62, %v1298_v1  ;;  %v1364_v1 = vmul.f32 %v2878_v26, %v1354_v22  ;;  %v2881_v22 = vld [vmem:[%s4634_s4 + $0x90] sm:$0xff] }
 0x768   :  { %1447 = vperm.xlu1 %2793, %v4016_v28  }
 0x76b   :  { %v1426_v43 = vpop.permute.xlu1 %1425  ;;  %2848 = vset.pattern.permute.xlu0 %v4811_v42 }
 0x76c   :  { %2794 = vset.pattern.permute.xlu1 %v4788_v30  ;;  %1865 = vperm.xlu0 %2848, %v4021_v46   ;;  %v1336_v30 = vpop.permute.xlu0 %1335 }
 0x76d   :  { %1465 = vperm.xlu1 %2794, %v4016_v28  }
 0x770   :  { %v1444_v61 = vpop.permute.xlu1 %1443  ;;  %1857 = vperm.xlu0 %2848, %v4012_v18  }
 0x771   :  { %2795 = vset.pattern.permute.xlu1 %v4789_v38  ;;  %v1331_v38 = vadd.f32 %v1328_v15, %v1310_v58 }
 0x772   :  { %1483 = vperm.xlu1 %2795, %v4016_v28  }
 0x774   :  { %2127 = vrot.lane.b32.xlu0 %v4146_v13, %s2995_s14 }
 0x775   :  { %v1462_v31 = vpop.permute.xlu1 %1461 }
 0x776   :  { %2796 = vset.pattern.permute.xlu1 %v4790_v47  ;;  %v2877_v47 = vld [vmem:[%s4634_s4 + $0x30] sm:$0xff] }
 0x777   :  { %1501 = vperm.xlu1 %2796, %v4016_v28  }
 0x77a   :  { %v1480_v39 = vpop.permute.xlu1 %1479 }
 0x77b   :  { %2797 = vset.pattern.permute.xlu1 %v4791_v32  ;;  %v1346_v32 = vmul.f32 %v2877_v47, %v1336_v30  ;;  %v2880_v30 = vld [vmem:[%s4634_s4 + $0x78] sm:$0xff]  ;;  %v1418_v47 = vmul.f32 %v2881_v22, %v1408_v8  ;;  %v1472_v8 = vmul.f32 %v3628_v36, %v1462_v31 }
 0x77c   :  { %1519 = vperm.xlu1 %2797, %v4016_v28  }
 0x77d   :  { %v1349_v50 = vadd.f32 %v1346_v32, %v1331_v38 }
 0x77f   :  { %v1498_v14 = vpop.permute.xlu1 %1497  ;;  %v1367_v58 = vadd.f32 %v1364_v1, %v1349_v50 }
 0x780   :  { %2798 = vset.pattern.permute.xlu1 %v4792_v57  ;;  %v2879_v57 = vld [vmem:[%s4634_s4 + $0x60] sm:$0xff] }
 0x781   :  { %1537 = vperm.xlu1 %2798, %v4016_v28   ;;  %v1382_v15 = vmul.f32 %v2879_v57, %v1372_v23  ;;  %v2882_v23 = vld [vmem:[%s4634_s4 + $0xa8] sm:$0xff] }
 0x782   :  { %v1436_v50 = vmul.f32 %v2882_v23, %v1426_v43  ;;  %v1508_v43 = vmul.f32 %v3659_v12, %v1498_v14 }
 0x783   :  { %v1385_v38 = vadd.f32 %v1382_v15, %v1367_v58 }
 0x784   :  { %v1516_v51 = vpop.permute.xlu1 %1515 }
 0x785   :  { %2799 = vset.pattern.permute.xlu1 %v4793_v33  ;;  %v1400_v33 = vmul.f32 %v2880_v30, %v1390_v5  ;;  %v1490_v30 = vmul.f32 %v3642_v44, %v1480_v39 }
 0x786   :  { %1555 = vperm.xlu1 %2799, %v4016_v28  }
 0x787   :  { %v1403_v32 = vadd.f32 %v1400_v33, %v1385_v38  ;;  %v1526_v38 = vmul.f32 %v3676_v27, %v1516_v51 }
 0x789   :  { %v1534_v62 = vpop.permute.xlu1 %1533  ;;  %v1421_v5 = vadd.f32 %v1418_v47, %v1403_v32 }
 0x78a   :  { %2800 = vset.pattern.permute.xlu1 %v4794_v63  ;;  %v2883_v63 = vld [vmem:[%s4634_s4 + $0xc0] sm:$0xff]  ;;  %v1544_v36 = vmul.f32 %v3693_v55, %v1534_v62 }
 0x78b   :  { %1573 = vperm.xlu1 %2800, %v4016_v28   ;;  %v1454_v1 = vmul.f32 %v2883_v63, %v1444_v61  ;;  %v1439_v57 = vadd.f32 %v1436_v50, %v1421_v5 }
 0x78d   :  { %v1457_v58 = vadd.f32 %v1454_v1, %v1439_v57 }
 0x78e   :  { %v1552_v26 = vpop.permute.xlu1 %1551 }
 0x78f   :  { %2801 = vset.pattern.permute.xlu1 %v4795_v25  ;;  %v1475_v25 = vadd.f32 %v1472_v8, %v1457_v58  ;;  %v1562_v44 = vmul.f32 %v3708_v9, %v1552_v26 }
 0x790   :  { %1591 = vperm.xlu1 %2801, %v4016_v28  }
 0x791   :  { %v1493_v33 = vadd.f32 %v1490_v30, %v1475_v25 }
 0x793   :  { %v1570_v15 = vpop.permute.xlu1 %1569  ;;  %v1511_v22 = vadd.f32 %v1508_v43, %v1493_v33  ;;  %v2887_v43 = vld [vmem:[%s4634_s4 + $0x50] sm:$0xff] }
 0x794   :  { %2802 = vset.pattern.permute.xlu1 %v4796_v0  ;;  %v1580_v47 = vmul.f32 %v3725_v35, %v1570_v15 }
 0x795   :  { %1609 = vperm.xlu1 %2802, %v4016_v28   ;;  %v1529_v31 = vadd.f32 %v1526_v38, %v1511_v22  ;;  %v2888_v22 = vld [vmem:[%s4634_s4 + $0x68] sm:$0xff] }
 0x797   :  { %v1547_v39 = vadd.f32 %v1544_v36, %v1529_v31 }
 0x798   :  { %v1588_v61 = vpop.permute.xlu1 %1587 }
 0x799   :  { %2803 = vset.pattern.permute.xlu1 %v4797_v52  ;;  %v1565_v12 = vadd.f32 %v1562_v44, %v1547_v39  ;;  %v1598_v27 = vmul.f32 %v3742_v37, %v1588_v61 }
 0x79a   :  { %1627 = vperm.xlu1 %2803, %v4016_v28  }
 0x79b   :  { %v1583_v52 = vadd.f32 %v1580_v47, %v1565_v12 }
 0x79d   :  { %v1606_v0 = vpop.permute.xlu1 %1605  ;;  %v1601_v51 = vadd.f32 %v1598_v27, %v1583_v52  ;;  %v2890_v52 = vld [vmem:[%s4634_s4 + $0x98] sm:$0xff] }
 0x79e   :  { %2804 = vset.pattern.permute.xlu1 %v4798_v49  ;;  %v1616_v14 = vmul.f32 %v3757_v53, %v1606_v0  ;;  %v2889_v0 = vld [vmem:[%s4634_s4 + $0x80] sm:$0xff] }
 0x79f   :  { %1645 = vperm.xlu1 %2804, %v4016_v28  }
 0x7a0   :  { %v1619_v62 = vadd.f32 %v1616_v14, %v1601_v51 }
 0x7a2   :  { %v1624_v55 = vpop.permute.xlu1 %1623 }
 0x7a3   :  { %2805 = vset.pattern.permute.xlu1 %v4799_v21  ;;  %v1634_v9 = vmul.f32 %v3776_v10, %v1624_v55 }
 0x7a4   :  { %1663 = vperm.xlu1 %2805, %v4016_v28  }
 0x7a5   :  { %v1637_v32 = vadd.f32 %v1634_v9, %v1619_v62  ;;  %v2891_v9 = vld [vmem:[%s4634_s4 + $0xb0] sm:$0xff] }
 0x7a7   :  { %v1642_v35 = vpop.permute.xlu1 %1641 }
 0x7a8   :  { %v1652_v49 = vmul.f32 %v3791_v24, %v1642_v35  ;;  %2806 = vset.pattern.permute.xlu1 %v4800_v56 }
 0x7a9   :  { %1681 = vperm.xlu1 %2806, %v4016_v28  }
 0x7aa   :  { %v1655_v37 = vadd.f32 %v1652_v49, %v1637_v32 }
 0x7ac   :  { %v1660_v23 = vpop.permute.xlu1 %1659 }
 0x7ad   :  { %v1670_v53 = vmul.f32 %v3808_v60, %v1660_v23  ;;  %2807 = vset.pattern.permute.xlu1 %v4801_v45  ;;  %v1340_v60 = vpop.permute.xlu0 %1339 }
 0x7ae   :  { %1699 = vperm.xlu1 %2807, %v4016_v28  }
 0x7af   :  { %v1673_v10 = vadd.f32 %v1670_v53, %v1655_v37 }
 0x7b1   :  { %v1678_v21 = vpop.permute.xlu1 %1677 }
 0x7b2   :  { %v1688_v50 = vmul.f32 %v3823_v40, %v1678_v21  ;;  %2808 = vset.pattern.permute.xlu1 %v4802_v11  ;;  %v4225_v11 = vpop.permute.xlu0 %1325  ;;  %v2893_v21 = vld [vmem:[%s4634_s4 + $0xe0] sm:$0xff] }
 0x7b3   :  { %1717 = vperm.xlu1 %2808, %v4016_v28  }
 0x7b4   :  { %v1691_v24 = vadd.f32 %v1688_v50, %v1673_v10 }
 0x7b6   :  { %v1696_v56 = vpop.permute.xlu1 %1695 }
 0x7b7   :  { %v1706_v26 = vmul.f32 %v3840_v54, %v1696_v56  ;;  %2809 = vset.pattern.permute.xlu1 %v4803_v7  ;;  %v4229_v54 = vpop.permute.xlu0 %1343 }
 0x7b8   :  { %1307 = vperm.xlu1 %2809, %v4021_v46  }
 0x7b9   :  { %v1709_v45 = vadd.f32 %v1706_v26, %v1691_v24  ;;  %v2894_v26 = vld [vmem:[%s4634_s4 + $0xf8] sm:$0xff] }
 0x7bb   :  { %v1714_v5 = vpop.permute.xlu1 %1713  ;;  %v4242_v25 = vpop.permute.xlu0 %1379 }
 0x7bc   :  { %v1724_v63 = vmul.f32 %v3855_v16, %v1714_v5  ;;  %2812 = vset.pattern.permute.xlu1 %v4781_v3  ;;  %v2884_v16 = vld [vmem:[%s4634_s4 + $0x8] sm:$0xff] }
 0x7bd   :  { %1361 = vperm.xlu1 %2812, %v4021_v46   ;;  %v2885_v46 = vld [vmem:[%s4634_s4 + $0x20] sm:$0xff] }
 0x7be   :  { %v4223_v40 = vadd.f32 %v1724_v63, %v1709_v45  ;;  %v2895_v63 = vld [vmem:[%s4634_s4 + $0x110] sm:$0xff] }
 0x7bf   :  { %v4252_v31 = vpop.permute.xlu0 %1397 }
 0x7c0   :  { %v1303_v1 = vpop.permute.xlu1 %1302 }
 0x7c1   :  { %2813 = vset.pattern.permute.xlu1 %v4804_v48  ;;  %v1311_v57 = vmul.f32 %v2884_v16, %v1303_v1  ;;  %v2886_v48 = vld [vmem:[%s4634_s4 + $0x38] sm:$0xff] }
 0x7c2   :  { %1735 = vperm.xlu1 %2813, %v4016_v28   ;;  %v1347_v8 = vmul.f32 %v2886_v48, %v1340_v60 }
 0x7c3   :  { %v4259_v47 = vpop.permute.xlu0 %1415 }
 0x7c5   :  { %v1322_v7 = vpop.permute.xlu1 %1321 }
 0x7c6   :  { %v1329_v3 = vmul.f32 %v2885_v46, %v1322_v7  ;;  %1731 = vperm.xlu1 %2813, %v4012_v18  }
 0x7c7   :  { %v4266_v55 = vpop.permute.xlu0 %1433 }
 0x7c8   :  { %v1332_v15 = vadd.f32 %v1329_v3, %v1311_v57 }
 0x7ca   :  { %v1350_v58 = vadd.f32 %v1347_v8, %v1332_v15  ;;  %v1358_v30 = vpop.permute.xlu1 %1357  ;;  %2814 = vset.pattern.permute.xlu1 %v4805_v59  ;;  %v2897_v15 = vld [vmem:[%s4634_s4 + $0x140] sm:$0xff] }
 0x7cb   :  { %v1365_v33 = vmul.f32 %v2887_v43, %v1358_v30  ;;  %1753 = vperm.xlu1 %2814, %v4016_v28   ;;  %v4273_v32 = vpop.permute.xlu0 %1451 }
 0x7cd   :  { %v1368_v38 = vadd.f32 %v1365_v33, %v1350_v58 }
 0x7cf   :  { %v1376_v61 = vpop.permute.xlu1 %1375  ;;  %1749 = vperm.xlu1 %2814, %v4012_v18   ;;  %v4280_v10 = vpop.permute.xlu0 %1469 }
 0x7d0   :  { %v1383_v36 = vmul.f32 %v2888_v22, %v1376_v61 }
 0x7d2   :  { %v1386_v59 = vadd.f32 %v1383_v36, %v1368_v38  ;;  %v2898_v38 = vld [vmem:[%s4634_s4 + $0x158] sm:$0xff] }
 0x7d3   :  { %2815 = vset.pattern.permute.xlu1 %v4806_v4  ;;  %v4290_v60 = vpop.permute.xlu0 %1487 }
 0x7d4   :  { %v1394_v44 = vpop.permute.xlu1 %1393  ;;  %1771 = vperm.xlu1 %2815, %v4016_v28  }
 0x7d5   :  { %v1401_v39 = vmul.f32 %v2889_v0, %v1394_v44 }
 0x7d7   :  { %v1404_v12 = vadd.f32 %v1401_v39, %v1386_v59  ;;  %v4297_v7 = vpop.permute.xlu0 %1505  ;;  %v2900_v39 = vld [vmem:[%s4634_s4 + $0x188] sm:$0xff] }
 0x7d8   :  { %1767 = vperm.xlu1 %2815, %v4012_v18  }
 0x7d9   :  { %v1412_v27 = vpop.permute.xlu1 %1411 }
 0x7da   :  { %v1419_v14 = vmul.f32 %v2890_v52, %v1412_v27 }
 0x7db   :  { %v4304_v48 = vpop.permute.xlu0 %1523 }
 0x7dc   :  { %v1422_v4 = vadd.f32 %v1419_v14, %v1404_v12  ;;  %2816 = vset.pattern.permute.xlu1 %v4807_v29  ;;  %v2892_v29 = vld [vmem:[%s4634_s4 + $0xc8] sm:$0xff]  ;;  %v2901_v14 = vld [vmem:[%s4634_s4 + $0x1a0] sm:$0xff] }
 0x7dd   :  { %1789 = vperm.xlu1 %2816, %v4016_v28  }
 0x7de   :  { %v1430_v51 = vpop.permute.xlu1 %1429 }
 0x7df   :  { %v1437_v62 = vmul.f32 %v2891_v9, %v1430_v51  ;;  %v4311_v43 = vpop.permute.xlu0 %1541 }
 0x7e1   :  { %v1440_v35 = vadd.f32 %v1437_v62, %v1422_v4  ;;  %1785 = vperm.xlu1 %2816, %v4012_v18  }
 0x7e3   :  { %v1448_v49 = vpop.permute.xlu1 %1447  ;;  %v4322_v59 = vpop.permute.xlu0 %1559 }
 0x7e4   :  { %v1455_v37 = vmul.f32 %v2892_v29, %v1448_v49 }
 0x7e5   :  { %2817 = vset.pattern.permute.xlu1 %v4808_v17 }
 0x7e6   :  { %v1458_v23 = vadd.f32 %v1455_v37, %v1440_v35  ;;  %1807 = vperm.xlu1 %2817, %v4016_v28   ;;  %v2902_v35 = vld [vmem:[%s4634_s4 + $0x1b8] sm:$0xff] }
 0x7e7   :  { %v4330_v12 = vpop.permute.xlu0 %1577 }
 0x7e8   :  { %v1466_v53 = vpop.permute.xlu1 %1465 }
 0x7e9   :  { %v1473_v50 = vmul.f32 %v2893_v21, %v1466_v53  ;;  %v2903_v53 = vld [vmem:[%s4634_s4 + $0x1d0] sm:$0xff] }
 0x7ea   :  { %1803 = vperm.xlu1 %2817, %v4012_v18  }
 0x7eb   :  { %v1476_v24 = vadd.f32 %v1473_v50, %v1458_v23  ;;  %v4335_v51 = vpop.permute.xlu0 %1595 }
 0x7ed   :  { %v1484_v56 = vpop.permute.xlu1 %1483 }
 0x7ee   :  { %v1491_v17 = vmul.f32 %v2894_v26, %v1484_v56  ;;  %2818 = vset.pattern.permute.xlu1 %v4809_v34  ;;  %v2896_v34 = vld [vmem:[%s4634_s4 + $0x128] sm:$0xff] }
 0x7ef   :  { %1825 = vperm.xlu1 %2818, %v4016_v28   ;;  %v4340_v37 = vpop.permute.xlu0 %1613  ;;  %v2904_v26 = vld [vmem:[%s4634_s4 + $0x1e8] sm:$0xff] }
 0x7f0   :  { %v1494_v45 = vadd.f32 %v1491_v17, %v1476_v24 }
 0x7f2   :  { %v1502_v5 = vpop.permute.xlu1 %1501 }
 0x7f3   :  { %v1509_v1 = vmul.f32 %v2895_v63, %v1502_v5  ;;  %1821 = vperm.xlu1 %2818, %v4012_v18   ;;  %v4345_v24 = vpop.permute.xlu0 %1631 }
 0x7f5   :  { %v1512_v16 = vadd.f32 %v1509_v1, %v1494_v45  ;;  %v2905_v1 = vld [vmem:[%s4634_s4 + $0x200] sm:$0xff] }
 0x7f7   :  { %v1520_v57 = vpop.permute.xlu1 %1519  ;;  %2819 = vset.pattern.permute.xlu1 %v4810_v41  ;;  %v2100_v41 = vpop.f32.mrf.mxu1 }
 0x7f8   :  { %v1527_v46 = vmul.f32 %v2896_v34, %v1520_v57  ;;  %1843 = vperm.xlu1 %2819, %v4016_v28   ;;  %v4350_v63 = vpop.permute.xlu0 %1649 }
 0x7fa   :  { %v1530_v3 = vadd.f32 %v1527_v46, %v1512_v16 }
 0x7fc   :  { %v1538_v8 = vpop.permute.xlu1 %1537  ;;  %1839 = vperm.xlu1 %2819, %v4012_v18   ;;  %v4318_v18 = vadd.f32 %v3959_v2, %v2100_v41  ;;  %v4359_v46 = vpop.permute.xlu0 %1667  ;;  %v2907_v41 = vld [vmem:[%s4634_s4 + $0x10] sm:$0xff] }
 0x7fd   :  { %v1545_v58 = vmul.f32 %v2897_v15, %v1538_v8 }
 0x7ff   :  { %v1548_v30 = vadd.f32 %v1545_v58, %v1530_v3  ;;  %v2906_v58 = vld [vmem:[%s4634_s4 + $0x28] sm:$0xff] }
 0x800   :  { %2820 = vset.pattern.permute.xlu1 %v4811_v42  ;;  %v2899_v42 = vld [vmem:[%s4634_s4 + $0x170] sm:$0xff]  ;;  %v4363_v8 = vpop.permute.xlu0 %1685 }
 0x801   :  { %v1556_v33 = vpop.permute.xlu1 %1555  ;;  %1861 = vperm.xlu1 %2820, %v4016_v28  }
 0x802   :  { %v1563_v61 = vmul.f32 %v2898_v38, %v1556_v33  ;;  %v2908_v38 = vld [vmem:[%s4634_s4 + $0x40] sm:$0xff] }
 0x804   :  { %v1566_v22 = vadd.f32 %v1563_v61, %v1548_v30  ;;  %v1330_v30 = vmul.f32 %v2906_v58, %v4225_v11  ;;  %v1348_v61 = vmul.f32 %v2908_v38, %v4229_v54  ;;  %v2909_v11 = vld [vmem:[%s4634_s4 + $0x58] sm:$0xff]  ;;  %v2911_v54 = vld [vmem:[%s4634_s4 + $0x88] sm:$0xff] }
 0x805   :  { %2125 = vrot.lane.b32.xlu1 %v4318_v18, %s2995_s14 }
 0x806   :  { %v1574_v36 = vpop.permute.xlu1 %1573 }
 0x807   :  { %v1581_v28 = vmul.f32 %v2899_v42, %v1574_v36  ;;  %v4376_v36 = vpop.permute.xlu0 %1703 }
 0x809   :  { %v1584_v44 = vadd.f32 %v1581_v28, %v1566_v22 }
 0x80b   :  { %v1592_v0 = vpop.permute.xlu1 %1591 }
 0x80c   :  { %v1599_v2 = vmul.f32 %v2900_v39, %v1592_v0  ;;  %v2910_v0 = vld [vmem:[%s4634_s4 + $0x70] sm:$0xff] }
 0x80d   :  { %v1384_v39 = vmul.f32 %v2910_v0, %v4242_v25  ;;  %v2913_v25 = vld [vmem:[%s4634_s4 + $0xb8] sm:$0xff] }
 0x80e   :  { %v1602_v27 = vadd.f32 %v1599_v2, %v1584_v44 }
 0x810   :  { %v1610_v52 = vpop.permute.xlu1 %1609 }
 0x811   :  { %v1617_v4 = vmul.f32 %v2901_v14, %v1610_v52  ;;  %v4389_v52 = vpop.permute.xlu0 %1721 }
 0x813   :  { %v1620_v9 = vadd.f32 %v1617_v4, %v1602_v27  ;;  %v1402_v27 = vmul.f32 %v2911_v54, %v4252_v31 }
 0x815   :  { %v1628_v62 = vpop.permute.xlu1 %1627 }
 0x816   :  { %v1635_v49 = vmul.f32 %v2902_v35, %v1628_v62 }
 0x818   :  { %v1638_v29 = vadd.f32 %v1635_v49, %v1620_v9  ;;  %v2912_v9 = vld [vmem:[%s4634_s4 + $0xa0] sm:$0xff]  ;;  %v1438_v49 = vmul.f32 %v2913_v25, %v4266_v55 }
 0x819   :  { %v1420_v62 = vmul.f32 %v2912_v9, %v4259_v47  ;;  %v2915_v47 = vld [vmem:[%s4634_s4 + $0xe8] sm:$0xff]  ;;  %v2916_v55 = vld [vmem:[%s4634_s4 + $0x100] sm:$0xff] }
 0x81a   :  { %v1646_v23 = vpop.permute.xlu1 %1645 }
 0x81b   :  { %v1653_v21 = vmul.f32 %v2903_v53, %v1646_v23  ;;  %v2914_v23 = vld [vmem:[%s4634_s4 + $0xd0] sm:$0xff] }
 0x81c   :  { %v1456_v53 = vmul.f32 %v2914_v23, %v4273_v32  ;;  %v2917_v32 = vld [vmem:[%s4634_s4 + $0x118] sm:$0xff] }
 0x81d   :  { %v1656_v50 = vadd.f32 %v1653_v21, %v1638_v29  ;;  %v1740_v21 = vpop.permute.xlu0 %1739 }
 0x81f   :  { %v1664_v56 = vpop.permute.xlu1 %1663 }
 0x820   :  { %v1671_v17 = vmul.f32 %v2904_v26, %v1664_v56  ;;  %v1474_v56 = vmul.f32 %v2915_v47, %v4280_v10  ;;  %v2918_v10 = vld [vmem:[%s4634_s4 + $0x130] sm:$0xff] }
 0x822   :  { %v1674_v45 = vadd.f32 %v1671_v17, %v1656_v50 }
 0x824   :  { %v1682_v5 = vpop.permute.xlu1 %1681 }
 0x825   :  { %v1689_v16 = vmul.f32 %v2905_v1, %v1682_v5  ;;  %v1510_v1 = vmul.f32 %v2917_v32, %v4297_v7  ;;  %v2920_v7 = vld [vmem:[%s4634_s4 + $0x160] sm:$0xff] }
 0x827   :  { %v4355_v57 = vadd.f32 %v1689_v16, %v1674_v45  ;;  %v1492_v45 = vmul.f32 %v2916_v55, %v4290_v60  ;;  %v1758_v16 = vpop.permute.xlu0 %1757  ;;  %v2919_v60 = vld [vmem:[%s4634_s4 + $0x148] sm:$0xff] }
 0x829   :  { %v4357_v34 = vpop.permute.xlu1 %1699 }
 0x82e   :  { %v4361_v3 = vpop.permute.xlu1 %1717 }
 0x833   :  { %v1308_v15 = vpop.permute.xlu1 %1307 }
 0x834   :  { %v1312_v33 = vmul.f32 %v2907_v41, %v1308_v15 }
 0x836   :  { %v1333_v22 = vadd.f32 %v1330_v30, %v1312_v33  ;;  %v1528_v30 = vmul.f32 %v2918_v10, %v4304_v48  ;;  %v1546_v33 = vmul.f32 %v2919_v60, %v4311_v43  ;;  %v2921_v48 = vld [vmem:[%s4634_s4 + $0x178] sm:$0xff]  ;;  %v2922_v43 = vld [vmem:[%s4634_s4 + $0x190] sm:$0xff] }
 0x837   :  { %v1600_v0 = vmul.f32 %v2922_v43, %v4335_v51  ;;  %v2925_v51 = vld [vmem:[%s4634_s4 + $0x1d8] sm:$0xff]  ;;  %v2936_v43 = vld [vmem:[%s4634_s4 + $0x2b0] sm:$0xff] }
 0x838   :  { %v1351_v42 = vadd.f32 %v1348_v61, %v1333_v22  ;;  %v1362_v28 = vpop.permute.xlu1 %1361  ;;  %v1564_v61 = vmul.f32 %v2920_v7, %v4322_v59  ;;  %v1776_v22 = vpop.permute.xlu0 %1775  ;;  %v2923_v59 = vld [vmem:[%s4634_s4 + $0x1a8] sm:$0xff]  ;;  %v1654_v25 = vmul.f32 %v2925_v51, %v4350_v63  ;;  %v2928_v63 = vld [vmem:[%s4634_s4 + $0x220] sm:$0xff] }
 0x839   :  { %v1366_v44 = vmul.f32 %v2909_v11, %v1362_v28  ;;  %v1582_v11 = vmul.f32 %v2921_v48, %v4330_v12  ;;  %v1618_v54 = vmul.f32 %v2923_v59, %v4340_v37  ;;  %v2924_v12 = vld [vmem:[%s4634_s4 + $0x1c0] sm:$0xff]  ;;  %v2926_v37 = vld [vmem:[%s4634_s4 + $0x1f0] sm:$0xff]  ;;  %v2937_v59 = vld [vmem:[%s4634_s4 + $0x248] sm:$0xff] }
 0x83a   :  { %v1636_v9 = vmul.f32 %v2924_v12, %v4345_v24  ;;  %v2927_v24 = vld [vmem:[%s4634_s4 + $0x208] sm:$0xff]  ;;  %v2939_v12 = vld [vmem:[%s4634_s4 + $0x240] sm:$0xff] }
 0x83b   :  { %v1369_v2 = vadd.f32 %v1366_v44, %v1351_v42  ;;  %v1690_v47 = vmul.f32 %v2927_v24, %v4363_v8  ;;  %v2930_v8 = vld [vmem:[%s4634_s4 + $0x250] sm:$0xff]  ;;  %v2940_v51 = vld [vmem:[%s4634_s4 + $0x260] sm:$0xff] }
 0x83d   :  { %v1387_v14 = vadd.f32 %v1384_v39, %v1369_v2  ;;  %v4391_v4 = vpop.permute.xlu1 %1735 }
 0x83f   :  { %v1405_v35 = vadd.f32 %v1402_v27, %v1387_v14  ;;  %v1794_v27 = vpop.permute.xlu0 %1793 }
 0x841   :  { %v1423_v29 = vadd.f32 %v1420_v62, %v1405_v35  ;;  %v4401_v31 = vpop.permute.xlu1 %1731 }
 0x843   :  { %v1441_v50 = vadd.f32 %v1438_v49, %v1423_v29  ;;  %v1672_v29 = vmul.f32 %v2926_v37, %v4359_v46  ;;  %v1812_v23 = vpop.permute.xlu0 %1811  ;;  %v2929_v46 = vld [vmem:[%s4634_s4 + $0x238] sm:$0xff] }
 0x845   :  { %v1459_v26 = vadd.f32 %v1456_v53, %v1441_v50 }
 0x846   :  { %v4411_v17 = vpop.permute.xlu1 %1753 }
 0x847   :  { %v1477_v5 = vadd.f32 %v1474_v56, %v1459_v26  ;;  %v1708_v26 = vmul.f32 %v2928_v63, %v4376_v36  ;;  %v2931_v36 = vld [vmem:[%s4634_s4 + $0x268] sm:$0xff] }
 0x849   :  { %v1495_v15 = vadd.f32 %v1492_v45, %v1477_v5  ;;  %v1726_v45 = vmul.f32 %v2929_v46, %v4389_v52  ;;  %v1830_v5 = vpop.permute.xlu0 %1829  ;;  %v2932_v52 = vld [vmem:[%s4634_s4 + $0x280] sm:$0xff] }
 0x84a   :  { %v4421_v58 = vpop.permute.xlu1 %1749 }
 0x84b   :  { %v1513_v41 = vadd.f32 %v1510_v1, %v1495_v15  ;;  %v1744_v15 = vmul.f32 %v2930_v8, %v1740_v21 }
 0x84d   :  { %v1531_v38 = vadd.f32 %v1528_v30, %v1513_v41  ;;  %v1762_v30 = vmul.f32 %v2931_v36, %v1758_v16 }
 0x84f   :  { %v1549_v42 = vadd.f32 %v1546_v33, %v1531_v38  ;;  %v4435_v28 = vpop.permute.xlu1 %1771  ;;  %v1780_v33 = vmul.f32 %v2932_v52, %v1776_v22  ;;  %v1848_v38 = vpop.permute.xlu0 %1847 }
 0x851   :  { %v1567_v44 = vadd.f32 %v1564_v61, %v1549_v42  ;;  %v2933_v61 = vld [vmem:[%s4634_s4 + $0x218] sm:$0xff] }
 0x852   :  { %v1707_v21 = vmul.f32 %v2933_v61, %v4357_v34  ;;  %v2934_v42 = vld [vmem:[%s4634_s4 + $0x298] sm:$0xff] }
 0x853   :  { %v1585_v39 = vadd.f32 %v1582_v11, %v1567_v44  ;;  %v4445_v2 = vpop.permute.xlu1 %1767  ;;  %v1798_v16 = vmul.f32 %v2934_v42, %v1794_v27  ;;  %v2935_v11 = vld [vmem:[%s4634_s4 + $0x230] sm:$0xff]  ;;  %v2938_v27 = vld [vmem:[%s4634_s4 + $0x2c8] sm:$0xff] }
 0x854   :  { %v1725_v22 = vmul.f32 %v2935_v11, %v4361_v3  ;;  %v1710_v34 = vadd.f32 %v1707_v21, %v4355_v57  ;;  %v1834_v3 = vmul.f32 %v2938_v27, %v1830_v5  ;;  %v2946_v5 = vld [vmem:[%s4634_s4 + $0x290] sm:$0xff]  ;;  %v2955_v27 = vld [vmem:[%s4634_s4 + $0x2e8] sm:$0xff] }
 0x855   :  { %v1603_v14 = vadd.f32 %v1600_v0, %v1585_v39  ;;  %v1816_v0 = vmul.f32 %v2936_v43, %v1812_v23 }
 0x856   :  { %v1728_v57 = vadd.f32 %v1725_v22, %v1710_v34 }
 0x857   :  { %v1621_v62 = vadd.f32 %v1618_v54, %v1603_v14  ;;  %v1743_v54 = vmul.f32 %v2937_v59, %v4391_v4  ;;  %v1866_v14 = vpop.permute.xlu0 %1865  ;;  %v1761_v4 = vmul.f32 %v2940_v51, %v4411_v17  ;;  %v2954_v59 = vld [vmem:[%s4634_s4 + $0x2f0] sm:$0xff] }
 0x858   :  { %v4455_v35 = vpop.permute.xlu1 %1789 }
 0x859   :  { %v1639_v49 = vadd.f32 %v1636_v9, %v1621_v62  ;;  %v1742_v9 = vmul.f32 %v2939_v12, %v4401_v31 }
 0x85b   :  { %v1657_v53 = vadd.f32 %v1654_v25, %v1639_v49  ;;  %v2941_v49 = vld [vmem:[%s4634_s4 + $0x2e0] sm:$0xff]  ;;  %v1745_v17 = vadd.f32 %v1742_v9, %v4223_v40  ;;  %v1797_v40 = vmul.f32 %v2946_v5, %v4455_v35  ;;  %v1858_v43 = vpop.permute.xlu0 %1857  ;;  %v2956_v9 = vld [vmem:[%s4635_s5 + $0x18] sm:$0xff] }
 0x85c   :  { %v4465_v50 = vpop.permute.xlu1 %1785  ;;  %v1852_v37 = vmul.f32 %v2941_v49, %v1848_v38  ;;  %v2960_v49 = vld [vmem:[%s4637_s7] ss:$0 sm:$0xff] }
 0x85d   :  { %v1675_v56 = vadd.f32 %v1672_v29, %v1657_v53  ;;  %v2942_v29 = vld [vmem:[%s4634_s4 + $0x258] sm:$0xff] }
 0x85e   :  { %v1760_v31 = vmul.f32 %v2942_v29, %v4421_v58  ;;  %v2943_v53 = vld [vmem:[%s4634_s4 + $0x2f8] sm:$0xff] }
 0x85f   :  { %v1693_v55 = vadd.f32 %v1690_v47, %v1675_v56  ;;  %v1870_v24 = vmul.f32 %v2943_v53, %v1866_v14  ;;  %v1746_v47 = vadd.f32 %v1743_v54, %v1728_v57  ;;  %v2944_v56 = vld [vmem:[%s4634_s4 + $0x278] sm:$0xff]  ;;  %v2958_v57 = vld [vmem:[%s4635_s5 + $0x8] sm:$0xff] }
 0x860   :  { %v1779_v63 = vmul.f32 %v2944_v56, %v4435_v28 }
 0x861   :  { %v1808_v32 = vpop.permute.xlu1 %1807  ;;  %v1711_v1 = vadd.f32 %v1708_v26, %v1693_v55  ;;  %v2945_v26 = vld [vmem:[%s4634_s4 + $0x270] sm:$0xff]  ;;  %v1764_v46 = vadd.f32 %v1761_v4, %v1746_v47 }
 0x862   :  { %v1778_v58 = vmul.f32 %v2945_v26, %v4445_v2  ;;  %v2948_v2 = vld [vmem:[%s4634_s4 + $0x2a8] sm:$0xff] }
 0x863   :  { %v1729_v10 = vadd.f32 %v1726_v45, %v1711_v1  ;;  %v1763_v45 = vadd.f32 %v1760_v31, %v1745_v17  ;;  %v2947_v1 = vld [vmem:[%s4634_s4 + $0x288] sm:$0xff] }
 0x864   :  { %v1796_v28 = vmul.f32 %v2947_v1, %v4465_v50  ;;  %v2950_v50 = vld [vmem:[%s4634_s4 + $0x2c0] sm:$0xff] }
 0x865   :  { %v1804_v41 = vpop.permute.xlu1 %1803  ;;  %v1747_v60 = vadd.f32 %v1744_v15, %v1729_v10  ;;  %v1782_v10 = vadd.f32 %v1779_v63, %v1764_v46  ;;  %v1781_v36 = vadd.f32 %v1778_v58, %v1763_v45 }
 0x867   :  { %v1765_v7 = vadd.f32 %v1762_v30, %v1747_v60  ;;  %v1815_v30 = vmul.f32 %v2948_v2, %v1808_v32  ;;  %v2949_v60 = vld [vmem:[%s4634_s4 + $0x2a0] sm:$0xff]  ;;  %v1800_v52 = vadd.f32 %v1797_v40, %v1782_v10 }
 0x868   :  { %v1814_v35 = vmul.f32 %v2949_v60, %v1804_v41  ;;  %v2952_v41 = vld [vmem:[%s4634_s4 + $0x2d8] sm:$0xff]  ;;  %v2165_v10 = vld [vmem:[%s4639_s10] sm:$0xff] }
 0x869   :  { %v1783_v48 = vadd.f32 %v1780_v33, %v1765_v7  ;;  %v1799_v33 = vadd.f32 %v1796_v28, %v1781_v36  ;;  %v2951_v7 = vld [vmem:[%s4634_s4 + $0x2b8] sm:$0xff]  ;;  %v1818_v21 = vadd.f32 %v1815_v30, %v1800_v52  ;;  %v2162_v36 = vld [vmem:[%s4638_s9 + $0x8] sm:$0xff]  ;;  %v43_v60 = vld [vmem:[%s4640_s1] sm:$0xff] }
 0x86a   :  { %v1826_v44 = vpop.permute.xlu1 %1825  ;;  %v2161_v52 = vld [vmem:[%s4638_s9] sm:$0xff] }
 0x86b   :  { %v1801_v39 = vadd.f32 %v1798_v16, %v1783_v48  ;;  %v1833_v38 = vmul.f32 %v2950_v50, %v1826_v44  ;;  %v1817_v42 = vadd.f32 %v1814_v35, %v1799_v33  ;;  %v2953_v48 = vld [vmem:[%s4634_s4 + $0x2d0] sm:$0xff]  ;;  %v44_v35 = vld [vmem:[%s4640_s1 + $0x8] sm:$0xf] }
 0x86d   :  { %v1819_v62 = vadd.f32 %v1816_v0, %v1801_v39  ;;  %v1836_v22 = vadd.f32 %v1833_v38, %v1818_v21 }
 0x86e   :  { %v1822_v25 = vpop.permute.xlu1 %1821 }
 0x86f   :  { %v1837_v23 = vadd.f32 %v1834_v3, %v1819_v62  ;;  %v1832_v61 = vmul.f32 %v2951_v7, %v1822_v25  ;;  %v1868_v3 = vmul.f32 %v2955_v27, %v1858_v43  ;;  %v2957_v62 = vld [vmem:[%s4635_s5 + $0x10] sm:$0xff] }
 0x871   :  { %v1855_v55 = vadd.f32 %v1852_v37, %v1837_v23  ;;  %v1835_v44 = vadd.f32 %v1832_v61, %v1817_v42 }
 0x873   :  { %v1844_v8 = vpop.permute.xlu1 %1843  ;;  %v1873_v15 = vadd.f32 %v1870_v24, %v1855_v55  ;;  %v2128_v55 = vpop.permute.xlu0 %2127 }
 0x874   :  { %v1851_v16 = vmul.f32 %v2952_v41, %v1844_v8  ;;  %v2164_v8 = vld [vmem:[%s4638_s9 + $0x18] sm:$0xff] }
 0x875   :  { %2590 = vmatprep.subr.mxu0 %v1873_v15  ;;  %2626 = vmatprep.subr.mxu1 %v2164_v8 }
 0x876   :  { %2591 = vmatpush3.msra.mxu0 %v1873_v15  ;;  %v1854_v39 = vadd.f32 %v1851_v16, %v1836_v22  ;;  %v2163_v15 = vld [vmem:[%s4638_s9 + $0x10] sm:$0xff]  ;;  %2627 = vmatpush3.msra.mxu1 %v2164_v8 }
 0x877   :  { %v1840_v32 = vpop.permute.xlu1 %1839  ;;  %2628 = vmatprep.subr.mxu1 %v2163_v15 }
 0x878   :  { %v1850_v11 = vmul.f32 %v2953_v48, %v1840_v32  ;;  %2629 = vmatpush3.msra.mxu1 %v2163_v15 }
 0x879   :  { %2630 = vmatprep.subr.mxu1 %v2162_v36 }
 0x87a   :  { %v1853_v34 = vadd.f32 %v1850_v11, %v1835_v44  ;;  %2631 = vmatpush3.msra.mxu1 %v2162_v36  ;;  %v2479_v44 = vld [vmem:[%s4641_s11] ss:$0 sm:$0xff] }
 0x87b   :  { %2632 = vmatprep.subr.mxu1 %v2161_v52 }
 0x87c   :  { %v1862_v0 = vpop.permute.xlu1 %1861  ;;  %v1871_v12 = vadd.f32 %v1868_v3, %v1853_v34  ;;  %2633 = vmatpush3.msra.mxu1 %v2161_v52 }
 0x87d   :  { %v1869_v54 = vmul.f32 %v2954_v59, %v1862_v0 }
 0x87f   :  { %v1872_v14 = vadd.f32 %v1869_v54, %v1854_v39 }
 0x880   :  { %v2126_v5 = vpop.permute.xlu1 %2125 }
 0x881   :  { %2592 = vmatprep.subr.mxu0 %v1872_v14 }
 0x882   :  { %2593 = vmatpush3.msra.mxu0 %v1872_v14 }
 0x883   :  { %2594 = vmatprep.subr.mxu0 %v1871_v12 }
 0x884   :  { %2595 = vmatpush3.msra.mxu0 %v1871_v12 }
 0x885   :  { %2597 = vmatmul.mubr.msk.f32.vlgmr.msra.gmra.mxu0 %vm892_vm8, %v3939_v19  ;;  %2599 = vmatprep.subr.mxu0 %v2956_v9  ;;  %v2959_v19 = vld [vmem:[%s4635_s5] sm:$0xff] }
 0x886   :  { %2600 = vmatpush3.msra.mxu0 %v2956_v9 }
 0x887   :  { %2601 = vmatprep.subr.mxu0 %v2957_v62 }
 0x888   :  { %2602 = vmatpush3.msra.mxu0 %v2957_v62 }
 0x889   :  { %2603 = vmatprep.subr.mxu0 %v2958_v57 }
 0x88a   :  { %2604 = vmatpush3.msra.mxu0 %v2958_v57 }
 0x88b   :  { %2605 = vmatprep.subr.mxu0 %v2959_v19 }
 0x88c   :  { %2606 = vmatpush3.msra.mxu0 %v2959_v19 }
 0x88d   :  { %2621 = vmatprep.subr.mxu0 %v2165_v10 }
 0x945   :  { %v2598_v51 = vpop.f32.mrf.mxu0 }
 0x947   :  { %v1940_v4 = vpop.f32.mrf.mxu0 }
 0x948   :  { %2607 = vmatprep.mubr.msk.f32.mxu0 %vm980_vm9, %v1940_v4 }
 0x949   :  { %2608 = vmatmul.mubr.msk.f32.vlgmr.msra.gmra.mxu0 %vm980_vm9, %v2598_v51 }
 0x94a   :  { %2622 = vmatpush3.msra.mxu0 %v2165_v10  ;;  %2623 = vmatprep.mubr.msk.f32.mxu0 %vm2166_vm10, %v43_v60 }
 0x94d   :  { %2624 = vmatmul.mubr.msk.f32.vlgmr.msra.gmra.mxu0 %vm2166_vm10, %v44_v35 }
 0xa09   :  { %v2609_v25 = vpop.f32.mrf.mxu0 }
 0xa0a   :  { %v2027_v37 = vadd.f32 %v2960_v49, %v2609_v25 }
 0xa0b   :  { %v2021_v29 = vpop.f32.mrf.mxu0 }
 0xa0c   :  { %v2110_v31 = vadd.f32 %v4146_v13, %v2027_v37  ;;  %v2022_v23 = vadd.f32 %v2960_v49, %v2021_v29 }
 0xa0d   :  { %v2625_v22 = vpop.f32.mrf.mxu0 }
 0xa0e   :  { %v2474_v53 = vmul.f32 -1.442695, %v2110_v31  ;;  %v2109_v24 = vadd.f32 %v4318_v18, %v2022_v23 }
 0xa10   :  { %2861 = vpow2.f32 %v2474_v53  ;;  %v2473_v47 = vmul.f32 -1.442695, %v2109_v24 }
 0xa12   :  { %2863 = vpow2.f32 %v2473_v47 }
 0xa1d   :  { %v2862_v17 = vpop.eup %2861 }
 0xa1e   :  { %v2118_v56 = vadd.f32 1.0, %v2862_v17 }
 0xa1f   :  { %v2864_v63 = vpop.eup %2863 }
 0xa20   :  { %2865 = vrcp.f32 %v2118_v56  ;;  %v2117_v26 = vadd.f32 1.0, %v2864_v63 }
 0xa22   :  { %2867 = vrcp.f32 %v2117_v26 }
 0xa2d   :  { %v2866_v58 = vpop.eup %2865 }
 0xa2e   :  { %v2132_v46 = vmul.f32 %v2866_v58, %v2128_v55  ;;  %v2146_v33 = vsub.f32 1.0, %v2866_v58  ;;  %v2158_v38 = vmul.f32 %v2866_v58, %v3982_v20 }
 0xa2f   :  { %v2868_v45 = vpop.eup %2867 }
 0xa30   :  { %2137 = vrot.lane.b32.xlu0 %v2132_v46, %s2995_s14  ;;  %v2131_v13 = vmul.f32 %v2868_v45, %v2126_v5  ;;  %v2145_v61 = vsub.f32 1.0, %v2868_v45  ;;  %v2157_v42 = vmul.f32 %v2868_v45, %v3986_v6  ;;  %v2239_v6 = vpop.f32.mrf.mxu0 }
 0xa32   :  { %2135 = vrot.lane.b32.xlu1 %v2131_v13, %s2995_s14 }
 0xaa2   :  { %v2138_v18 = vpop.permute.xlu0 %2137 }
 0xaa3   :  { %v2142_v40 = vadd.f32 %v2138_v18, %v2027_v37 }
 0xaa4   :  { %v2136_v1 = vpop.permute.xlu1 %2135 }
 0xaa5   :  { %2869 = vtanh.f32 %v2142_v40  ;;  %v2141_v28 = vadd.f32 %v2136_v1, %v2022_v23 }
 0xaa7   :  { %2871 = vtanh.f32 %v2141_v28 }
 0xab2   :  { %v2870_v2 = vpop.eup %2869 }
 0xab3   :  { %2151 = vrot.lane.b32.xlu0 %v2870_v2, %s2997_s20 }
 0xab4   :  { %v2872_v30 = vpop.eup %2871 }
 0xab5   :  { %2149 = vrot.lane.b32.xlu1 %v2872_v30, %s2997_s20 }
 0xb25   :  { %v2152_v50 = vpop.permute.xlu0 %2151 }
 0xb26   :  { %v2156_v7 = vmul.f32 %v2152_v50, %v2146_v33 }
 0xb27   :  { %v2150_v32 = vpop.permute.xlu1 %2149 }
 0xb28   :  { %v2160_v21 = vadd.f32 %v2158_v38, %v2156_v7  ;;  %v2155_v41 = vmul.f32 %v2150_v32, %v2145_v61 }
 0xb2a   :  { %v2159_v16 = vadd.f32 %v2157_v42, %v2155_v41  ;;  %2252 = vrot.lane.b32.xlu0 %v2160_v21, %s2997_s20 }
 0xb2c   :  { %2250 = vrot.lane.b32.xlu1 %v2159_v16, %s2997_s20 }
 0xb9c   :  { %v2253_v11 = vpop.permute.xlu0 %2252 }
 0xb9e   :  { %v2251_v48 = vpop.permute.xlu1 %2250 }
 0xb9f   :  { %2634 = vmatprep.mubr.msk.f32.mxu1 %vm980_vm9, %v2251_v48 }
 0xba0   :  { %2635 = vmatmul.mubr.msk.f32.vlgmr.msra.gmra.mxu1 %vm980_vm9, %v2253_v11 }
 0xc60   :  { %v2636_v20 = vpop.f32.mrf.mxu1 }
 0xc61   :  { %v2330_v43 = vadd.f32 %v2636_v20, %v2625_v22 }
 0xc62   :  { %v2324_v0 = vpop.f32.mrf.mxu1 }
 0xc63   :  { %v2341_v39 = vadd.f32 %v2479_v44, %v2330_v43  ;;  %v2325_v34 = vadd.f32 %v2324_v0, %v2239_v6 }
 0xc65   :  { %2345 = vst.msk [vmem:[%s4642_s12 + $0x8] sm:$0xf] %vm2344_vm11, %v2341_v39  ;;  %v2340_v59 = vadd.f32 %v2479_v44, %v2325_v34 }
 0xc67   :  { %2343 = vst.msk [vmem:[%s4642_s12] sm:$0xff] %vm2342_vm12, %v2340_v59 }

// kernel: gnn_forward.5
= control target key start
LH: loop header
LB: loop body
LE: loop exit
PB: predicated region body
PF: predicated region fallthrough
CT: control target
= control target key end

     0   :  { %v3626_v4 = vmov 0.0   ;;  %s3613_s0 = inlined_call_operand.vmem [shape: f32[12,64], index: 0, kind: input, shape index: {}]   ;;  %s3614_s1 = inlined_call_operand.vmem [shape: s32[1,12], index: 1, kind: input, shape index: {}]   ;;  %s3615_s2 = inlined_call_operand.vmem [shape: f32[128,256], index: 2, kind: input, shape index: {}]   ;;  %s3616_s3 = inlined_call_operand.vmem [shape: f32[64,256], index: 3, kind: input, shape index: {}]   ;;  %s3617_s4 = inlined_call_operand.vmem [shape: f32[1,256], index: 4, kind: input, shape index: {}]   ;;  %s3618_s5 = inlined_call_operand.vmem [shape: f32[64,256], index: 5, kind: input, shape index: {}]   ;;  %s3619_s6 = inlined_call_operand.vmem [shape: f32[64,256], index: 6, kind: input, shape index: {}]   ;;  %s3620_s7 = inlined_call_operand.vmem [shape: f32[1,256], index: 7, kind: input, shape index: {}]   ;;  %s3621_s8 = inlined_call_operand.vmem [shape: f32[128,256], index: 8, kind: input, shape index: {}]   ;;  %s3622_s9 = inlined_call_operand.vmem [shape: f32[1,256], index: 9, kind: input, shape index: {}]   ;;  %s3623_s10 = inlined_call_operand.vmem [shape: f32[256,3], index: 10, kind: input, shape index: {}]   ;;  %s3624_s11 = inlined_call_operand.vmem [shape: f32[1,3], index: 11, kind: input, shape index: {}]   ;;  %s3625_s12 = inlined_call_operand.hbm [shape: f32[2,3], index: 12, kind: output, shape index: {}]  }
   0x1   :  { %v2546_v0 = vld [vmem:[%s3615_s2 + $0xf8] sm:$0xff]  ;;  %v2551_v1 = vld [vmem:[%s3615_s2 + $0xf0] sm:$0xff]  ;;  %v2556_v2 = vld [vmem:[%s3615_s2 + $0xe8] sm:$0xff]  ;;  %154 = vmatprep.mubr.f32.mxu0 %v3626_v4  ;;  %453 = vmatprep.mubr.f32.mxu1 %v3626_v4 }
   0x2   :  { %106 = vmatprep.subr.mxu0 %v2546_v0  ;;  %v2562_v3 = vld [vmem:[%s3615_s2 + $0xe0] sm:$0xff]  ;;  %v2569_v5 = vld [vmem:[%s3615_s2 + $0xd8] sm:$0xff]  ;;  %v2576_v6 = vld [vmem:[%s3615_s2 + $0xd0] sm:$0xff] }
   0x3   :  { %107 = vmatpush1.msra.mxu0 %v2551_v1  ;;  %v2582_v7 = vld [vmem:[%s3615_s2 + $0xc8] sm:$0xff]  ;;  %v2588_v8 = vld [vmem:[%s3615_s2 + $0xc0] sm:$0xff]  ;;  %v2594_v9 = vld [vmem:[%s3615_s2 + $0xb8] sm:$0xff] }
   0x4   :  { %108 = vmatprep.subr.mxu0 %v2556_v2  ;;  %v2600_v10 = vld [vmem:[%s3615_s2 + $0xb0] sm:$0xff]  ;;  %v2606_v11 = vld [vmem:[%s3615_s2 + $0xa8] sm:$0xff]  ;;  %v2612_v12 = vld [vmem:[%s3615_s2 + $0xa0] sm:$0xff] }
   0x5   :  { %109 = vmatpush1.msra.mxu0 %v2562_v3  ;;  %v2618_v13 = vld [vmem:[%s3615_s2 + $0x98] sm:$0xff]  ;;  %v2624_v14 = vld [vmem:[%s3615_s2 + $0x90] sm:$0xff]  ;;  %v2630_v15 = vld [vmem:[%s3615_s2 + $0x88] sm:$0xff] }
   0x6   :  { %110 = vmatprep.subr.mxu0 %v2569_v5  ;;  %v2636_v16 = vld [vmem:[%s3615_s2 + $0x80] sm:$0xff]  ;;  %v2642_v17 = vld [vmem:[%s3615_s2 + $0x78] sm:$0xff]  ;;  %v2648_v18 = vld [vmem:[%s3615_s2 + $0x70] sm:$0xff] }
   0x7   :  { %111 = vmatpush1.msra.mxu0 %v2576_v6  ;;  %3703 = vst [vmem:[#allocation5_spill] sm:$0xff] %v2642_v17  ;;  %v2654_v19 = vld [vmem:[%s3615_s2 + $0x68] sm:$0xff] }
   0x8   :  { %112 = vmatprep.subr.mxu0 %v2582_v7 }
   0x9   :  { %113 = vmatpush1.msra.mxu0 %v2588_v8 }
   0xa   :  { %114 = vmatprep.subr.mxu0 %v2594_v9 }
   0xb   :  { %115 = vmatpush1.msra.mxu0 %v2600_v10 }
   0xc   :  { %116 = vmatprep.subr.mxu0 %v2606_v11 }
   0xd   :  { %117 = vmatpush1.msra.mxu0 %v2612_v12 }
   0xe   :  { %118 = vmatprep.subr.mxu0 %v2618_v13 }
   0xf   :  { %119 = vmatpush1.msra.mxu0 %v2624_v14 }
  0x10   :  { %120 = vmatprep.subr.mxu0 %v2630_v15 }
  0x11   :  { %121 = vmatpush1.msra.mxu0 %v2636_v16 }
  0x12   :  { %17 = vsyncpa [#allocation3], 0  ;;  %155 = vmatmul.mubr.f32.vlgmr.msra.gmra.mxu0 %v3626_v4  ;;  %177 = vmatprep.subr.mxu0 %v2642_v17  ;;  %v2661_v20 = vld [vmem:[%s3615_s2 + $0x60] sm:$0xff]  ;;  %v2667_v21 = vld [vmem:[%s3615_s2 + $0x58] sm:$0xff]  ;;  %v44_v49 = vlaneseq  ;;  %vm86_vm0 = vcmask 523264   ;;  %vm2476_vm1 = vmmov 0  }
  0x13   :  { %178 = vmatpush1.msra.mxu0 %v2648_v18  ;;  %225 = vmatprep.mubr.f32.mxu0 %v3626_v4  ;;  %v2674_v22 = vld [vmem:[%s3615_s2 + $0x50] sm:$0xff]  ;;  %v2680_v23 = vld [vmem:[%s3615_s2 + $0x48] sm:$0xff]  ;;  %v2686_v24 = vld [vmem:[%s3615_s2 + $0x40] sm:$0xff]  ;;  %vm655_vm4 = vcmask 91136   ;;  %vm673_vm5 = vcmask 1043456   ;;  %vm669_vm6 = vcmask 97280  }
  0x14   :  { %179 = vmatprep.subr.mxu0 %v2654_v19  ;;  %v2692_v25 = vld [vmem:[%s3615_s2 + $0x38] sm:$0xff]  ;;  %v2698_v26 = vld [vmem:[%s3615_s2 + $0x30] sm:$0xff]  ;;  %v2704_v27 = vld [vmem:[%s3615_s2 + $0x28] sm:$0xff]  ;;  %v2839_v51 = vshrl.u32 %v44_v49, 7  ;;  %vm2198_vm7 = vcmask 17408  }
  0x15   :  { %180 = vmatpush1.msra.mxu0 %v2661_v20  ;;  %v2710_v28 = vld [vmem:[%s3615_s2 + $0x20] sm:$0xff]  ;;  %v2716_v29 = vld [vmem:[%s3615_s2 + $0x18] sm:$0xff]  ;;  %v2722_v30 = vld [vmem:[%s3615_s2 + $0x10] sm:$0xff] }
  0x16   :  { %181 = vmatprep.subr.mxu0 %v2667_v21  ;;  %3704 = vst [vmem:[#allocation6_spill] sm:$0xff] %v2710_v28  ;;  %3705 = vst [vmem:[#allocation7_spill] sm:$0xff] %v2716_v29  ;;  %v2728_v31 = vld [vmem:[%s3615_s2 + $0x8] sm:$0xff]  ;;  %v2734_v32 = vld [vmem:[%s3615_s2] sm:$0xff]  ;;  %v2842_v54 = vsub.s32 0, %v2839_v51  ;;  %v2852_v63 = vsub.s32 1, %v2839_v51 }
  0x17   :  { %182 = vmatpush1.msra.mxu0 %v2674_v22  ;;  %3706 = vst [vmem:[#allocation8_spill] sm:$0xff] %v2722_v30  ;;  %3707 = vst [vmem:[#allocation9_spill] sm:$0xff] %v2728_v31  ;;  %v2740_v33 = vld [vmem:[%s3616_s3 + $0x78] sm:$0xff]  ;;  %v2746_v34 = vld [vmem:[%s3616_s3 + $0x70] sm:$0xff] }
  0x18   :  { %183 = vmatprep.subr.mxu0 %v2680_v23  ;;  %3708 = vst [vmem:[#allocation10_spill] sm:$0xff] %v2734_v32  ;;  %3709 = vst [vmem:[#allocation11_spill] sm:$0xff] %v2746_v34  ;;  %v2752_v35 = vld [vmem:[%s3616_s3 + $0x68] sm:$0xff]  ;;  %v2759_v36 = vld [vmem:[%s3616_s3 + $0x60] sm:$0xff] }
  0x19   :  { %184 = vmatpush1.msra.mxu0 %v2686_v24  ;;  %3710 = vst [vmem:[#allocation12_spill] sm:$0xff] %v2752_v35  ;;  %3711 = vst [vmem:[#allocation13_spill] sm:$0xff] %v2759_v36  ;;  %v2765_v37 = vld [vmem:[%s3616_s3 + $0x58] sm:$0xff]  ;;  %v2772_v38 = vld [vmem:[%s3616_s3 + $0x50] sm:$0xff] }
  0x1a   :  { %185 = vmatprep.subr.mxu0 %v2692_v25  ;;  %3712 = vst [vmem:[#allocation14_spill] sm:$0xff] %v2765_v37  ;;  %3713 = vst [vmem:[#allocation15_spill] sm:$0xff] %v2772_v38  ;;  %v2778_v39 = vld [vmem:[%s3616_s3 + $0x48] sm:$0xff]  ;;  %v2784_v40 = vld [vmem:[%s3616_s3 + $0x40] sm:$0xff] }
  0x1b   :  { %186 = vmatpush1.msra.mxu0 %v2698_v26  ;;  %3714 = vst [vmem:[#allocation16_spill] sm:$0xff] %v2778_v39  ;;  %3715 = vst [vmem:[#allocation17_spill] sm:$0xff] %v2784_v40  ;;  %v2790_v41 = vld [vmem:[%s3616_s3 + $0x38] sm:$0xff]  ;;  %v2796_v42 = vld [vmem:[%s3616_s3 + $0x30] sm:$0xff] }
  0x1c   :  { %187 = vmatprep.subr.mxu0 %v2704_v27  ;;  %3716 = vst [vmem:[#allocation18_spill] sm:$0xff] %v2790_v41  ;;  %3717 = vst [vmem:[#allocation19_spill] sm:$0xff] %v2796_v42  ;;  %v2802_v43 = vld [vmem:[%s3616_s3 + $0x28] sm:$0xff]  ;;  %v2808_v44 = vld [vmem:[%s3616_s3 + $0x20] sm:$0xff] }
  0x1d   :  { %188 = vmatpush1.msra.mxu0 %v2710_v28  ;;  %3718 = vst [vmem:[#allocation20_spill] sm:$0xff] %v2802_v43  ;;  %3719 = vst [vmem:[#allocation21_spill] sm:$0xff] %v2808_v44  ;;  %v2814_v45 = vld [vmem:[%s3616_s3 + $0x18] sm:$0xff]  ;;  %v2820_v46 = vld [vmem:[%s3616_s3 + $0x10] sm:$0xff] }
  0x1e   :  { %189 = vmatprep.subr.mxu0 %v2716_v29  ;;  %3720 = vst [vmem:[#allocation22_spill] sm:$0xff] %v2814_v45  ;;  %3721 = vst [vmem:[#allocation23_spill] sm:$0xff] %v2820_v46  ;;  %v2826_v47 = vld [vmem:[%s3616_s3 + $0x8] sm:$0xff]  ;;  %v2832_v48 = vld [vmem:[%s3616_s3] sm:$0xff] }
  0x1f   :  { %190 = vmatpush1.msra.mxu0 %v2722_v30  ;;  %3722 = vst [vmem:[#allocation24_spill] sm:$0xff] %v2826_v47  ;;  %3723 = vst [vmem:[#allocation25_spill] sm:$0xff] %v2832_v48  ;;  %v321_v55 = vld [vmem:[%s3617_s4] sm:$0x3]  ;;  %s2475_s4 = smov 64  }
  0x20   :  { %191 = vmatprep.subr.mxu0 %v2728_v31  ;;  %3724 = vst [vmem:[#allocation26_spill] sm:$0xff] %v2842_v54  ;;  %v2848_v58 = vrot.slane %v321_v55, %v2842_v54  ;;  %3726 = vst [vmem:[#allocation28_spill] sm:$0xff] %v2852_v63 }
  0x21   :  { %192 = vmatpush1.msra.mxu0 %v2734_v32 }
  0x22   :  { %226 = vmatmul.mubr.f32.vlgmr.msra.gmra.mxu0 %v3626_v4  ;;  %264 = vmatprep.subr.mxu0 %v2740_v33  ;;  %3725 = vst [vmem:[#allocation27_spill] sm:$0xff] %v2848_v58 }
  0x23   :  { %265 = vmatpush1.msra.mxu0 %v2746_v34  ;;  %312 = vmatprep.mubr.f32.mxu0 %v3626_v4 }
  0x24   :  { %266 = vmatprep.subr.mxu0 %v2752_v35 }
  0x25   :  { %267 = vmatpush1.msra.mxu0 %v2759_v36 }
  0x26   :  { %268 = vmatprep.subr.mxu0 %v2765_v37 }
  0x27   :  { %269 = vmatpush1.msra.mxu0 %v2772_v38 }
  0x28   :  { %270 = vmatprep.subr.mxu0 %v2778_v39  ;;  %v3050_v39 = vld [vmem:[%s3618_s5] sm:$0xff] }
  0x29   :  { %271 = vmatpush1.msra.mxu0 %v2784_v40  ;;  %v3038_v40 = vld [vmem:[%s3619_s6] sm:$0xff]  ;;  %3744 = vst [vmem:[#allocation46_spill] sm:$0xff] %v3050_v39 }
  0x2a   :  { %272 = vmatprep.subr.mxu0 %v2790_v41  ;;  %v3026_v41 = vld [vmem:[%s3619_s6 + $0x8] sm:$0xff] }
  0x2b   :  { %273 = vmatpush1.msra.mxu0 %v2796_v42  ;;  %v3014_v42 = vld [vmem:[%s3619_s6 + $0x10] sm:$0xff] }
  0x2c   :  { %274 = vmatprep.subr.mxu0 %v2802_v43  ;;  %v3002_v43 = vld [vmem:[%s3619_s6 + $0x18] sm:$0xff] }
  0x2d   :  { %275 = vmatpush1.msra.mxu0 %v2808_v44  ;;  %v2990_v44 = vld [vmem:[%s3619_s6 + $0x20] sm:$0xff] }
  0x2e   :  { %276 = vmatprep.subr.mxu0 %v2814_v45  ;;  %v2978_v45 = vld [vmem:[%s3619_s6 + $0x28] sm:$0xff] }
  0x2f   :  { %277 = vmatpush1.msra.mxu0 %v2820_v46 }
  0x30   :  { %278 = vmatprep.subr.mxu0 %v2826_v47  ;;  %v2855_v47 = vrot.slane %v321_v55, %v2852_v63  ;;  %v2889_v55 = vld [vmem:[%s3619_s6 + $0x60] sm:$0xff] }
  0x31   :  { %279 = vmatpush1.msra.mxu0 %v2832_v48 }
  0x32   :  { %313 = vmatmul.mubr.f32.vlgmr.msra.gmra.mxu0 %v3626_v4  ;;  %3727 = vst [vmem:[#allocation29_spill] sm:$0xff] %v2855_v47 }
  0x33   :  { %529 = vmatprep.mubr.f32.mxu0 %v3626_v4 }
  0xd2   :  { %v156_v50 = vpop.f32.mrf.mxu0 }
  0xd4   :  { %v158_v52 = vpop.f32.mrf.mxu0 }
  0xe2   :  { %v227_v53 = vpop.f32.mrf.mxu0 }
  0xe3   :  { %v228_v57 = vadd.f32 %v227_v53, %v156_v50 }
  0xe4   :  { %v229_v56 = vpop.f32.mrf.mxu0 }
  0xe5   :  { %v230_v4 = vadd.f32 %v229_v56, %v158_v52  ;;  %v2884_v52 = vld [vmem:[%s3618_s5 + $0x78] sm:$0xff]  ;;  %v2894_v56 = vld [vmem:[%s3618_s5 + $0x70] sm:$0xff] }
  0xe6   :  { %3729 = vst [vmem:[#allocation31_spill] sm:$0xff] %v2884_v52  ;;  %3730 = vst [vmem:[#allocation32_spill] sm:$0xff] %v2894_v56  ;;  %481 = vmatprep.subr.mxu0 %v2884_v52  ;;  %v2966_v52 = vld [vmem:[%s3619_s6 + $0x30] sm:$0xff] }
  0xe7   :  { %482 = vmatpush1.msra.mxu0 %v2894_v56  ;;  %v2954_v56 = vld [vmem:[%s3619_s6 + $0x38] sm:$0xff] }
  0xf2   :  { %v314_v59 = vpop.f32.mrf.mxu0 }
  0xf3   :  { %v319_v60 = vadd.f32 %v314_v59, %v228_v57 }
  0xf4   :  { %v316_v49 = vpop.f32.mrf.mxu0 }
  0xf5   :  { %v333_v61 = vadd.f32 %v2848_v58, %v319_v60  ;;  %v320_v48 = vadd.f32 %v316_v49, %v230_v4  ;;  %v2868_v4 = vld [vmem:[%s3619_s6 + $0x78] sm:$0xff]  ;;  %v2913_v49 = vld [vmem:[%s3619_s6 + $0x50] sm:$0xff]  ;;  %v2942_v58 = vld [vmem:[%s3619_s6 + $0x40] sm:$0xff] }
  0xf6   :  { %3728 = vst [vmem:[#allocation30_spill] sm:$0xff] %v2868_v4  ;;  %405 = vmatprep.subr.mxu1 %v2868_v4 }
  0xf7   :  { %v2216_v62 = vmul.f32 -1.442695, %v333_v61  ;;  %v2858_v50 = vadd.f32 %v2855_v47, %v320_v48  ;;  %v2873_v48 = vld [vmem:[%s3619_s6 + $0x70] sm:$0xff]  ;;  %v2901_v61 = vld [vmem:[%s3619_s6 + $0x58] sm:$0xff] }
  0xf8   :  { %406 = vmatpush1.msra.mxu1 %v2873_v48  ;;  %v2935_v47 = vld [vmem:[%s3618_s5 + $0x50] sm:$0xff] }
  0xf9   :  { %2356 = vpow2.f32 %v2216_v62  ;;  %v2906_v62 = vld [vmem:[%s3618_s5 + $0x68] sm:$0xff]  ;;  %3734 = vst [vmem:[#allocation36_spill] sm:$0xff] %v2935_v47 }
  0xfa   :  { %2358 = vtanh.f32 %v2858_v50  ;;  %3731 = vst [vmem:[#allocation33_spill] sm:$0xff] %v2906_v62  ;;  %483 = vmatprep.subr.mxu0 %v2906_v62  ;;  %v2947_v62 = vld [vmem:[%s3618_s5 + $0x48] sm:$0xff] }
  0xfb   :  { %3735 = vst [vmem:[#allocation37_spill] sm:$0xff] %v2947_v62 }
 0x106   :  { %v2357_v53 = vpop.eup %2356 }
 0x107   :  { %v338_v46 = vadd.f32 1.0, %v2357_v53  ;;  %v2359_v57 = vpop.eup %2358  ;;  %v2918_v53 = vld [vmem:[%s3618_s5 + $0x60] sm:$0xff] }
 0x108   :  { %3732 = vst [vmem:[#allocation34_spill] sm:$0xff] %v2918_v53  ;;  %484 = vmatpush1.msra.mxu0 %v2918_v53  ;;  %v2959_v53 = vld [vmem:[%s3618_s5 + $0x40] sm:$0xff] }
 0x109   :  { %2360 = vrcp.f32 %v338_v46  ;;  %v2878_v46 = vld [vmem:[%s3619_s6 + $0x68] sm:$0xff]  ;;  %3736 = vst [vmem:[#allocation38_spill] sm:$0xff] %v2959_v53 }
 0x10a   :  { %407 = vmatprep.subr.mxu1 %v2878_v46 }
 0x10b   :  { %408 = vmatpush1.msra.mxu1 %v2889_v55 }
 0x10c   :  { %409 = vmatprep.subr.mxu1 %v2901_v61 }
 0x10d   :  { %410 = vmatpush1.msra.mxu1 %v2913_v49 }
 0x116   :  { %v2861_v59 = vpop.eup %2360 }
 0x117   :  { %v349_v60 = vmul.f32 %v2861_v59, %v2359_v57  ;;  %v2923_v57 = vld [vmem:[%s3618_s5 + $0x58] sm:$0xff]  ;;  %v348_v36 = vmul.f32 0.0, %v2861_v59 }
 0x118   :  { %3733 = vst [vmem:[#allocation35_spill] sm:$0xff] %v2923_v57  ;;  %485 = vmatprep.subr.mxu0 %v2923_v57  ;;  %v2971_v57 = vld [vmem:[%s3618_s5 + $0x38] sm:$0xff] }
 0x119   :  { %351 = vrot.lane.b32.xlu0 %v349_v60, %s2475_s4  ;;  %v2930_v60 = vld [vmem:[%s3619_s6 + $0x48] sm:$0xff]  ;;  %486 = vmatpush1.msra.mxu0 %v2935_v47  ;;  %3737 = vst [vmem:[#allocation39_spill] sm:$0xff] %v2971_v57  ;;  %v2983_v47 = vld [vmem:[%s3618_s5 + $0x30] sm:$0xff] }
 0x11a   :  { %411 = vmatprep.subr.mxu1 %v2930_v60  ;;  %487 = vmatprep.subr.mxu0 %v2947_v62  ;;  %3738 = vst [vmem:[#allocation40_spill] sm:$0xff] %v2983_v47  ;;  %v2995_v62 = vld [vmem:[%s3618_s5 + $0x28] sm:$0xff] }
 0x11b   :  { %412 = vmatpush1.msra.mxu1 %v2942_v58  ;;  %488 = vmatpush1.msra.mxu0 %v2959_v53  ;;  %3739 = vst [vmem:[#allocation41_spill] sm:$0xff] %v2995_v62  ;;  %v3007_v53 = vld [vmem:[%s3618_s5 + $0x20] sm:$0xff] }
 0x11c   :  { %413 = vmatprep.subr.mxu1 %v2954_v56  ;;  %489 = vmatprep.subr.mxu0 %v2971_v57  ;;  %3740 = vst [vmem:[#allocation42_spill] sm:$0xff] %v3007_v53  ;;  %v3019_v57 = vld [vmem:[%s3618_s5 + $0x18] sm:$0xff] }
 0x11d   :  { %414 = vmatpush1.msra.mxu1 %v2966_v52  ;;  %490 = vmatpush1.msra.mxu0 %v2983_v47  ;;  %3741 = vst [vmem:[#allocation43_spill] sm:$0xff] %v3019_v57  ;;  %v3031_v47 = vld [vmem:[%s3618_s5 + $0x10] sm:$0xff] }
 0x11e   :  { %415 = vmatprep.subr.mxu1 %v2978_v45  ;;  %491 = vmatprep.subr.mxu0 %v2995_v62  ;;  %3742 = vst [vmem:[#allocation44_spill] sm:$0xff] %v3031_v47  ;;  %v3043_v62 = vld [vmem:[%s3618_s5 + $0x8] sm:$0xff] }
 0x11f   :  { %416 = vmatpush1.msra.mxu1 %v2990_v44  ;;  %492 = vmatpush1.msra.mxu0 %v3007_v53  ;;  %3743 = vst [vmem:[#allocation45_spill] sm:$0xff] %v3043_v62  ;;  %v3745_v53 = vmov 0.0  }
 0x120   :  { %417 = vmatprep.subr.mxu1 %v3002_v43  ;;  %493 = vmatprep.subr.mxu0 %v3019_v57  ;;  %v2217_v57 = vmul.f32 -1.442695, %v2858_v50 }
 0x121   :  { %418 = vmatpush1.msra.mxu1 %v3014_v42  ;;  %494 = vmatpush1.msra.mxu0 %v3031_v47 }
 0x122   :  { %419 = vmatprep.subr.mxu1 %v3026_v41  ;;  %495 = vmatprep.subr.mxu0 %v3043_v62  ;;  %2362 = vpow2.f32 %v2217_v57 }
 0x123   :  { %420 = vmatpush1.msra.mxu1 %v3038_v40  ;;  %496 = vmatpush1.msra.mxu0 %v3050_v39 }
 0x124   :  { %454 = vmatmul.mubr.f32.vlgmr.msra.gmra.mxu1 %v3745_v53  ;;  %836 = vmatprep.subr.mxu0 %v2642_v17 }
 0x125   :  { %2310 = vmatprep.subr.mxu1 %v3745_v53  ;;  %2314 = vmatprep.mubr.msk.f32.mxu1 %vm2476_vm1, %v3745_v53 }
 0x12f   :  { %v2363_v38 = vpop.eup %2362 }
 0x130   :  { %v345_v37 = vadd.f32 1.0, %v2363_v38 }
 0x132   :  { %2364 = vrcp.f32 %v345_v37 }
 0x13f   :  { %v2365_v62 = vpop.eup %2364 }
 0x18b   :  { %v352_v47 = vpop.permute.xlu0 %351 }
 0x18c   :  { %v3062_v35 = vadd.f32 %v352_v47, %v348_v36 }
 0x18e   :  { %2366 = vtanh.f32 %v3062_v35 }
 0x19b   :  { %v2367_v34 = vpop.eup %2366 }
 0x19c   :  { %v356_v39 = vmul.f32 %v2367_v34, %v2365_v62  ;;  %v536_v34 = vld [vmem:[%s3620_s7] sm:$0x3] }
 0x19d   :  { %v3091_v36 = vrot.slane %v536_v34, %v2842_v54 }
 0x19e   :  { %461 = vrot.lane.b32.xlu0 %v356_v39, %s2475_s4 }
 0x1e4   :  { %v455_v37 = vpop.f32.mrf.mxu1 }
 0x1e6   :  { %v457_v62 = vpop.f32.mrf.mxu1 }
 0x210   :  { %v3066_v17 = vpop.permute.xlu0 %461 }
 0x211   :  { %2218 = vmatmul.mubr.msk.f32.vlgmr.msra.gmra.mxu0 %vm86_vm0, %v3066_v17 }
 0x212   :  { %837 = vmatpush1.msra.mxu0 %v2648_v18  ;;  %884 = vmatprep.mubr.f32.mxu0 %v3745_v53 }
 0x213   :  { %838 = vmatprep.subr.mxu0 %v2654_v19 }
 0x214   :  { %839 = vmatpush1.msra.mxu0 %v2661_v20 }
 0x215   :  { %840 = vmatprep.subr.mxu0 %v2667_v21 }
 0x216   :  { %841 = vmatpush1.msra.mxu0 %v2674_v22 }
 0x217   :  { %842 = vmatprep.subr.mxu0 %v2680_v23 }
 0x218   :  { %843 = vmatpush1.msra.mxu0 %v2686_v24 }
 0x219   :  { %844 = vmatprep.subr.mxu0 %v2692_v25 }
 0x21a   :  { %845 = vmatpush1.msra.mxu0 %v2698_v26 }
 0x21b   :  { %846 = vmatprep.subr.mxu0 %v2704_v27 }
 0x21c   :  { %847 = vmatpush1.msra.mxu0 %v2710_v28 }
 0x21d   :  { %848 = vmatprep.subr.mxu0 %v2716_v29 }
 0x21e   :  { %849 = vmatpush1.msra.mxu0 %v2722_v30 }
 0x21f   :  { %850 = vmatprep.subr.mxu0 %v2728_v31 }
 0x220   :  { %851 = vmatpush1.msra.mxu0 %v2734_v32  ;;  %v3095_v32 = vrot.slane %v536_v34, %v2852_v63  ;;  %v3771_v63 = vld [vmem:[#allocation41_spill] sm:$0xff] }
 0x221   :  { %1004 = vmatprep.subr.mxu0 %v2868_v4 }
 0x2d1   :  { %v531_v38 = vpop.f32.mrf.mxu0 }
 0x2d2   :  { %v532_v39 = vadd.f32 %v531_v38, %v455_v37  ;;  %v3102_v37 = vld [vmem:[%s3613_s0 + $0x8] sm:$0xf] }
 0x2d3   :  { %v533_v59 = vpop.f32.mrf.mxu0  ;;  %2311 = vmatpush3.xpose.msk.msra.mxu1 %vm86_vm0, %v3102_v37 }
 0x2d4   :  { %v548_v47 = vadd.f32 %v3091_v36, %v532_v39  ;;  %v534_v57 = vadd.f32 %v533_v59, %v457_v62  ;;  %2312 = vmatprep.subr.mxu1 %v3745_v53 }
 0x2d6   :  { %v2219_v50 = vmul.f32 -1.442695, %v548_v47  ;;  %v549_v4 = vadd.f32 %v3095_v32, %v534_v57 }
 0x2d8   :  { %2368 = vpow2.f32 %v2219_v50 }
 0x2d9   :  { %2370 = vtanh.f32 %v549_v4 }
 0x2e5   :  { %v2369_v31 = vpop.eup %2368 }
 0x2e6   :  { %v553_v30 = vadd.f32 1.0, %v2369_v31  ;;  %v2371_v54 = vpop.eup %2370 }
 0x2e8   :  { %2372 = vrcp.f32 %v553_v30  ;;  %v3112_v30 = vld [vmem:[%s3613_s0] sm:$0xff] }
 0x2e9   :  { %2313 = vmatpush3.xpose.msk.msra.mxu1 %vm86_vm0, %v3112_v30 }
 0x2ea   :  { %2317 = vmatprep.subr.mxu1 %v3745_v53 }
 0x2f5   :  { %v2373_v29 = vpop.eup %2372 }
 0x2f6   :  { %v564_v28 = vmul.f32 %v2373_v29, %v2371_v54  ;;  %v563_v34 = vmul.f32 0.0, %v2373_v29  ;;  %v2214_v29 = vld [vmem:[%s3614_s1] ss:$0 sm:$0xff] }
 0x2f7   :  { %vm51_vm2 = vcmp.eq.s32.totalorder %v2839_v51, %v2214_v29 }
 0x2f8   :  { %566 = vrot.lane.b32.xlu1 %v564_v28, %s2475_s4  ;;  %v2220_v28 = vmul.f32 -1.442695, %v549_v4  ;;  %v3156_v4 = vsel %vm51_vm2, 1.0, %v3745_v53 }
 0x2f9   :  { %vm653_vm3 = vcmp.gt.f32.partialorder %v3156_v4, 0.0  ;;  %v1925_v4 = vld [vmem:[%s3621_s8 + $0xe8] sm:$0xff] }
 0x2fa   :  { %2374 = vpow2.f32 %v2220_v28 }
 0x307   :  { %v2375_v31 = vpop.eup %2374 }
 0x308   :  { %v560_v54 = vadd.f32 1.0, %v2375_v31 }
 0x30a   :  { %2376 = vrcp.f32 %v560_v54 }
 0x317   :  { %v2377_v47 = vpop.eup %2376 }
 0x36a   :  { %v567_v38 = vpop.permute.xlu1 %566 }
 0x36b   :  { %v3117_v39 = vadd.f32 %v567_v38, %v563_v34 }
 0x36d   :  { %2378 = vtanh.f32 %v3117_v39 }
 0x37a   :  { %v2379_v50 = vpop.eup %2378 }
 0x37b   :  { %v571_v59 = vmul.f32 %v2379_v50, %v2377_v47 }
 0x37d   :  { %573 = vrot.lane.b32.xlu1 %v571_v59, %s2475_s4 }
 0x3ef   :  { %v574_v62 = vpop.permute.xlu1 %573 }
 0x3f0   :  { %2315 = vmatmul.mubr.msk.f32.vlgmr.msra.gmra.mxu1 %vm86_vm0, %v574_v62  ;;  %2227 = vmatmul.mubr.msk.f32.vlgmr.msra.gmra.mxu0 %vm86_vm0, %v574_v62 }
 0x3f1   :  { %1005 = vmatpush1.msra.mxu0 %v2873_v48  ;;  %1052 = vmatprep.mubr.f32.mxu0 %v3745_v53 }
 0x3f2   :  { %1006 = vmatprep.subr.mxu0 %v2878_v46  ;;  %2321 = vmatprep.mubr.msk.f32.mxu1 %vm2476_vm1, %v3745_v53 }
 0x3f3   :  { %1007 = vmatpush1.msra.mxu0 %v2889_v55  ;;  %2318 = vmatpush3.msk.msra.mxu1 %vm673_vm5, %v3102_v37 }
 0x3f4   :  { %1008 = vmatprep.subr.mxu0 %v2901_v61  ;;  %2319 = vmatprep.subr.mxu1 %v3745_v53 }
 0x3f5   :  { %1009 = vmatpush1.msra.mxu0 %v2913_v49  ;;  %2320 = vmatpush3.msra.mxu1 %v3112_v30 }
 0x3f6   :  { %1010 = vmatprep.subr.mxu0 %v2930_v60  ;;  %765 = vmatprep.subr.mxu1 %v2546_v0 }
 0x3f7   :  { %1011 = vmatpush1.msra.mxu0 %v2942_v58 }
 0x3f8   :  { %1012 = vmatprep.subr.mxu0 %v2954_v56 }
 0x3f9   :  { %1013 = vmatpush1.msra.mxu0 %v2966_v52 }
 0x3fa   :  { %1014 = vmatprep.subr.mxu0 %v2978_v45 }
 0x3fb   :  { %1015 = vmatpush1.msra.mxu0 %v2990_v44 }
 0x3fc   :  { %1016 = vmatprep.subr.mxu0 %v3002_v43 }
 0x3fd   :  { %1017 = vmatpush1.msra.mxu0 %v3014_v42 }
 0x3fe   :  { %1018 = vmatprep.subr.mxu0 %v3026_v41 }
 0x3ff   :  { %1019 = vmatpush1.msra.mxu0 %v3038_v40 }
 0x400   :  { %2231 = vmatmul.mubr.msk.f32.vlgmr.msra.gmra.mxu0 %vm86_vm0, %v574_v62  ;;  %2324 = vmatprep.subr.mxu0 %v3745_v53 }
 0x401   :  { %2325 = vmatpush3.xpose.msk.msra.mxu0 %vm86_vm0, %v3102_v37  ;;  %2328 = vmatprep.mubr.msk.f32.mxu0 %vm2476_vm1, %v3745_v53 }
 0x402   :  { %2326 = vmatprep.subr.mxu0 %v3745_v53 }
 0x405   :  { %2327 = vmatpush3.xpose.msk.msra.mxu0 %vm86_vm0, %v3112_v30 }
 0x406   :  { %2331 = vmatprep.subr.mxu0 %v3745_v53 }
 0x4b0   :  { %v649_v57 = vpop.f32.mrf.mxu1 }
 0x4b1   :  { %v654_v28 = vsel %vm653_vm3, %v649_v57, -1e+30 }
 0x4b2   :  { %v2316_v31 = vpop.f32.mrf.mxu1  ;;  %v656_v54 = vsel %vm655_vm4, %v654_v28, -inf }
 0x4b3   :  { %657 = vmax.xlane.f32.xlu0 %v656_v54  ;;  %v3756_v31 = vld [vmem:[#allocation21_spill] sm:$0xff]  ;;  %v3757_v54 = vld [vmem:[#allocation22_spill] sm:$0xff] }
 0x53c   :  { %v658_v34 = vpop.xlane.xlu0 %657 }
 0x53d   :  { %v659_v38 = vsub.f32 %v649_v57, %v658_v34  ;;  %v3758_v34 = vld [vmem:[#allocation23_spill] sm:$0xff] }
 0x53f   :  { %v660_v47 = vmul.f32 1.442695, %v659_v38  ;;  %v3759_v38 = vld [vmem:[#allocation24_spill] sm:$0xff] }
 0x541   :  { %2380 = vpow2.f32 %v660_v47  ;;  %v3760_v47 = vld [vmem:[#allocation25_spill] sm:$0xff] }
 0x54e   :  { %v2381_v50 = vpop.eup %2380 }
 0x54f   :  { %v662_v51 = vsel %vm653_vm3, %v2381_v50, 0.0  ;;  %v3761_v50 = vld [vmem:[#allocation31_spill] sm:$0xff] }
 0x550   :  { %v663_v59 = vsel %vm655_vm4, %v662_v51, 0.0 }
 0x551   :  { %664 = vadd.xlane.f32.xlu1 %v663_v59  ;;  %v3763_v59 = vld [vmem:[#allocation33_spill] sm:$0xff] }
 0x5da   :  { %v665_v62 = vpop.xlane.xlu1 %664 }
 0x5db   :  { %v666_v29 = vmax.f32 %v665_v62, 1e-30  ;;  %v3764_v62 = vld [vmem:[#allocation34_spill] sm:$0xff] }
 0x5dd   :  { %2382 = vrcp.f32 %v666_v29  ;;  %v3765_v29 = vld [vmem:[#allocation35_spill] sm:$0xff] }
 0x5ea   :  { %v2383_v57 = vpop.eup %2382 }
 0x5eb   :  { %v668_v28 = vmul.f32 %v2383_v57, %v662_v51  ;;  %v3762_v51 = vld [vmem:[#allocation32_spill] sm:$0xff] }
 0x5ec   :  { %v3766_v57 = vld [vmem:[#allocation36_spill] sm:$0xff] }
 0x5ed   :  { %2322 = vmatmul.mubr.msk.f32.vlgmr.msra.gmra.mxu1 %vm669_vm6, %v668_v28  ;;  %v3767_v28 = vld [vmem:[#allocation37_spill] sm:$0xff] }
 0x5ee   :  { %766 = vmatpush1.msra.mxu1 %v2551_v1  ;;  %813 = vmatprep.mubr.f32.mxu1 %v3745_v53 }
 0x5ef   :  { %767 = vmatprep.subr.mxu1 %v2556_v2  ;;  %v3746_v2 = vld [vmem:[#allocation11_spill] sm:$0xff] }
 0x5f0   :  { %768 = vmatpush1.msra.mxu1 %v2562_v3 }
 0x5f1   :  { %769 = vmatprep.subr.mxu1 %v2569_v5  ;;  %v3747_v5 = vld [vmem:[#allocation12_spill] sm:$0xff] }
 0x5f2   :  { %770 = vmatpush1.msra.mxu1 %v2576_v6  ;;  %v3748_v6 = vld [vmem:[#allocation13_spill] sm:$0xff] }
 0x5f3   :  { %771 = vmatprep.subr.mxu1 %v2582_v7  ;;  %v3749_v7 = vld [vmem:[#allocation14_spill] sm:$0xff] }
 0x5f4   :  { %772 = vmatpush1.msra.mxu1 %v2588_v8  ;;  %v3750_v8 = vld [vmem:[#allocation15_spill] sm:$0xff] }
 0x5f5   :  { %773 = vmatprep.subr.mxu1 %v2594_v9  ;;  %v3751_v9 = vld [vmem:[#allocation16_spill] sm:$0xff] }
 0x5f6   :  { %774 = vmatpush1.msra.mxu1 %v2600_v10  ;;  %v3752_v10 = vld [vmem:[#allocation17_spill] sm:$0xff] }
 0x5f7   :  { %775 = vmatprep.subr.mxu1 %v2606_v11  ;;  %v3753_v11 = vld [vmem:[#allocation18_spill] sm:$0xff] }
 0x5f8   :  { %776 = vmatpush1.msra.mxu1 %v2612_v12  ;;  %v3754_v12 = vld [vmem:[#allocation19_spill] sm:$0xff] }
 0x5f9   :  { %777 = vmatprep.subr.mxu1 %v2618_v13  ;;  %v3755_v13 = vld [vmem:[#allocation20_spill] sm:$0xff] }
 0x5fa   :  { %778 = vmatpush1.msra.mxu1 %v2624_v14 }
 0x5fb   :  { %779 = vmatprep.subr.mxu1 %v2630_v15 }
 0x5fc   :  { %780 = vmatpush1.msra.mxu1 %v2636_v16 }
 0x5fd   :  { %907 = vmatprep.subr.mxu1 %v2740_v33 }
 0x6ad   :  { %v742_v1 = vpop.f32.mrf.mxu1 }
 0x6ae   :  { %2226 = vmatmul.mubr.msk.f32.vlgmr.msra.gmra.mxu1 %vm86_vm0, %v742_v1  ;;  %v3768_v1 = vld [vmem:[#allocation38_spill] sm:$0xff] }
 0x6af   :  { %908 = vmatpush1.msra.mxu1 %v3746_v2  ;;  %v2323_v3 = vpop.f32.mrf.mxu1  ;;  %955 = vmatprep.mubr.f32.mxu1 %v3745_v53 }
 0x6b0   :  { %909 = vmatprep.subr.mxu1 %v3747_v5  ;;  %v3769_v3 = vld [vmem:[#allocation39_spill] sm:$0xff] }
 0x6b1   :  { %910 = vmatpush1.msra.mxu1 %v3748_v6 }
 0x6b2   :  { %911 = vmatprep.subr.mxu1 %v3749_v7 }
 0x6b3   :  { %912 = vmatpush1.msra.mxu1 %v3750_v8 }
 0x6b4   :  { %913 = vmatprep.subr.mxu1 %v3751_v9 }
 0x6b5   :  { %914 = vmatpush1.msra.mxu1 %v3752_v10 }
 0x6b6   :  { %915 = vmatprep.subr.mxu1 %v3753_v11 }
 0x6b7   :  { %916 = vmatpush1.msra.mxu1 %v3754_v12 }
 0x6b8   :  { %917 = vmatprep.subr.mxu1 %v3755_v13  ;;  %v3779_v13 = vld [vmem:[#allocation29_spill] sm:$0xff] }
 0x6b9   :  { %918 = vmatpush1.msra.mxu1 %v3756_v31 }
 0x6ba   :  { %919 = vmatprep.subr.mxu1 %v3757_v54 }
 0x6bb   :  { %920 = vmatpush1.msra.mxu1 %v3758_v34  ;;  %v3778_v34 = vld [vmem:[#allocation27_spill] sm:$0xff] }
 0x6bc   :  { %921 = vmatprep.subr.mxu1 %v3759_v38 }
 0x6bd   :  { %922 = vmatpush1.msra.mxu1 %v3760_v47 }
 0x6be   :  { %2228 = vmatmul.mubr.msk.f32.vlgmr.msra.gmra.mxu1 %vm86_vm0, %v3066_v17  ;;  %1080 = vmatprep.subr.mxu1 %v3761_v50  ;;  %v3770_v17 = vld [vmem:[#allocation40_spill] sm:$0xff]  ;;  %v3773_v50 = vld [vmem:[#allocation43_spill] sm:$0xff] }
 0x6bf   :  { %1081 = vmatpush1.msra.mxu1 %v3762_v51  ;;  %1128 = vmatprep.mubr.f32.mxu1 %v3745_v53  ;;  %v3772_v51 = vld [vmem:[#allocation42_spill] sm:$0xff] }
 0x6c0   :  { %1082 = vmatprep.subr.mxu1 %v3763_v59  ;;  %v3774_v59 = vld [vmem:[#allocation44_spill] sm:$0xff] }
 0x6c1   :  { %1083 = vmatpush1.msra.mxu1 %v3764_v62  ;;  %v3775_v62 = vld [vmem:[#allocation45_spill] sm:$0xff] }
 0x6c2   :  { %1084 = vmatprep.subr.mxu1 %v3765_v29  ;;  %v3776_v29 = vld [vmem:[#allocation46_spill] sm:$0xff] }
 0x6c3   :  { %1085 = vmatpush1.msra.mxu1 %v3766_v57  ;;  %v3777_v57 = vld [vmem:[#allocation5_spill] sm:$0xff] }
 0x6c4   :  { %1086 = vmatprep.subr.mxu1 %v3767_v28 }
 0x6c5   :  { %1087 = vmatpush1.msra.mxu1 %v3768_v1  ;;  %v886_v1 = vpop.f32.mrf.mxu0 }
 0x6c6   :  { %1088 = vmatprep.subr.mxu1 %v3769_v3 }
 0x6c7   :  { %1089 = vmatpush1.msra.mxu1 %v3770_v17 }
 0x6c8   :  { %1090 = vmatprep.subr.mxu1 %v3771_v63 }
 0x6c9   :  { %1091 = vmatpush1.msra.mxu1 %v3772_v51  ;;  %v888_v51 = vpop.f32.mrf.mxu0 }
 0x6ca   :  { %1092 = vmatprep.subr.mxu1 %v3773_v50 }
 0x6cb   :  { %1093 = vmatpush1.msra.mxu1 %v3774_v59 }
 0x6cc   :  { %1094 = vmatprep.subr.mxu1 %v3775_v62 }
 0x6cd   :  { %1095 = vmatpush1.msra.mxu1 %v3776_v29 }
 0x6ce   :  { %1411 = vmatprep.subr.mxu1 %v3777_v57 }
 0x76e   :  { %v815_v28 = vpop.f32.mrf.mxu1 }
 0x76f   :  { %v887_v3 = vadd.f32 %v886_v1, %v815_v28 }
 0x770   :  { %v817_v47 = vpop.f32.mrf.mxu1 }
 0x771   :  { %v889_v31 = vadd.f32 %v888_v51, %v817_v47 }
 0x77e   :  { %v957_v38 = vpop.f32.mrf.mxu1 }
 0x77f   :  { %v962_v17 = vadd.f32 %v957_v38, %v887_v3 }
 0x780   :  { %v959_v50 = vpop.f32.mrf.mxu1 }
 0x781   :  { %v964_v63 = vadd.f32 %v962_v17, %v3778_v34  ;;  %v963_v59 = vadd.f32 %v959_v50, %v889_v31 }
 0x783   :  { %v2229_v54 = vmul.f32 -1.442695, %v964_v63  ;;  %v965_v62 = vadd.f32 %v963_v59, %v3779_v13 }
 0x785   :  { %2384 = vpow2.f32 %v2229_v54  ;;  %v2230_v38 = vmul.f32 -1.442695, %v965_v62 }
 0x786   :  { %2386 = vtanh.f32 %v965_v62 }
 0x792   :  { %v2385_v12 = vpop.eup %2384 }
 0x793   :  { %v969_v29 = vadd.f32 1.0, %v2385_v12  ;;  %v2387_v57 = vpop.eup %2386 }
 0x795   :  { %2388 = vrcp.f32 %v969_v29 }
 0x796   :  { %2390 = vpow2.f32 %v2230_v38 }
 0x7a2   :  { %v2389_v11 = vpop.eup %2388 }
 0x7a3   :  { %v980_v10 = vmul.f32 %v2389_v11, %v2387_v57  ;;  %v2391_v28 = vpop.eup %2390  ;;  %v979_v54 = vmul.f32 %v2389_v11, %v3062_v35  ;;  %v3781_v35 = vld [vmem:[#allocation7_spill] sm:$0xff] }
 0x7a4   :  { %v976_v63 = vadd.f32 1.0, %v2391_v28 }
 0x7a5   :  { %982 = vrot.lane.b32.xlu0 %v980_v10, %s2475_s4 }
 0x7a6   :  { %2392 = vrcp.f32 %v976_v63 }
 0x7b3   :  { %v2393_v12 = vpop.eup %2392 }
 0x817   :  { %v983_v1 = vpop.permute.xlu0 %982 }
 0x818   :  { %v3229_v47 = vadd.f32 %v983_v1, %v979_v54 }
 0x81a   :  { %2394 = vtanh.f32 %v3229_v47 }
 0x827   :  { %v2395_v31 = vpop.eup %2394 }
 0x828   :  { %v987_v50 = vmul.f32 %v2395_v31, %v2393_v12 }
 0x82a   :  { %1060 = vrot.lane.b32.xlu1 %v987_v50, %s2475_s4 }
 0x89c   :  { %v3233_v51 = vpop.permute.xlu1 %1060 }
 0x89d   :  { %2232 = vmatmul.mubr.msk.f32.vlgmr.msra.gmra.mxu1 %vm86_vm0, %v3233_v51 }
 0x89e   :  { %1412 = vmatpush1.msra.mxu1 %v2648_v18  ;;  %1459 = vmatprep.mubr.f32.mxu1 %v3745_v53  ;;  %v3780_v18 = vld [vmem:[#allocation6_spill] sm:$0xff] }
 0x89f   :  { %1413 = vmatprep.subr.mxu1 %v2654_v19  ;;  %v3782_v19 = vld [vmem:[#allocation8_spill] sm:$0xff] }
 0x8a0   :  { %1414 = vmatpush1.msra.mxu1 %v2661_v20  ;;  %v3783_v20 = vld [vmem:[#allocation9_spill] sm:$0xff] }
 0x8a1   :  { %1415 = vmatprep.subr.mxu1 %v2667_v21  ;;  %v3784_v21 = vld [vmem:[#allocation10_spill] sm:$0xff] }
 0x8a2   :  { %1416 = vmatpush1.msra.mxu1 %v2674_v22  ;;  %v3785_v22 = vld [vmem:[#allocation30_spill] sm:$0xff] }
 0x8a3   :  { %1417 = vmatprep.subr.mxu1 %v2680_v23  ;;  %v1054_v23 = vpop.f32.mrf.mxu0 }
 0x8a4   :  { %1418 = vmatpush1.msra.mxu1 %v2686_v24 }
 0x8a5   :  { %1419 = vmatprep.subr.mxu1 %v2692_v25  ;;  %v1056_v11 = vpop.f32.mrf.mxu0 }
 0x8a6   :  { %1420 = vmatpush1.msra.mxu1 %v2698_v26 }
 0x8a7   :  { %1421 = vmatprep.subr.mxu1 %v2704_v27 }
 0x8a8   :  { %1422 = vmatpush1.msra.mxu1 %v3780_v18 }
 0x8a9   :  { %1423 = vmatprep.subr.mxu1 %v3781_v35 }
 0x8aa   :  { %1424 = vmatpush1.msra.mxu1 %v3782_v19 }
 0x8ab   :  { %1425 = vmatprep.subr.mxu1 %v3783_v20  ;;  %v2443_v20 = vld [vmem:[%s3615_s2 + $0xd8] sm:$0xff] }
 0x8ac   :  { %1426 = vmatpush1.msra.mxu1 %v3784_v21  ;;  %v2444_v21 = vld [vmem:[%s3615_s2 + $0xd0] sm:$0xff] }
 0x8ad   :  { %1579 = vmatprep.subr.mxu1 %v3785_v22  ;;  %v2445_v22 = vld [vmem:[%s3615_s2 + $0xc8] sm:$0xff] }
 0x95d   :  { %v1130_v24 = vpop.f32.mrf.mxu1 }
 0x95e   :  { %v1131_v10 = vadd.f32 %v1130_v24, %v1054_v23  ;;  %v2446_v23 = vld [vmem:[%s3615_s2 + $0xc0] sm:$0xff]  ;;  %v2447_v24 = vld [vmem:[%s3615_s2 + $0xb8] sm:$0xff] }
 0x95f   :  { %v1132_v27 = vpop.f32.mrf.mxu1 }
 0x960   :  { %v1135_v25 = vadd.f32 %v1131_v10, %v3091_v36  ;;  %v1133_v59 = vadd.f32 %v1132_v27, %v1056_v11  ;;  %v2448_v10 = vld [vmem:[%s3615_s2 + $0xb0] sm:$0xff]  ;;  %v2451_v27 = vld [vmem:[%s3615_s2 + $0x98] sm:$0xff] }
 0x962   :  { %v2233_v26 = vmul.f32 -1.442695, %v1135_v25  ;;  %v1136_v62 = vadd.f32 %v1133_v59, %v3095_v32  ;;  %v2449_v25 = vld [vmem:[%s3615_s2 + $0xa8] sm:$0xff] }
 0x964   :  { %2396 = vpow2.f32 %v2233_v26  ;;  %v2234_v28 = vmul.f32 -1.442695, %v1136_v62  ;;  %v2450_v26 = vld [vmem:[%s3615_s2 + $0xa0] sm:$0xff] }
 0x965   :  { %2398 = vtanh.f32 %v1136_v62  ;;  %v3791_v62 = vld [vmem:[#allocation22_spill] sm:$0xff] }
 0x971   :  { %v2397_v29 = vpop.eup %2396 }
 0x972   :  { %v1140_v3 = vadd.f32 1.0, %v2397_v29  ;;  %v2399_v17 = vpop.eup %2398  ;;  %v3797_v29 = vld [vmem:[#allocation33_spill] sm:$0xff] }
 0x974   :  { %2400 = vrcp.f32 %v1140_v3  ;;  %v3798_v3 = vld [vmem:[#allocation34_spill] sm:$0xff] }
 0x975   :  { %2402 = vpow2.f32 %v2234_v28  ;;  %v3802_v28 = vld [vmem:[#allocation38_spill] sm:$0xff] }
 0x981   :  { %v2401_v57 = vpop.eup %2400 }
 0x982   :  { %v1151_v38 = vmul.f32 %v2401_v57, %v2399_v17  ;;  %v2403_v63 = vpop.eup %2402  ;;  %v1150_v1 = vmul.f32 %v2401_v57, %v3117_v39  ;;  %v2442_v39 = vld [vmem:[%s3615_s2 + $0xe0] sm:$0xff]  ;;  %v3799_v17 = vld [vmem:[#allocation35_spill] sm:$0xff] }
 0x983   :  { %v1147_v54 = vadd.f32 1.0, %v2403_v63  ;;  %v3800_v57 = vld [vmem:[#allocation36_spill] sm:$0xff]  ;;  %v3803_v63 = vld [vmem:[#allocation39_spill] sm:$0xff] }
 0x984   :  { %1153 = vrot.lane.b32.xlu0 %v1151_v38, %s2475_s4  ;;  %v3801_v38 = vld [vmem:[#allocation37_spill] sm:$0xff] }
 0x985   :  { %2404 = vrcp.f32 %v1147_v54  ;;  %v3805_v54 = vld [vmem:[#allocation41_spill] sm:$0xff] }
 0x992   :  { %v2405_v50 = vpop.eup %2404 }
 0x9f6   :  { %v1154_v12 = vpop.permute.xlu0 %1153 }
 0x9f7   :  { %v3258_v31 = vadd.f32 %v1154_v12, %v1150_v1  ;;  %v3806_v1 = vld [vmem:[#allocation42_spill] sm:$0xff]  ;;  %v3807_v12 = vld [vmem:[#allocation43_spill] sm:$0xff] }
 0x9f9   :  { %2406 = vtanh.f32 %v3258_v31 }
 0xa06   :  { %v2407_v18 = vpop.eup %2406 }
 0xa07   :  { %v1158_v35 = vmul.f32 %v2407_v18, %v2405_v50  ;;  %v3808_v50 = vld [vmem:[#allocation44_spill] sm:$0xff]  ;;  %v3809_v18 = vld [vmem:[#allocation45_spill] sm:$0xff] }
 0xa09   :  { %1160 = vrot.lane.b32.xlu1 %v1158_v35, %s2475_s4  ;;  %v3810_v35 = vld [vmem:[#allocation46_spill] sm:$0xff] }
 0xa7b   :  { %v1161_v19 = vpop.permute.xlu1 %1160 }
 0xa7c   :  { %2329 = vmatmul.mubr.msk.f32.vlgmr.msra.gmra.mxu0 %vm86_vm0, %v1161_v19  ;;  %2241 = vmatmul.mubr.msk.f32.vlgmr.msra.gmra.mxu1 %vm86_vm0, %v1161_v19 }
 0xa7d   :  { %1580 = vmatpush1.msra.mxu1 %v2873_v48  ;;  %1627 = vmatprep.mubr.f32.mxu1 %v3745_v53 }
 0xa7e   :  { %1581 = vmatprep.subr.mxu1 %v2878_v46  ;;  %2332 = vmatpush3.msk.msra.mxu0 %vm673_vm5, %v3102_v37 }
 0xa7f   :  { %1582 = vmatpush1.msra.mxu1 %v2889_v55  ;;  %2333 = vmatprep.subr.mxu0 %v3745_v53 }
 0xa80   :  { %1583 = vmatprep.subr.mxu1 %v2901_v61  ;;  %2334 = vmatpush3.msra.mxu0 %v3112_v30 }
 0xa81   :  { %1584 = vmatpush1.msra.mxu1 %v2913_v49  ;;  %2335 = vmatprep.mubr.msk.f32.mxu0 %vm2476_vm1, %v3745_v53  ;;  %v2440_v49 = vld [vmem:[%s3615_s2 + $0xf0] sm:$0xff] }
 0xa82   :  { %1585 = vmatprep.subr.mxu1 %v2930_v60  ;;  %1340 = vmatprep.subr.mxu0 %v2546_v0  ;;  %v2441_v60 = vld [vmem:[%s3615_s2 + $0xe8] sm:$0xff] }
 0xa83   :  { %1586 = vmatpush1.msra.mxu1 %v2942_v58 }
 0xa84   :  { %1587 = vmatprep.subr.mxu1 %v2954_v56 }
 0xa85   :  { %1588 = vmatpush1.msra.mxu1 %v2966_v52 }
 0xa86   :  { %1589 = vmatprep.subr.mxu1 %v2978_v45 }
 0xa87   :  { %1590 = vmatpush1.msra.mxu1 %v2990_v44 }
 0xa88   :  { %1591 = vmatprep.subr.mxu1 %v3002_v43 }
 0xa89   :  { %1592 = vmatpush1.msra.mxu1 %v3014_v42 }
 0xa8a   :  { %1593 = vmatprep.subr.mxu1 %v3026_v41 }
 0xa8b   :  { %1594 = vmatpush1.msra.mxu1 %v3038_v40 }
 0xa8c   :  { %2245 = vmatmul.mubr.msk.f32.vlgmr.msra.gmra.mxu1 %vm86_vm0, %v1161_v19  ;;  %2338 = vmatprep.subr.mxu1 %v3745_v53 }
 0xa8d   :  { %2339 = vmatpush3.xpose.msk.msra.mxu1 %vm86_vm0, %v3102_v37  ;;  %2342 = vmatprep.mubr.msk.f32.mxu1 %vm2476_vm1, %v3745_v53 }
 0xa8e   :  { %2340 = vmatprep.subr.mxu1 %v3745_v53 }
 0xa91   :  { %2341 = vmatpush3.xpose.msk.msra.mxu1 %vm86_vm0, %v3112_v30 }
 0xa92   :  { %2345 = vmatprep.subr.mxu1 %v3745_v53 }
 0xb3c   :  { %v1230_v0 = vpop.f32.mrf.mxu0 }
 0xb3d   :  { %v1234_v40 = vsel %vm653_vm3, %v1230_v0, -1e+30 }
 0xb3e   :  { %v2330_v41 = vpop.f32.mrf.mxu0  ;;  %v1235_v42 = vsel %vm655_vm4, %v1234_v40, -inf }
 0xb3f   :  { %1236 = vmax.xlane.f32.xlu0 %v1235_v42 }
 0xbc8   :  { %v1237_v43 = vpop.xlane.xlu0 %1236 }
 0xbc9   :  { %v1238_v44 = vsub.f32 %v1230_v0, %v1237_v43  ;;  %v1461_v0 = vpop.f32.mrf.mxu1 }
 0xbcb   :  { %v1239_v45 = vmul.f32 1.442695, %v1238_v44 }
 0xbcd   :  { %2408 = vpow2.f32 %v1239_v45 }
 0xbda   :  { %v2409_v58 = vpop.eup %2408 }
 0xbdb   :  { %v1241_v48 = vsel %vm653_vm3, %v2409_v58, 0.0  ;;  %v1463_v58 = vpop.f32.mrf.mxu1 }
 0xbdc   :  { %v1242_v46 = vsel %vm655_vm4, %v1241_v48, 0.0 }
 0xbdd   :  { %1243 = vadd.xlane.f32.xlu1 %v1242_v46 }
 0xc66   :  { %v1244_v52 = vpop.xlane.xlu1 %1243 }
 0xc67   :  { %v1245_v55 = vmax.f32 %v1244_v52, 1e-30 }
 0xc69   :  { %2410 = vrcp.f32 %v1245_v55 }
 0xc76   :  { %v2411_v56 = vpop.eup %2410 }
 0xc77   :  { %v1247_v61 = vmul.f32 %v2411_v56, %v1241_v48 }
 0xc79   :  { %2336 = vmatmul.mubr.msk.f32.vlgmr.msra.gmra.mxu0 %vm669_vm6, %v1247_v61 }
 0xc7a   :  { %1341 = vmatpush1.msra.mxu0 %v2440_v49  ;;  %1388 = vmatprep.mubr.f32.mxu0 %v3745_v53 }
 0xc7b   :  { %1342 = vmatprep.subr.mxu0 %v2441_v60 }
 0xc7c   :  { %1343 = vmatpush1.msra.mxu0 %v2442_v39 }
 0xc7d   :  { %1344 = vmatprep.subr.mxu0 %v2443_v20 }
 0xc7e   :  { %1345 = vmatpush1.msra.mxu0 %v2444_v21 }
 0xc7f   :  { %1346 = vmatprep.subr.mxu0 %v2445_v22 }
 0xc80   :  { %1347 = vmatpush1.msra.mxu0 %v2446_v23 }
 0xc81   :  { %1348 = vmatprep.subr.mxu0 %v2447_v24 }
 0xc82   :  { %1349 = vmatpush1.msra.mxu0 %v2448_v10 }
 0xc83   :  { %1350 = vmatprep.subr.mxu0 %v2449_v25 }
 0xc84   :  { %1351 = vmatpush1.msra.mxu0 %v2450_v26 }
 0xc85   :  { %1352 = vmatprep.subr.mxu0 %v2451_v27  ;;  %v1629_v27 = vpop.f32.mrf.mxu1 }
 0xc86   :  { %1353 = vmatpush1.msra.mxu0 %v2624_v14  ;;  %v3786_v14 = vld [vmem:[#allocation17_spill] sm:$0xff] }
 0xc87   :  { %1354 = vmatprep.subr.mxu0 %v2630_v15  ;;  %v3787_v15 = vld [vmem:[#allocation18_spill] sm:$0xff] }
 0xc88   :  { %1355 = vmatpush1.msra.mxu0 %v2636_v16  ;;  %v3788_v16 = vld [vmem:[#allocation19_spill] sm:$0xff] }
 0xc89   :  { %1482 = vmatprep.subr.mxu0 %v2740_v33  ;;  %v3789_v33 = vld [vmem:[#allocation20_spill] sm:$0xff] }
 0xd39   :  { %v1317_v11 = vpop.f32.mrf.mxu0 }
 0xd3a   :  { %2240 = vmatmul.mubr.msk.f32.vlgmr.msra.gmra.mxu0 %vm86_vm0, %v1317_v11 }
 0xd3b   :  { %1483 = vmatpush1.msra.mxu0 %v3746_v2  ;;  %v2337_v59 = vpop.f32.mrf.mxu0  ;;  %1530 = vmatprep.mubr.f32.mxu0 %v3745_v53  ;;  %v3790_v2 = vld [vmem:[#allocation21_spill] sm:$0xff] }
 0xd3c   :  { %1484 = vmatprep.subr.mxu0 %v3747_v5  ;;  %v3792_v5 = vld [vmem:[#allocation23_spill] sm:$0xff] }
 0xd3d   :  { %1485 = vmatpush1.msra.mxu0 %v3748_v6  ;;  %v3793_v6 = vld [vmem:[#allocation24_spill] sm:$0xff] }
 0xd3e   :  { %1486 = vmatprep.subr.mxu0 %v3749_v7  ;;  %v3794_v7 = vld [vmem:[#allocation25_spill] sm:$0xff] }
 0xd3f   :  { %1487 = vmatpush1.msra.mxu0 %v3750_v8  ;;  %v3795_v8 = vld [vmem:[#allocation31_spill] sm:$0xff] }
 0xd40   :  { %1488 = vmatprep.subr.mxu0 %v3751_v9  ;;  %v3796_v9 = vld [vmem:[#allocation32_spill] sm:$0xff] }
 0xd41   :  { %1489 = vmatpush1.msra.mxu0 %v3786_v14 }
 0xd42   :  { %1490 = vmatprep.subr.mxu0 %v3787_v15 }
 0xd43   :  { %1491 = vmatpush1.msra.mxu0 %v3788_v16  ;;  %v1631_v16 = vpop.f32.mrf.mxu1 }
 0xd44   :  { %1492 = vmatprep.subr.mxu0 %v3789_v33 }
 0xd45   :  { %1493 = vmatpush1.msra.mxu0 %v3790_v2 }
 0xd46   :  { %1494 = vmatprep.subr.mxu0 %v3791_v62 }
 0xd47   :  { %1495 = vmatpush1.msra.mxu0 %v3792_v5 }
 0xd48   :  { %1496 = vmatprep.subr.mxu0 %v3793_v6 }
 0xd49   :  { %1497 = vmatpush1.msra.mxu0 %v3794_v7 }
 0xd4a   :  { %2242 = vmatmul.mubr.msk.f32.vlgmr.msra.gmra.mxu0 %vm86_vm0, %v3233_v51  ;;  %1655 = vmatprep.subr.mxu0 %v3795_v8  ;;  %v3804_v51 = vld [vmem:[#allocation40_spill] sm:$0xff] }
 0xd4b   :  { %1656 = vmatpush1.msra.mxu0 %v3796_v9  ;;  %1703 = vmatprep.mubr.f32.mxu0 %v3745_v53  ;;  %v1910_v9 = vld [vmem:[%s3621_s8 + $0x70] sm:$0xff] }
 0xd4c   :  { %1657 = vmatprep.subr.mxu0 %v3797_v29  ;;  %v1908_v29 = vld [vmem:[%s3621_s8 + $0x60] sm:$0xff] }
 0xd4d   :  { %1658 = vmatpush1.msra.mxu0 %v3798_v3  ;;  %v1907_v3 = vld [vmem:[%s3621_s8 + $0x58] sm:$0xff] }
 0xd4e   :  { %1659 = vmatprep.subr.mxu0 %v3799_v17  ;;  %v1906_v17 = vld [vmem:[%s3621_s8 + $0x50] sm:$0xff] }
 0xd4f   :  { %1660 = vmatpush1.msra.mxu0 %v3800_v57  ;;  %v1905_v57 = vld [vmem:[%s3621_s8 + $0x48] sm:$0xff] }
 0xd50   :  { %1661 = vmatprep.subr.mxu0 %v3801_v38  ;;  %v1904_v38 = vld [vmem:[%s3621_s8 + $0x40] sm:$0xff] }
 0xd51   :  { %1662 = vmatpush1.msra.mxu0 %v3802_v28  ;;  %v1903_v28 = vld [vmem:[%s3621_s8 + $0x38] sm:$0xff] }
 0xd52   :  { %1663 = vmatprep.subr.mxu0 %v3803_v63  ;;  %v1902_v63 = vld [vmem:[%s3621_s8 + $0x30] sm:$0xff] }
 0xd53   :  { %1664 = vmatpush1.msra.mxu0 %v3804_v51  ;;  %v1901_v51 = vld [vmem:[%s3621_s8 + $0x28] sm:$0xff] }
 0xd54   :  { %1665 = vmatprep.subr.mxu0 %v3805_v54  ;;  %v1900_v54 = vld [vmem:[%s3621_s8 + $0x20] sm:$0xff] }
 0xd55   :  { %1666 = vmatpush1.msra.mxu0 %v3806_v1  ;;  %v1899_v1 = vld [vmem:[%s3621_s8 + $0x18] sm:$0xff] }
 0xd56   :  { %1667 = vmatprep.subr.mxu0 %v3807_v12  ;;  %v1898_v12 = vld [vmem:[%s3621_s8 + $0x10] sm:$0xff] }
 0xd57   :  { %1668 = vmatpush1.msra.mxu0 %v3808_v50  ;;  %v1897_v50 = vld [vmem:[%s3621_s8 + $0x8] sm:$0xff] }
 0xd58   :  { %1669 = vmatprep.subr.mxu0 %v3809_v18  ;;  %v1896_v18 = vld [vmem:[%s3621_s8] sm:$0xff] }
 0xd59   :  { %1670 = vmatpush1.msra.mxu0 %v3810_v35 }
 0xdfa   :  { %v1390_v19 = vpop.f32.mrf.mxu0 }
 0xdfb   :  { %v1462_v41 = vadd.f32 %v1461_v0, %v1390_v19 }
 0xdfc   :  { %v1392_v40 = vpop.f32.mrf.mxu0 }
 0xdfd   :  { %v1464_v46 = vadd.f32 %v1463_v58, %v1392_v40 }
 0xe0a   :  { %v1532_v42 = vpop.f32.mrf.mxu0 }
 0xe0b   :  { %v1537_v43 = vadd.f32 %v1532_v42, %v1462_v41 }
 0xe0c   :  { %v1534_v48 = vpop.f32.mrf.mxu0 }
 0xe0d   :  { %v1539_v44 = vadd.f32 %v1537_v43, %v3778_v34  ;;  %v1538_v52 = vadd.f32 %v1534_v48, %v1464_v46 }
 0xe0f   :  { %v2243_v45 = vmul.f32 -1.442695, %v1539_v44  ;;  %v1540_v55 = vadd.f32 %v1538_v52, %v3779_v13 }
 0xe11   :  { %2412 = vpow2.f32 %v2243_v45  ;;  %v2244_v20 = vmul.f32 -1.442695, %v1540_v55 }
 0xe12   :  { %2414 = vtanh.f32 %v1540_v55 }
 0xe1e   :  { %v2413_v56 = vpop.eup %2412 }
 0xe1f   :  { %v1544_v61 = vadd.f32 1.0, %v2413_v56  ;;  %v2415_v49 = vpop.eup %2414 }
 0xe21   :  { %2416 = vrcp.f32 %v1544_v61 }
 0xe22   :  { %2418 = vpow2.f32 %v2244_v20 }
 0xe2e   :  { %v2417_v60 = vpop.eup %2416 }
 0xe2f   :  { %v1555_v39 = vmul.f32 %v2417_v60, %v2415_v49  ;;  %v2419_v34 = vpop.eup %2418  ;;  %v1554_v22 = vmul.f32 %v2417_v60, %v3229_v47 }
 0xe30   :  { %v1551_v21 = vadd.f32 1.0, %v2419_v34 }
 0xe31   :  { %1557 = vrot.lane.b32.xlu0 %v1555_v39, %s2475_s4 }
 0xe32   :  { %2420 = vrcp.f32 %v1551_v21 }
 0xe3f   :  { %v2421_v13 = vpop.eup %2420 }
 0xea3   :  { %v1558_v23 = vpop.permute.xlu0 %1557 }
 0xea4   :  { %v1560_v24 = vadd.f32 %v1558_v23, %v1554_v22  ;;  %v1926_v22 = vld [vmem:[%s3621_s8 + $0xf0] sm:$0xff]  ;;  %v1924_v23 = vld [vmem:[%s3621_s8 + $0xe0] sm:$0xff] }
 0xea6   :  { %2422 = vtanh.f32 %v1560_v24  ;;  %v1923_v24 = vld [vmem:[%s3621_s8 + $0xd8] sm:$0xff] }
 0xeb3   :  { %v2423_v10 = vpop.eup %2422 }
 0xeb4   :  { %v1562_v25 = vmul.f32 %v2423_v10, %v2421_v13  ;;  %v1922_v13 = vld [vmem:[%s3621_s8 + $0xd0] sm:$0xff]  ;;  %v1921_v10 = vld [vmem:[%s3621_s8 + $0xc8] sm:$0xff] }
 0xeb6   :  { %1635 = vrot.lane.b32.xlu1 %v1562_v25, %s2475_s4  ;;  %v1920_v25 = vld [vmem:[%s3621_s8 + $0xc0] sm:$0xff] }
 0xf28   :  { %v1636_v26 = vpop.permute.xlu1 %1635 }
 0xf29   :  { %2246 = vmatmul.mubr.msk.f32.vlgmr.msra.gmra.mxu0 %vm86_vm0, %v1636_v26  ;;  %v1918_v26 = vld [vmem:[%s3621_s8 + $0xb0] sm:$0xff] }
 0xf2a   :  { %2066 = vmatprep.mubr.f32.mxu0 %v3745_v53 }
 0xfe9   :  { %v1705_v11 = vpop.f32.mrf.mxu0 }
 0xfea   :  { %v1706_v59 = vadd.f32 %v1705_v11, %v1629_v27  ;;  %v1917_v27 = vld [vmem:[%s3621_s8 + $0xa8] sm:$0xff]  ;;  %v1916_v11 = vld [vmem:[%s3621_s8 + $0xa0] sm:$0xff] }
 0xfeb   :  { %v1707_v15 = vpop.f32.mrf.mxu0 }
 0xfec   :  { %v1710_v14 = vadd.f32 %v1706_v59, %v3091_v36  ;;  %v1708_v33 = vadd.f32 %v1707_v15, %v1631_v16  ;;  %v1911_v36 = vld [vmem:[%s3621_s8 + $0x78] sm:$0xff]  ;;  %v1912_v15 = vld [vmem:[%s3621_s8 + $0x80] sm:$0xff] }
 0xfed   :  { %2018 = vmatprep.subr.mxu0 %v1911_v36  ;;  %v1915_v59 = vld [vmem:[%s3621_s8 + $0x98] sm:$0xff]  ;;  %v2117_v36 = vld [vmem:[%s3623_s10 + $0xe0] sm:$0xff] }
 0xfee   :  { %v2247_v47 = vmul.f32 -1.442695, %v1710_v14  ;;  %v1711_v2 = vadd.f32 %v1708_v33, %v3095_v32  ;;  %v1909_v32 = vld [vmem:[%s3621_s8 + $0x68] sm:$0xff]  ;;  %2019 = vmatpush1.msra.mxu0 %v1910_v9  ;;  %v1914_v14 = vld [vmem:[%s3621_s8 + $0x90] sm:$0xff]  ;;  %v2120_v16 = vld [vmem:[%s3623_s10 + $0xf8] sm:$0xff] }
 0xfef   :  { %2020 = vmatprep.subr.mxu0 %v1909_v32  ;;  %v2104_v33 = vld [vmem:[%s3623_s10 + $0x78] sm:$0xff]  ;;  %v2101_v9 = vld [vmem:[%s3623_s10 + $0x60] sm:$0xff] }
 0xff0   :  { %2424 = vpow2.f32 %v2247_v47  ;;  %2021 = vmatpush1.msra.mxu0 %v1908_v29  ;;  %v2248_v35 = vmul.f32 -1.442695, %v1711_v2  ;;  %v1913_v47 = vld [vmem:[%s3621_s8 + $0x88] sm:$0xff]  ;;  %v2116_v32 = vld [vmem:[%s3623_s10 + $0xd8] sm:$0xff] }
 0xff1   :  { %2426 = vtanh.f32 %v1711_v2  ;;  %2022 = vmatprep.subr.mxu0 %v1907_v3  ;;  %v2100_v29 = vld [vmem:[%s3623_s10 + $0x58] sm:$0xff]  ;;  %v2115_v3 = vld [vmem:[%s3623_s10 + $0xd0] sm:$0xff] }
 0xff2   :  { %2023 = vmatpush1.msra.mxu0 %v1906_v17  ;;  %v2099_v17 = vld [vmem:[%s3623_s10 + $0x50] sm:$0xff] }
 0xff3   :  { %2024 = vmatprep.subr.mxu0 %v1905_v57  ;;  %v2114_v57 = vld [vmem:[%s3623_s10 + $0xc8] sm:$0xff] }
 0xff4   :  { %2025 = vmatpush1.msra.mxu0 %v1904_v38  ;;  %v2098_v38 = vld [vmem:[%s3623_s10 + $0x48] sm:$0xff] }
 0xff5   :  { %2026 = vmatprep.subr.mxu0 %v1903_v28  ;;  %v2113_v28 = vld [vmem:[%s3623_s10 + $0xc0] sm:$0xff] }
 0xff6   :  { %2027 = vmatpush1.msra.mxu0 %v1902_v63  ;;  %v2097_v63 = vld [vmem:[%s3623_s10 + $0x40] sm:$0xff] }
 0xff7   :  { %2028 = vmatprep.subr.mxu0 %v1901_v51  ;;  %v2112_v51 = vld [vmem:[%s3623_s10 + $0xb8] sm:$0xff] }
 0xff8   :  { %2029 = vmatpush1.msra.mxu0 %v1900_v54  ;;  %v2096_v54 = vld [vmem:[%s3623_s10 + $0x38] sm:$0xff] }
 0xff9   :  { %2030 = vmatprep.subr.mxu0 %v1899_v1  ;;  %v2111_v1 = vld [vmem:[%s3623_s10 + $0xb0] sm:$0xff] }
 0xffa   :  { %2031 = vmatpush1.msra.mxu0 %v1898_v12  ;;  %v2095_v12 = vld [vmem:[%s3623_s10 + $0x30] sm:$0xff] }
 0xffb   :  { %2032 = vmatprep.subr.mxu0 %v1897_v50  ;;  %v2110_v50 = vld [vmem:[%s3623_s10 + $0xa8] sm:$0xff] }
 0xffc   :  { %2033 = vmatpush1.msra.mxu0 %v1896_v18  ;;  %v2094_v18 = vld [vmem:[%s3623_s10 + $0x28] sm:$0xff] }
 0xffd   :  { %v2425_v62 = vpop.eup %2424 }
 0xffe   :  { %v1715_v5 = vadd.f32 1.0, %v2425_v62  ;;  %v2427_v6 = vpop.eup %2426  ;;  %v2119_v62 = vld [vmem:[%s3623_s10 + $0xf0] sm:$0xff] }
0x1000   :  { %2428 = vrcp.f32 %v1715_v5  ;;  %v2103_v5 = vld [vmem:[%s3623_s10 + $0x70] sm:$0xff] }
0x1001   :  { %2430 = vpow2.f32 %v2248_v35  ;;  %v2109_v35 = vld [vmem:[%s3623_s10 + $0xa0] sm:$0xff] }
0x100d   :  { %v2429_v7 = vpop.eup %2428 }
0x100e   :  { %v1726_v8 = vmul.f32 %v2429_v7, %v2427_v6  ;;  %v2431_v19 = vpop.eup %2430  ;;  %v1725_v40 = vmul.f32 %v2429_v7, %v3258_v31  ;;  %v2118_v7 = vld [vmem:[%s3623_s10 + $0xe8] sm:$0xff] }
0x100f   :  { %v1722_v0 = vadd.f32 1.0, %v2431_v19  ;;  %v2093_v19 = vld [vmem:[%s3623_s10 + $0x20] sm:$0xff] }
0x1010   :  { %1728 = vrot.lane.b32.xlu0 %v1726_v8, %s2475_s4  ;;  %v2102_v8 = vld [vmem:[%s3623_s10 + $0x68] sm:$0xff] }
0x1011   :  { %2432 = vrcp.f32 %v1722_v0  ;;  %v2108_v0 = vld [vmem:[%s3623_s10 + $0x98] sm:$0xff] }
0x101e   :  { %v2433_v43 = vpop.eup %2432 }
0x1082   :  { %v1729_v41 = vpop.permute.xlu0 %1728 }
0x1083   :  { %v1731_v42 = vadd.f32 %v1729_v41, %v1725_v40  ;;  %v2092_v40 = vld [vmem:[%s3623_s10 + $0x18] sm:$0xff]  ;;  %v2107_v41 = vld [vmem:[%s3623_s10 + $0x90] sm:$0xff] }
0x1085   :  { %2434 = vtanh.f32 %v1731_v42  ;;  %v2091_v42 = vld [vmem:[%s3623_s10 + $0x10] sm:$0xff] }
0x1092   :  { %v2435_v44 = vpop.eup %2434 }
0x1093   :  { %v1733_v45 = vmul.f32 %v2435_v44, %v2433_v43  ;;  %v2106_v43 = vld [vmem:[%s3623_s10 + $0x88] sm:$0xff] }
0x1094   :  { %v2090_v44 = vld [vmem:[%s3623_s10 + $0x8] sm:$0xff] }
0x1095   :  { %1735 = vrot.lane.b32.xlu1 %v1733_v45, %s2475_s4  ;;  %v2105_v45 = vld [vmem:[%s3623_s10 + $0x80] sm:$0xff] }
0x1107   :  { %v1736_v58 = vpop.permute.xlu1 %1735 }
0x1108   :  { %2343 = vmatmul.mubr.msk.f32.vlgmr.msra.gmra.mxu1 %vm86_vm0, %v1736_v58  ;;  %2255 = vmatmul.mubr.msk.f32.vlgmr.msra.gmra.mxu0 %vm86_vm0, %v1736_v58  ;;  %v2089_v58 = vld [vmem:[%s3623_s10] sm:$0xff] }
0x1109   :  { %2346 = vmatpush3.msk.msra.mxu1 %vm673_vm5, %v3102_v37  ;;  %2349 = vmatprep.mubr.msk.f32.mxu1 %vm2476_vm1, %v3745_v53 }
0x110a   :  { %2347 = vmatprep.subr.mxu1 %v3745_v53 }
0x110b   :  { %2348 = vmatpush3.msra.mxu1 %v3112_v30  ;;  %v1927_v30 = vld [vmem:[%s3621_s8 + $0xf8] sm:$0xff] }
0x110c   :  { %1947 = vmatprep.subr.mxu1 %v1927_v30 }
0x11c8   :  { %v1805_v31 = vpop.f32.mrf.mxu1 }
0x11c9   :  { %v1809_v48 = vsel %vm653_vm3, %v1805_v31, -1e+30 }
0x11ca   :  { %v2344_v46 = vpop.f32.mrf.mxu1  ;;  %v1810_v52 = vsel %vm655_vm4, %v1809_v48, -inf  ;;  %v2068_v48 = vpop.f32.mrf.mxu0 }
0x11cb   :  { %1811 = vmax.xlane.f32.xlu0 %v1810_v52  ;;  %v3811_v52 = vld [vmem:[#allocation26_spill] sm:$0xff] }
0x1254   :  { %v1812_v55 = vpop.xlane.xlu0 %1811 }
0x1255   :  { %v1813_v56 = vsub.f32 %v1805_v31, %v1812_v55  ;;  %v2073_v31 = vld [vmem:[%s3622_s9] sm:$0x3]  ;;  %s2477_s9 = smov [#allocation2]  }
0x1256   :  { %v2078_v55 = vrot.slane %v2073_v31, %v3811_v52  ;;  %s2206_s20 = sshll.u32 %s2477_s9, 4  ;;  %s2207_s20 = int_to_ptr.vmem [resolvable:$true] %s2206_s20 }
0x1257   :  { %v1814_v61 = vmul.f32 1.442695, %v1813_v56  ;;  %s2452_s2 = scalar_lea.vmem %s2207_s20, 32  ;;  %p2457_p1 = scmp.lt.s32.totalorder %s2207_s20, %s2207_s20 }
0x1258   :  { %p2453_p0 = scmp.ne.s32.totalorder %s2207_s20, %s2452_s2  ;;  %p2458_p2 = scmp.lt.s32.totalorder %s2452_s2, %s2452_s2 }
0x1259   :  { %2436 = vpow2.f32 %v1814_v61  ;;  %v3812_v61 = vld [vmem:[#allocation28_spill] sm:$0xff] }
0x125a   :  { %p2459_p3 = por %p2458_p2, %p2457_p1 }
0x125c   :  { %p2460_p4 = pnand %p2459_p3, %p2453_p0 }
0x1266   :  { %v2437_v37 = vpop.eup %2436 }
0x1267   :  { %v1816_v49 = vsel %vm653_vm3, %v2437_v37, 0.0  ;;  %v2082_v37 = vrot.slane %v2073_v31, %v3812_v61 }
0x1268   :  { %v1817_v60 = vsel %vm655_vm4, %v1816_v49, 0.0 }
0x1269   :  { %1818 = vadd.xlane.f32.xlu1 %v1817_v60 }
0x12f2   :  { %v1819_v39 = vpop.xlane.xlu1 %1818 }
0x12f3   :  { %v1820_v20 = vmax.f32 %v1819_v39, 1e-30 }
0x12f5   :  { %2438 = vrcp.f32 %v1820_v20 }
0x1302   :  { %v2439_v34 = vpop.eup %2438 }
0x1303   :  { %v1822_v21 = vmul.f32 %v2439_v34, %v1816_v49  ;;  %v2070_v49 = vpop.f32.mrf.mxu0 }
0x1305   :  { %2350 = vmatmul.mubr.msk.f32.vlgmr.msra.gmra.mxu1 %vm669_vm6, %v1822_v21 }
0x1306   :  { %1948 = vmatpush1.msra.mxu1 %v1926_v22  ;;  %1995 = vmatprep.mubr.f32.mxu1 %v3745_v53  ;;  %v1919_v53 = vld [vmem:[%s3621_s8 + $0xb8] sm:$0xff] }
0x1307   :  { %1949 = vmatprep.subr.mxu1 %v1925_v4  ;;  %v2256_v4 = vld [vmem:[%s3624_s11] ss:$0 sm:$0xff] }
0x1308   :  { %1950 = vmatpush1.msra.mxu1 %v1924_v23 }
0x1309   :  { %1951 = vmatprep.subr.mxu1 %v1923_v24 }
0x130a   :  { %1952 = vmatpush1.msra.mxu1 %v1922_v13 }
0x130b   :  { %1953 = vmatprep.subr.mxu1 %v1921_v10 }
0x130c   :  { %1954 = vmatpush1.msra.mxu1 %v1920_v25 }
0x130d   :  { %1955 = vmatprep.subr.mxu1 %v1919_v53 }
0x130e   :  { %1956 = vmatpush1.msra.mxu1 %v1918_v26 }
0x130f   :  { %1957 = vmatprep.subr.mxu1 %v1917_v27 }
0x1310   :  { %1958 = vmatpush1.msra.mxu1 %v1916_v11 }
0x1311   :  { %1959 = vmatprep.subr.mxu1 %v1915_v59 }
0x1312   :  { %1960 = vmatpush1.msra.mxu1 %v1914_v14 }
0x1313   :  { %1961 = vmatprep.subr.mxu1 %v1913_v47 }
0x1314   :  { %1962 = vmatpush1.msra.mxu1 %v1912_v15 }
0x1315   :  { %2275 = vmatprep.subr.mxu1 %v2120_v16 }
0x13c5   :  { %v1892_v2 = vpop.f32.mrf.mxu1 }
0x13c6   :  { %2254 = vmatmul.mubr.msk.f32.vlgmr.msra.gmra.mxu1 %vm86_vm0, %v1892_v2 }
0x13c7   :  { %v2351_v6 = vpop.f32.mrf.mxu1  ;;  %2276 = vmatpush3.msra.mxu1 %v2104_v33 }
0x13c8   :  { %2277 = vmatprep.subr.mxu1 %v2119_v62 }
0x13c9   :  { %2278 = vmatpush3.msra.mxu1 %v2103_v5 }
0x13ca   :  { %2279 = vmatprep.subr.mxu1 %v2118_v7 }
0x13cb   :  { %2280 = vmatpush3.msra.mxu1 %v2102_v8 }
0x13cc   :  { %2281 = vmatprep.subr.mxu1 %v2117_v36 }
0x13cd   :  { %2282 = vmatpush3.msra.mxu1 %v2101_v9 }
0x13ce   :  { %2283 = vmatprep.subr.mxu1 %v2116_v32 }
0x13cf   :  { %2284 = vmatpush3.msra.mxu1 %v2100_v29 }
0x13d0   :  { %2285 = vmatprep.subr.mxu1 %v2115_v3 }
0x13d1   :  { %2286 = vmatpush3.msra.mxu1 %v2099_v17 }
0x13d2   :  { %2287 = vmatprep.subr.mxu1 %v2114_v57 }
0x13d3   :  { %2288 = vmatpush3.msra.mxu1 %v2098_v38 }
0x13d4   :  { %2289 = vmatprep.subr.mxu1 %v2113_v28 }
0x13d5   :  { %2290 = vmatpush3.msra.mxu1 %v2097_v63 }
0x13d6   :  { %2291 = vmatprep.subr.mxu1 %v2112_v51 }
0x13d7   :  { %2292 = vmatpush3.msra.mxu1 %v2096_v54 }
0x13d8   :  { %2293 = vmatprep.subr.mxu1 %v2111_v1 }
0x13d9   :  { %2294 = vmatpush3.msra.mxu1 %v2095_v12 }
0x13da   :  { %2295 = vmatprep.subr.mxu1 %v2110_v50 }
0x13db   :  { %2296 = vmatpush3.msra.mxu1 %v2094_v18 }
0x13dc   :  { %2297 = vmatprep.subr.mxu1 %v2109_v35 }
0x13dd   :  { %2298 = vmatpush3.msra.mxu1 %v2093_v19 }
0x13de   :  { %2299 = vmatprep.subr.mxu1 %v2108_v0 }
0x13df   :  { %2300 = vmatpush3.msra.mxu1 %v2092_v40 }
0x13e0   :  { %2301 = vmatprep.subr.mxu1 %v2107_v41 }
0x13e1   :  { %2302 = vmatpush3.msra.mxu1 %v2091_v42 }
0x13e2   :  { %2303 = vmatprep.subr.mxu1 %v2106_v43 }
0x13e3   :  { %2304 = vmatpush3.msra.mxu1 %v2090_v44 }
0x13e4   :  { %2305 = vmatprep.subr.mxu1 %v2105_v45 }
0x13e5   :  { %2306 = vmatpush3.msra.mxu1 %v2089_v58 }
0x1486   :  { %v1997_v46 = vpop.f32.mrf.mxu1 }
0x1487   :  { %v2069_v56 = vadd.f32 %v2068_v48, %v1997_v46 }
0x1488   :  { %v1999_v60 = vpop.f32.mrf.mxu1 }
0x1489   :  { %v2071_v30 = vadd.f32 %v2070_v49, %v1999_v60  ;;  %v2085_v39 = vadd.f32 %v2078_v55, %v2069_v56 }
0x148b   :  { %v2086_v20 = vadd.f32 %v2082_v37, %v2071_v30  ;;  %v2087_v21 = vmax.f32 %v2085_v39, 0.0 }
0x148d   :  { %v2088_v34 = vmax.f32 %v2086_v20, 0.0 }
0x148f   :  { %2192 = vmatprep.mubr.f32.mxu1 %v2088_v34 }
0x1490   :  { %2193 = vmatmul.mubr.f32.vlgmr.msra.gmra.mxu1 %v2087_v21 }
0x1550   :  { %v2307_v22 = vpop.f32.mrf.mxu1 }
0x1552   :  { %v2308_v23 = vpop.f32.mrf.mxu1 }
0x1553   :  { %v2309_v24 = vadd.f32 %v2308_v23, %v2307_v22 }
0x1555   :  { %v2195_v13 = vadd.f32 %v2309_v24, %v2256_v4 }
0x1557   :  { %2199 = vst.msk [vmem:[#allocation2] sm:$0x3] %vm2198_vm7, %v2195_v13 }
0x1558   :  { %2463 = shalt.err (!%p2460_p4)
}
0x1559   :  { %2209 = dma.vmem_to_hbm [thread:$0]  %s2207_s20, 32, %s3625_s12, [#allocation3]  }
0x155a   :  { %2472 = dma.done.wait [#allocation3], 32  }
0x155b   :  { %2473 = vsyncadd [#allocation3], 4294967264 }
0x155c   :  { %2213 = vsyncpa [#allocation3], 1 }

</bundles_post_ra>
